<compile_context>
chip_gen: v7x
topology: tpu7x:2x2x1
jax: 0.10.0
libtpu: 0.0.40
codegen_flags: <defaults>
</compile_context>

<pallas_src>
import functools

import numpy as np
import jax
import jax.numpy as jnp
from jax.experimental import pallas as pl
from jax.experimental.pallas import tpu as pltpu


def _round_up(x, m):
    return ((x + m - 1) // m) * m


def fake_quant(w, bits):
    """Symmetric per-tensor fake quantization of weights to `bits` bits."""
    if bits >= 32:
        return w
    qmax = 2.0 ** (bits - 1) - 1.0
    scale = jnp.maximum(jnp.max(jnp.abs(w)), 1e-8) / qmax
    return jnp.round(w / scale) * scale


def _subsample_matrix(H, W, s):
    """0/1 matrix selecting stride-s output positions from the stride-1 (H,W) grid."""
    Ho = (H - 1) // s + 1
    Wo = (W - 1) // s + 1
    m = np.zeros((Ho * Wo, H * W), np.float32)
    for ho in range(Ho):
        for wo in range(Wo):
            m[ho * Wo + wo, (ho * s) * W + (wo * s)] = 1.0
    return m


# --------------------------- single fused network kernel ----------------------

def _net_kernel(*refs, meta, inv_hw):
    # refs layout:
    #   [x] + per-block [dw_w, dw_b, (sel), pw_w, pw_b] + [fc_w, fc_b]   (inputs)
    #   + [out]                                                           (output)
    #   + one VMEM pad-scratch per intermediate activation                (scratch)
    n_in = 1 + sum(5 if m["stride"] > 1 else 4 for m in meta) + 2
    x_ref = refs[0]
    out_ref = refs[n_in]
    pads = refs[n_in + 1:]

    # Zero the spatial-halo scratch buffers; the interior is fully overwritten
    # below, only the 1-pixel zero border matters.  Re-zeroing every grid step
    # keeps this correct regardless of how the batch grid is split across cores.
    for p in pads:
        p[...] = jnp.zeros_like(p)

    xp = x_ref[...]                          # (H+2, W+2, cp) spatially padded input
    cp = xp.shape[-1]                        # 128 (lane-dense channel padding)
    idx = 1
    nblk = len(meta)
    for bi, m in enumerate(meta):
        H, W, Ho, Wo, s = m["H"], m["W"], m["Ho"], m["Wo"], m["stride"]
        dww = refs[idx][...]                 # (9, cp) depthwise taps
        dwb = refs[idx + 1][...]             # (1, cp)
        idx += 2
        sel = None
        if s > 1:
            sel = refs[idx][...]             # (Ho*Wo, H*W) 0/1 stride selector
            idx += 1
        pww = refs[idx][...]                 # (cp, cp)
        pwb = refs[idx + 1][...]             # (1, cp)
        idx += 2

        # depthwise 3x3, stride 1, pad 1 (padding already in xp) + bias + ReLU
        acc = jnp.zeros((H, W, cp), jnp.float32)
        for kh in range(3):
            for kw in range(3):
                acc = acc + xp[kh:kh + H, kw:kw + W, :] * dww[kh * 3 + kw][None, None, :]
        d = jnp.maximum(acc + dwb[0][None, None, :], 0.0)        # (H, W, cp)

        # stride: select only the strided output rows before the pointwise matmul
        d_flat = d.reshape(H * W, cp)        # W is a multiple of 8 -> cheap reshape
        if sel is not None:
            d_flat = jnp.dot(sel, d_flat, preferred_element_type=jnp.float32)

        # pointwise 1x1 conv == matmul over spatial positions, + bias + ReLU
        y = jnp.dot(d_flat, pww, preferred_element_type=jnp.float32) + pwb
        y = jnp.maximum(y, 0.0)              # (Ho*Wo, cp)

        if bi < nblk - 1:
            # stash the next block's input, already spatially padded, in VMEM
            pad = pads[bi]
            pad[1:Ho + 1, 1:Wo + 1, :] = y.reshape(Ho, Wo, cp)
            xp = pad[...]
        else:
            # fused adaptive_avg_pool2d(1) + flatten + Linear classifier
            fcw = refs[idx][...]
            fcb = refs[idx + 1][...]
            idx += 2
            pooled = jnp.sum(y, axis=0, keepdims=True) * inv_hw          # (1, cp)
            out_ref[...] = (jnp.dot(pooled, fcw,
                                    preferred_element_type=jnp.float32) + fcb)


def _run_net(x_pad, blocks, classifier):
    """x_pad: (N, H+2, W+2, cp) channel- and spatially-padded network input."""
    N, Hp, Wp, cp = x_pad.shape
    assert (Hp, Wp) == (blocks[0]["H"] + 2, blocks[0]["W"] + 2)

    meta = [dict(H=b["H"], W=b["W"], Ho=b["Ho"], Wo=b["Wo"], stride=b["stride"])
            for b in blocks]

    inputs = [x_pad]
    in_specs = [pl.BlockSpec((None, Hp, Wp, cp), lambda n: (n, 0, 0, 0))]
    for b in blocks:
        inputs += [b["dw_w"], b["dw_b"]]
        in_specs += [pl.BlockSpec(b["dw_w"].shape, lambda n: (0, 0)),
                     pl.BlockSpec(b["dw_b"].shape, lambda n: (0, 0))]
        if b["stride"] > 1:
            inputs.append(b["sel"])
            in_specs.append(pl.BlockSpec(b["sel"].shape, lambda n: (0, 0)))
        inputs += [b["pw_w"], b["pw_b"]]
        in_specs += [pl.BlockSpec(b["pw_w"].shape, lambda n: (0, 0)),
                     pl.BlockSpec(b["pw_b"].shape, lambda n: (0, 0))]
    fc_w, fc_b = classifier
    inputs += [fc_w, fc_b]
    in_specs += [pl.BlockSpec(fc_w.shape, lambda n: (0, 0)),
                 pl.BlockSpec(fc_b.shape, lambda n: (0, 0))]

    # one VMEM halo buffer per intermediate activation (input of blocks 1..n-1)
    scratch_shapes = [pltpu.VMEM((b["H"] + 2, b["W"] + 2, cp), jnp.float32)
                      for b in blocks[1:]]

    out_shape = jax.ShapeDtypeStruct((N, 1, cp), jnp.float32)
    out_specs = pl.BlockSpec((None, 1, cp), lambda n: (n, 0, 0))

    last = blocks[-1]
    kernel = functools.partial(_net_kernel, meta=meta,
                               inv_hw=1.0 / float(last["Ho"] * last["Wo"]))

    return pl.pallas_call(
        kernel,
        grid=(N,),
        in_specs=in_specs,
        out_specs=out_specs,
        out_shape=out_shape,
        scratch_shapes=scratch_shapes,
        compiler_params=pltpu.CompilerParams(
            dimension_semantics=("parallel",)),   # batch shards across TCs on v7x
    )(*inputs)


# ----------------------------- model (init + forward) -------------------------

def init_params(config, key, in_channels=3, num_classes=10, in_hw=(16, 16)):
    """All weight prep (fake-quant, lane-dense padding, selection matrices) done once."""
    chans = [in_channels] + [c for c, _, _ in config]
    cp = _round_up(max(chans + [num_classes]), 128)
    H, W = in_hw
    blocks = []
    cin = in_channels
    for (cout, stride, bits) in config:
        key, k_dw, k_pw, k_db, k_pb = jax.random.split(key, 5)
        dw_w = fake_quant(jax.random.normal(k_dw, (3, 3, cin), jnp.float32) / 3.0, bits)
        pw_w = fake_quant(jax.random.normal(k_pw, (cin, cout), jnp.float32)
                          / jnp.sqrt(float(cin)), bits)
        dw_b = 0.1 * jax.random.normal(k_db, (cin,), jnp.float32)
        pw_b = 0.1 * jax.random.normal(k_pb, (cout,), jnp.float32)

        dw_wp = jnp.zeros((9, cp), jnp.float32).at[:, :cin].set(dw_w.reshape(9, cin))
        dw_bp = jnp.zeros((1, cp), jnp.float32).at[0, :cin].set(dw_b)
        pw_wp = jnp.zeros((cp, cp), jnp.float32).at[:cin, :cout].set(pw_w)
        pw_bp = jnp.zeros((1, cp), jnp.float32).at[0, :cout].set(pw_b)

        Ho = (H - 1) // stride + 1
        Wo = (W - 1) // stride + 1
        sel = jnp.asarray(_subsample_matrix(H, W, stride)) if stride > 1 else None
        blocks.append(dict(dw_w=dw_wp, dw_b=dw_bp, pw_w=pw_wp, pw_b=pw_bp, sel=sel,
                           stride=int(stride), H=H, W=W, Ho=Ho, Wo=Wo))
        H, W, cin = Ho, Wo, cout

    key, k_fc, k_fb = jax.random.split(key, 3)
    fc_w = jax.random.normal(k_fc, (cin, num_classes), jnp.float32) / jnp.sqrt(float(cin))
    fc_b = 0.1 * jax.random.normal(k_fb, (num_classes,), jnp.float32)
    fc_wp = jnp.zeros((cp, cp), jnp.float32).at[:cin, :num_classes].set(fc_w)
    fc_bp = jnp.zeros((1, cp), jnp.float32).at[0, :num_classes].set(fc_b)
    return blocks, (fc_wp, fc_bp)


def quantized_mobilenet_forward(x_nchw, blocks, classifier, num_classes=10):
    # layout: NCHW (PyTorch) -> NHWC once; channels padded to 128 once; spatial
    # pad done once here (subsequent blocks keep activations padded in VMEM).
    x = jnp.transpose(x_nchw, (0, 2, 3, 1)).astype(jnp.float32)
    N, H, W, cin = x.shape
    assert H == blocks[0]["H"] and W == blocks[0]["W"], "input spatial size mismatch"
    cp = blocks[0]["dw_w"].shape[-1]
    xp = jnp.zeros((N, H + 2, W + 2, cp), jnp.float32).at[:, 1:H + 1, 1:W + 1, :cin].set(x)
    out = _run_net(xp, blocks, classifier)               # (N, 1, cp) padded logits
    return out[:, 0, :num_classes]


# ----------------------------- pure-JAX reference ------------------------------

def _reference_forward(x_nchw, blocks, classifier, num_classes):
    x = jnp.transpose(x_nchw, (0, 2, 3, 1)).astype(jnp.float32)
    N, H, W, cin = x.shape
    cp = blocks[0]["dw_w"].shape[-1]
    x = jnp.pad(x, ((0, 0), (0, 0), (0, 0), (0, cp - cin)))
    for blk in blocks:
        s = blk["stride"]
        H, W = x.shape[1], x.shape[2]
        xp = jnp.pad(x, ((0, 0), (1, 1), (1, 1), (0, 0)))
        w = blk["dw_w"]
        acc = jnp.zeros((N, H, W, cp), jnp.float32)
        for kh in range(3):
            for kw in range(3):
                acc = acc + xp[:, kh:kh + H, kw:kw + W, :] * w[kh * 3 + kw][None, None, None, :]
        d = jnp.maximum(acc + blk["dw_b"][0][None, None, None, :], 0.0)
        d = d[:, ::s, ::s, :]
        y = jnp.einsum("nhwc,cd->nhwd", d, blk["pw_w"]) + blk["pw_b"][0]
        x = jnp.maximum(y, 0.0)
    pooled = jnp.mean(x, axis=(1, 2))
    fc_w, fc_b = classifier
    return (pooled @ fc_w + fc_b)[:, :num_classes]


if __name__ == "__main__":
    # config: (out_channels, stride, bits) per block, as in the PyTorch module.
    config = [(8, 1, 8), (16, 2, 4), (32, 2, 4)]
    num_classes = 10

    key = jax.random.PRNGKey(0)
    key, kx = jax.random.split(key)
    x = jax.random.normal(kx, (2, 3, 16, 16), jnp.float32)   # NCHW, like PyTorch

    blocks, classifier = init_params(config, key, in_channels=3,
                                     num_classes=num_classes, in_hw=(16, 16))

    fwd = jax.jit(lambda xin: quantized_mobilenet_forward(xin, blocks, classifier, num_classes))
    logits = jax.block_until_ready(fwd(x))

    assert logits.shape == (2, num_classes) and logits.dtype == jnp.float32

    ref = jax.block_until_ready(_reference_forward(x, blocks, classifier, num_classes))
    err = float(jnp.max(jnp.abs(logits - ref)))
    assert err < 1e-2, f"mismatch vs pure-JAX reference: max abs err {err}"

    print("KERNEL_OK")
</pallas_src>

<mosaic_0001>
module attributes {stable_mosaic.version = 11 : i64} {
  func.func @_net_kernel(%arg0: i32, %arg1: memref<1x18x18x128xf32, #tpu.memory_space<vmem>>, %arg2: memref<9x128xf32, #tpu.memory_space<vmem>>, %arg3: memref<1x128xf32, #tpu.memory_space<vmem>>, %arg4: memref<128x128xf32, #tpu.memory_space<vmem>>, %arg5: memref<1x128xf32, #tpu.memory_space<vmem>>, %arg6: memref<9x128xf32, #tpu.memory_space<vmem>>, %arg7: memref<1x128xf32, #tpu.memory_space<vmem>>, %arg8: memref<64x256xf32, #tpu.memory_space<vmem>>, %arg9: memref<128x128xf32, #tpu.memory_space<vmem>>, %arg10: memref<1x128xf32, #tpu.memory_space<vmem>>, %arg11: memref<9x128xf32, #tpu.memory_space<vmem>>, %arg12: memref<1x128xf32, #tpu.memory_space<vmem>>, %arg13: memref<16x64xf32, #tpu.memory_space<vmem>>, %arg14: memref<128x128xf32, #tpu.memory_space<vmem>>, %arg15: memref<1x128xf32, #tpu.memory_space<vmem>>, %arg16: memref<128x128xf32, #tpu.memory_space<vmem>>, %arg17: memref<1x128xf32, #tpu.memory_space<vmem>>, %arg18: memref<1x1x128xf32, #tpu.memory_space<vmem>>, %arg19: memref<18x18x128xf32, #tpu.memory_space<vmem>>, %arg20: memref<10x10x128xf32, #tpu.memory_space<vmem>>) attributes {dimension_semantics = [#tpu.dimension_semantics<parallel>], iteration_bounds = array<i64: 2>, scalar_prefetch = 0 : i64, scratch_operands = 2 : i64, tpu.core_type = #tpu.core_type<tc>, window_params = [{transform_indices = @transform_0, window_bounds = array<i64: 1, 18, 18, 128>}, {pipeline_mode = #tpu.pipeline_mode<synchronous>, transform_indices = @transform_1, window_bounds = array<i64: 9, 128>}, {pipeline_mode = #tpu.pipeline_mode<synchronous>, transform_indices = @transform_2, window_bounds = array<i64: 1, 128>}, {pipeline_mode = #tpu.pipeline_mode<synchronous>, transform_indices = @transform_3, window_bounds = array<i64: 128, 128>}, {pipeline_mode = #tpu.pipeline_mode<synchronous>, transform_indices = @transform_4, window_bounds = array<i64: 1, 128>}, {pipeline_mode = #tpu.pipeline_mode<synchronous>, transform_indices = @transform_5, window_bounds = array<i64: 9, 128>}, {pipeline_mode = #tpu.pipeline_mode<synchronous>, transform_indices = @transform_6, window_bounds = array<i64: 1, 128>}, {pipeline_mode = #tpu.pipeline_mode<synchronous>, transform_indices = @transform_7, window_bounds = array<i64: 64, 256>}, {pipeline_mode = #tpu.pipeline_mode<synchronous>, transform_indices = @transform_8, window_bounds = array<i64: 128, 128>}, {pipeline_mode = #tpu.pipeline_mode<synchronous>, transform_indices = @transform_9, window_bounds = array<i64: 1, 128>}, {pipeline_mode = #tpu.pipeline_mode<synchronous>, transform_indices = @transform_10, window_bounds = array<i64: 9, 128>}, {pipeline_mode = #tpu.pipeline_mode<synchronous>, transform_indices = @transform_11, window_bounds = array<i64: 1, 128>}, {pipeline_mode = #tpu.pipeline_mode<synchronous>, transform_indices = @transform_12, window_bounds = array<i64: 16, 64>}, {pipeline_mode = #tpu.pipeline_mode<synchronous>, transform_indices = @transform_13, window_bounds = array<i64: 128, 128>}, {pipeline_mode = #tpu.pipeline_mode<synchronous>, transform_indices = @transform_14, window_bounds = array<i64: 1, 128>}, {pipeline_mode = #tpu.pipeline_mode<synchronous>, transform_indices = @transform_15, window_bounds = array<i64: 128, 128>}, {pipeline_mode = #tpu.pipeline_mode<synchronous>, transform_indices = @transform_16, window_bounds = array<i64: 1, 128>}, {transform_indices = @transform_17, window_bounds = array<i64: 1, 1, 128>}]} {
    %cst = arith.constant 0.000000e+00 : f32
    %0 = vector.broadcast %cst : f32 to vector<18x18x128xf32>
    %c0 = arith.constant 0 : index
    %c0_0 = arith.constant 0 : index
    %c0_1 = arith.constant 0 : index
    %1 = vector.load %arg19[%c0, %c0_0, %c0_1] : memref<18x18x128xf32, #tpu.memory_space<vmem>>, vector<18x18x128xf32>
    tpu.vector_store %arg19[%c0, %c0_0, %c0_1], %0 {strides = array<i32>} : memref<18x18x128xf32, #tpu.memory_space<vmem>>, vector<18x18x128xf32>,
    %cst_2 = arith.constant 0.000000e+00 : f32
    %2 = vector.broadcast %cst_2 : f32 to vector<10x10x128xf32>
    %c0_3 = arith.constant 0 : index
    %c0_4 = arith.constant 0 : index
    %c0_5 = arith.constant 0 : index
    %3 = vector.load %arg20[%c0_3, %c0_4, %c0_5] : memref<10x10x128xf32, #tpu.memory_space<vmem>>, vector<10x10x128xf32>
    tpu.vector_store %arg20[%c0_3, %c0_4, %c0_5], %2 {strides = array<i32>} : memref<10x10x128xf32, #tpu.memory_space<vmem>>, vector<10x10x128xf32>,
    %c0_6 = arith.constant 0 : index
    %c0_7 = arith.constant 0 : index
    %c0_8 = arith.constant 0 : index
    %c0_9 = arith.constant 0 : index
    %4 = vector.load %arg1[%c0_6, %c0_7, %c0_8, %c0_9] : memref<1x18x18x128xf32, #tpu.memory_space<vmem>>, vector<1x18x18x128xf32>
    %5 = vector.shape_cast %4 : vector<1x18x18x128xf32> to vector<18x18x128xf32>
    %c0_10 = arith.constant 0 : index
    %c0_11 = arith.constant 0 : index
    %6 = vector.load %arg2[%c0_10, %c0_11] : memref<9x128xf32, #tpu.memory_space<vmem>>, vector<9x128xf32>
    %c0_12 = arith.constant 0 : index
    %c0_13 = arith.constant 0 : index
    %7 = vector.load %arg3[%c0_12, %c0_13] : memref<1x128xf32, #tpu.memory_space<vmem>>, vector<1x128xf32>
    %c0_14 = arith.constant 0 : index
    %c0_15 = arith.constant 0 : index
    %8 = vector.load %arg4[%c0_14, %c0_15] : memref<128x128xf32, #tpu.memory_space<vmem>>, vector<128x128xf32>
    %c0_16 = arith.constant 0 : index
    %c0_17 = arith.constant 0 : index
    %9 = vector.load %arg5[%c0_16, %c0_17] : memref<1x128xf32, #tpu.memory_space<vmem>>, vector<1x128xf32>
    %cst_18 = arith.constant 0.000000e+00 : f32
    %10 = vector.broadcast %cst_18 : f32 to vector<16x16x128xf32>
    %11 = vector.extract_strided_slice %5 {offsets = [0, 0, 0], sizes = [16, 16, 128], strides = [1, 1, 1]} : vector<18x18x128xf32> to vector<16x16x128xf32>
    %12 = vector.extract_strided_slice %6 {offsets = [0, 0], sizes = [1, 128], strides = [1, 1]} : vector<9x128xf32> to vector<1x128xf32>
    %13 = vector.shape_cast %12 : vector<1x128xf32> to vector<128xf32>
    %14 = vector.shape_cast %13 : vector<128xf32> to vector<1x1x128xf32>
    %15 = vector.broadcast %14 : vector<1x1x128xf32> to vector<16x16x128xf32>
    %16 = arith.mulf %11, %15 : vector<16x16x128xf32>
    %17 = arith.addf %10, %16 : vector<16x16x128xf32>
    %18 = vector.extract_strided_slice %5 {offsets = [0, 1, 0], sizes = [16, 16, 128], strides = [1, 1, 1]} : vector<18x18x128xf32> to vector<16x16x128xf32>
    %19 = vector.extract_strided_slice %6 {offsets = [1, 0], sizes = [1, 128], strides = [1, 1]} : vector<9x128xf32> to vector<1x128xf32>
    %20 = vector.shape_cast %19 : vector<1x128xf32> to vector<128xf32>
    %21 = vector.shape_cast %20 : vector<128xf32> to vector<1x1x128xf32>
    %22 = vector.broadcast %21 : vector<1x1x128xf32> to vector<16x16x128xf32>
    %23 = arith.mulf %18, %22 : vector<16x16x128xf32>
    %24 = arith.addf %17, %23 : vector<16x16x128xf32>
    %25 = vector.extract_strided_slice %5 {offsets = [0, 2, 0], sizes = [16, 16, 128], strides = [1, 1, 1]} : vector<18x18x128xf32> to vector<16x16x128xf32>
    %26 = vector.extract_strided_slice %6 {offsets = [2, 0], sizes = [1, 128], strides = [1, 1]} : vector<9x128xf32> to vector<1x128xf32>
    %27 = vector.shape_cast %26 : vector<1x128xf32> to vector<128xf32>
    %28 = vector.shape_cast %27 : vector<128xf32> to vector<1x1x128xf32>
    %29 = vector.broadcast %28 : vector<1x1x128xf32> to vector<16x16x128xf32>
    %30 = arith.mulf %25, %29 : vector<16x16x128xf32>
    %31 = arith.addf %24, %30 : vector<16x16x128xf32>
    %32 = vector.extract_strided_slice %5 {offsets = [1, 0, 0], sizes = [16, 16, 128], strides = [1, 1, 1]} : vector<18x18x128xf32> to vector<16x16x128xf32>
    %33 = vector.extract_strided_slice %6 {offsets = [3, 0], sizes = [1, 128], strides = [1, 1]} : vector<9x128xf32> to vector<1x128xf32>
    %34 = vector.shape_cast %33 : vector<1x128xf32> to vector<128xf32>
    %35 = vector.shape_cast %34 : vector<128xf32> to vector<1x1x128xf32>
    %36 = vector.broadcast %35 : vector<1x1x128xf32> to vector<16x16x128xf32>
    %37 = arith.mulf %32, %36 : vector<16x16x128xf32>
    %38 = arith.addf %31, %37 : vector<16x16x128xf32>
    %39 = vector.extract_strided_slice %5 {offsets = [1, 1, 0], sizes = [16, 16, 128], strides = [1, 1, 1]} : vector<18x18x128xf32> to vector<16x16x128xf32>
    %40 = vector.extract_strided_slice %6 {offsets = [4, 0], sizes = [1, 128], strides = [1, 1]} : vector<9x128xf32> to vector<1x128xf32>
    %41 = vector.shape_cast %40 : vector<1x128xf32> to vector<128xf32>
    %42 = vector.shape_cast %41 : vector<128xf32> to vector<1x1x128xf32>
    %43 = vector.broadcast %42 : vector<1x1x128xf32> to vector<16x16x128xf32>
    %44 = arith.mulf %39, %43 : vector<16x16x128xf32>
    %45 = arith.addf %38, %44 : vector<16x16x128xf32>
    %46 = vector.extract_strided_slice %5 {offsets = [1, 2, 0], sizes = [16, 16, 128], strides = [1, 1, 1]} : vector<18x18x128xf32> to vector<16x16x128xf32>
    %47 = vector.extract_strided_slice %6 {offsets = [5, 0], sizes = [1, 128], strides = [1, 1]} : vector<9x128xf32> to vector<1x128xf32>
    %48 = vector.shape_cast %47 : vector<1x128xf32> to vector<128xf32>
    %49 = vector.shape_cast %48 : vector<128xf32> to vector<1x1x128xf32>
    %50 = vector.broadcast %49 : vector<1x1x128xf32> to vector<16x16x128xf32>
    %51 = arith.mulf %46, %50 : vector<16x16x128xf32>
    %52 = arith.addf %45, %51 : vector<16x16x128xf32>
    %53 = vector.extract_strided_slice %5 {offsets = [2, 0, 0], sizes = [16, 16, 128], strides = [1, 1, 1]} : vector<18x18x128xf32> to vector<16x16x128xf32>
    %54 = vector.extract_strided_slice %6 {offsets = [6, 0], sizes = [1, 128], strides = [1, 1]} : vector<9x128xf32> to vector<1x128xf32>
    %55 = vector.shape_cast %54 : vector<1x128xf32> to vector<128xf32>
    %56 = vector.shape_cast %55 : vector<128xf32> to vector<1x1x128xf32>
    %57 = vector.broadcast %56 : vector<1x1x128xf32> to vector<16x16x128xf32>
    %58 = arith.mulf %53, %57 : vector<16x16x128xf32>
    %59 = arith.addf %52, %58 : vector<16x16x128xf32>
    %60 = vector.extract_strided_slice %5 {offsets = [2, 1, 0], sizes = [16, 16, 128], strides = [1, 1, 1]} : vector<18x18x128xf32> to vector<16x16x128xf32>
    %61 = vector.extract_strided_slice %6 {offsets = [7, 0], sizes = [1, 128], strides = [1, 1]} : vector<9x128xf32> to vector<1x128xf32>
    %62 = vector.shape_cast %61 : vector<1x128xf32> to vector<128xf32>
    %63 = vector.shape_cast %62 : vector<128xf32> to vector<1x1x128xf32>
    %64 = vector.broadcast %63 : vector<1x1x128xf32> to vector<16x16x128xf32>
    %65 = arith.mulf %60, %64 : vector<16x16x128xf32>
    %66 = arith.addf %59, %65 : vector<16x16x128xf32>
    %67 = vector.extract_strided_slice %5 {offsets = [2, 2, 0], sizes = [16, 16, 128], strides = [1, 1, 1]} : vector<18x18x128xf32> to vector<16x16x128xf32>
    %68 = vector.extract_strided_slice %6 {offsets = [8, 0], sizes = [1, 128], strides = [1, 1]} : vector<9x128xf32> to vector<1x128xf32>
    %69 = vector.shape_cast %68 : vector<1x128xf32> to vector<128xf32>
    %70 = vector.shape_cast %69 : vector<128xf32> to vector<1x1x128xf32>
    %71 = vector.broadcast %70 : vector<1x1x128xf32> to vector<16x16x128xf32>
    %72 = arith.mulf %67, %71 : vector<16x16x128xf32>
    %73 = arith.addf %66, %72 : vector<16x16x128xf32>
    %74 = vector.shape_cast %7 : vector<1x128xf32> to vector<128xf32>
    %75 = vector.shape_cast %74 : vector<128xf32> to vector<1x1x128xf32>
    %76 = vector.broadcast %75 : vector<1x1x128xf32> to vector<16x16x128xf32>
    %77 = arith.addf %73, %76 : vector<16x16x128xf32>
    %cst_19 = arith.constant 0.000000e+00 : f32
    %78 = vector.broadcast %cst_19 : f32 to vector<16x16x128xf32>
    %79 = arith.maximumf %77, %78 : vector<16x16x128xf32>
    %80 = vector.shape_cast %79 : vector<16x16x128xf32> to vector<256x128xf32>
    %cst_20 = arith.constant dense<0.000000e+00> : vector<256x128xf32>
    %81 = tpu.matmul %80, %8, %cst_20 {dimension_numbers = #tpu.dot_dimension_numbers<[1], [0], [0], [1], [0, 0, 1, 1], [], []>} : vector<256x128xf32>, vector<128x128xf32>, vector<256x128xf32> -> vector<256x128xf32>
    %82 = vector.broadcast %9 : vector<1x128xf32> to vector<256x128xf32>
    %83 = arith.addf %81, %82 : vector<256x128xf32>
    %cst_21 = arith.constant 0.000000e+00 : f32
    %84 = vector.broadcast %cst_21 : f32 to vector<256x128xf32>
    %85 = arith.maximumf %83, %84 : vector<256x128xf32>
    %86 = vector.shape_cast %85 : vector<256x128xf32> to vector<16x16x128xf32>
    %c1 = arith.constant 1 : index
    %c1_22 = arith.constant 1 : index
    %c0_23 = arith.constant 0 : index
    %87 = vector.load %arg19[%c1, %c1_22, %c0_23] : memref<18x18x128xf32, #tpu.memory_space<vmem>>, vector<16x16x128xf32>
    tpu.vector_store %arg19[%c1, %c1_22, %c0_23], %86 {strides = array<i32>} : memref<18x18x128xf32, #tpu.memory_space<vmem>>, vector<16x16x128xf32>,
    %c0_24 = arith.constant 0 : index
    %c0_25 = arith.constant 0 : index
    %c0_26 = arith.constant 0 : index
    %88 = vector.load %arg19[%c0_24, %c0_25, %c0_26] : memref<18x18x128xf32, #tpu.memory_space<vmem>>, vector<18x18x128xf32>
    %c0_27 = arith.constant 0 : index
    %c0_28 = arith.constant 0 : index
    %89 = vector.load %arg6[%c0_27, %c0_28] : memref<9x128xf32, #tpu.memory_space<vmem>>, vector<9x128xf32>
    %c0_29 = arith.constant 0 : index
    %c0_30 = arith.constant 0 : index
    %90 = vector.load %arg7[%c0_29, %c0_30] : memref<1x128xf32, #tpu.memory_space<vmem>>, vector<1x128xf32>
    %c0_31 = arith.constant 0 : index
    %c0_32 = arith.constant 0 : index
    %91 = vector.load %arg8[%c0_31, %c0_32] : memref<64x256xf32, #tpu.memory_space<vmem>>, vector<64x256xf32>
    %c0_33 = arith.constant 0 : index
    %c0_34 = arith.constant 0 : index
    %92 = vector.load %arg9[%c0_33, %c0_34] : memref<128x128xf32, #tpu.memory_space<vmem>>, vector<128x128xf32>
    %c0_35 = arith.constant 0 : index
    %c0_36 = arith.constant 0 : index
    %93 = vector.load %arg10[%c0_35, %c0_36] : memref<1x128xf32, #tpu.memory_space<vmem>>, vector<1x128xf32>
    %cst_37 = arith.constant 0.000000e+00 : f32
    %94 = vector.broadcast %cst_37 : f32 to vector<16x16x128xf32>
    %95 = vector.extract_strided_slice %88 {offsets = [0, 0, 0], sizes = [16, 16, 128], strides = [1, 1, 1]} : vector<18x18x128xf32> to vector<16x16x128xf32>
    %96 = vector.extract_strided_slice %89 {offsets = [0, 0], sizes = [1, 128], strides = [1, 1]} : vector<9x128xf32> to vector<1x128xf32>
    %97 = vector.shape_cast %96 : vector<1x128xf32> to vector<128xf32>
    %98 = vector.shape_cast %97 : vector<128xf32> to vector<1x1x128xf32>
    %99 = vector.broadcast %98 : vector<1x1x128xf32> to vector<16x16x128xf32>
    %100 = arith.mulf %95, %99 : vector<16x16x128xf32>
    %101 = arith.addf %94, %100 : vector<16x16x128xf32>
    %102 = vector.extract_strided_slice %88 {offsets = [0, 1, 0], sizes = [16, 16, 128], strides = [1, 1, 1]} : vector<18x18x128xf32> to vector<16x16x128xf32>
    %103 = vector.extract_strided_slice %89 {offsets = [1, 0], sizes = [1, 128], strides = [1, 1]} : vector<9x128xf32> to vector<1x128xf32>
    %104 = vector.shape_cast %103 : vector<1x128xf32> to vector<128xf32>
    %105 = vector.shape_cast %104 : vector<128xf32> to vector<1x1x128xf32>
    %106 = vector.broadcast %105 : vector<1x1x128xf32> to vector<16x16x128xf32>
    %107 = arith.mulf %102, %106 : vector<16x16x128xf32>
    %108 = arith.addf %101, %107 : vector<16x16x128xf32>
    %109 = vector.extract_strided_slice %88 {offsets = [0, 2, 0], sizes = [16, 16, 128], strides = [1, 1, 1]} : vector<18x18x128xf32> to vector<16x16x128xf32>
    %110 = vector.extract_strided_slice %89 {offsets = [2, 0], sizes = [1, 128], strides = [1, 1]} : vector<9x128xf32> to vector<1x128xf32>
    %111 = vector.shape_cast %110 : vector<1x128xf32> to vector<128xf32>
    %112 = vector.shape_cast %111 : vector<128xf32> to vector<1x1x128xf32>
    %113 = vector.broadcast %112 : vector<1x1x128xf32> to vector<16x16x128xf32>
    %114 = arith.mulf %109, %113 : vector<16x16x128xf32>
    %115 = arith.addf %108, %114 : vector<16x16x128xf32>
    %116 = vector.extract_strided_slice %88 {offsets = [1, 0, 0], sizes = [16, 16, 128], strides = [1, 1, 1]} : vector<18x18x128xf32> to vector<16x16x128xf32>
    %117 = vector.extract_strided_slice %89 {offsets = [3, 0], sizes = [1, 128], strides = [1, 1]} : vector<9x128xf32> to vector<1x128xf32>
    %118 = vector.shape_cast %117 : vector<1x128xf32> to vector<128xf32>
    %119 = vector.shape_cast %118 : vector<128xf32> to vector<1x1x128xf32>
    %120 = vector.broadcast %119 : vector<1x1x128xf32> to vector<16x16x128xf32>
    %121 = arith.mulf %116, %120 : vector<16x16x128xf32>
    %122 = arith.addf %115, %121 : vector<16x16x128xf32>
    %123 = vector.extract_strided_slice %88 {offsets = [1, 1, 0], sizes = [16, 16, 128], strides = [1, 1, 1]} : vector<18x18x128xf32> to vector<16x16x128xf32>
    %124 = vector.extract_strided_slice %89 {offsets = [4, 0], sizes = [1, 128], strides = [1, 1]} : vector<9x128xf32> to vector<1x128xf32>
    %125 = vector.shape_cast %124 : vector<1x128xf32> to vector<128xf32>
    %126 = vector.shape_cast %125 : vector<128xf32> to vector<1x1x128xf32>
    %127 = vector.broadcast %126 : vector<1x1x128xf32> to vector<16x16x128xf32>
    %128 = arith.mulf %123, %127 : vector<16x16x128xf32>
    %129 = arith.addf %122, %128 : vector<16x16x128xf32>
    %130 = vector.extract_strided_slice %88 {offsets = [1, 2, 0], sizes = [16, 16, 128], strides = [1, 1, 1]} : vector<18x18x128xf32> to vector<16x16x128xf32>
    %131 = vector.extract_strided_slice %89 {offsets = [5, 0], sizes = [1, 128], strides = [1, 1]} : vector<9x128xf32> to vector<1x128xf32>
    %132 = vector.shape_cast %131 : vector<1x128xf32> to vector<128xf32>
    %133 = vector.shape_cast %132 : vector<128xf32> to vector<1x1x128xf32>
    %134 = vector.broadcast %133 : vector<1x1x128xf32> to vector<16x16x128xf32>
    %135 = arith.mulf %130, %134 : vector<16x16x128xf32>
    %136 = arith.addf %129, %135 : vector<16x16x128xf32>
    %137 = vector.extract_strided_slice %88 {offsets = [2, 0, 0], sizes = [16, 16, 128], strides = [1, 1, 1]} : vector<18x18x128xf32> to vector<16x16x128xf32>
    %138 = vector.extract_strided_slice %89 {offsets = [6, 0], sizes = [1, 128], strides = [1, 1]} : vector<9x128xf32> to vector<1x128xf32>
    %139 = vector.shape_cast %138 : vector<1x128xf32> to vector<128xf32>
    %140 = vector.shape_cast %139 : vector<128xf32> to vector<1x1x128xf32>
    %141 = vector.broadcast %140 : vector<1x1x128xf32> to vector<16x16x128xf32>
    %142 = arith.mulf %137, %141 : vector<16x16x128xf32>
    %143 = arith.addf %136, %142 : vector<16x16x128xf32>
    %144 = vector.extract_strided_slice %88 {offsets = [2, 1, 0], sizes = [16, 16, 128], strides = [1, 1, 1]} : vector<18x18x128xf32> to vector<16x16x128xf32>
    %145 = vector.extract_strided_slice %89 {offsets = [7, 0], sizes = [1, 128], strides = [1, 1]} : vector<9x128xf32> to vector<1x128xf32>
    %146 = vector.shape_cast %145 : vector<1x128xf32> to vector<128xf32>
    %147 = vector.shape_cast %146 : vector<128xf32> to vector<1x1x128xf32>
    %148 = vector.broadcast %147 : vector<1x1x128xf32> to vector<16x16x128xf32>
    %149 = arith.mulf %144, %148 : vector<16x16x128xf32>
    %150 = arith.addf %143, %149 : vector<16x16x128xf32>
    %151 = vector.extract_strided_slice %88 {offsets = [2, 2, 0], sizes = [16, 16, 128], strides = [1, 1, 1]} : vector<18x18x128xf32> to vector<16x16x128xf32>
    %152 = vector.extract_strided_slice %89 {offsets = [8, 0], sizes = [1, 128], strides = [1, 1]} : vector<9x128xf32> to vector<1x128xf32>
    %153 = vector.shape_cast %152 : vector<1x128xf32> to vector<128xf32>
    %154 = vector.shape_cast %153 : vector<128xf32> to vector<1x1x128xf32>
    %155 = vector.broadcast %154 : vector<1x1x128xf32> to vector<16x16x128xf32>
    %156 = arith.mulf %151, %155 : vector<16x16x128xf32>
    %157 = arith.addf %150, %156 : vector<16x16x128xf32>
    %158 = vector.shape_cast %90 : vector<1x128xf32> to vector<128xf32>
    %159 = vector.shape_cast %158 : vector<128xf32> to vector<1x1x128xf32>
    %160 = vector.broadcast %159 : vector<1x1x128xf32> to vector<16x16x128xf32>
    %161 = arith.addf %157, %160 : vector<16x16x128xf32>
    %cst_38 = arith.constant 0.000000e+00 : f32
    %162 = vector.broadcast %cst_38 : f32 to vector<16x16x128xf32>
    %163 = arith.maximumf %161, %162 : vector<16x16x128xf32>
    %164 = vector.shape_cast %163 : vector<16x16x128xf32> to vector<256x128xf32>
    %cst_39 = arith.constant dense<0.000000e+00> : vector<64x128xf32>
    %165 = tpu.matmul %91, %164, %cst_39 {dimension_numbers = #tpu.dot_dimension_numbers<[1], [0], [0], [1], [0, 0, 1, 1], [], []>} : vector<64x256xf32>, vector<256x128xf32>, vector<64x128xf32> -> vector<64x128xf32>
    %cst_40 = arith.constant dense<0.000000e+00> : vector<64x128xf32>
    %166 = tpu.matmul %165, %92, %cst_40 {dimension_numbers = #tpu.dot_dimension_numbers<[1], [0], [0], [1], [0, 0, 1, 1], [], []>} : vector<64x128xf32>, vector<128x128xf32>, vector<64x128xf32> -> vector<64x128xf32>
    %167 = vector.broadcast %93 : vector<1x128xf32> to vector<64x128xf32>
    %168 = arith.addf %166, %167 : vector<64x128xf32>
    %cst_41 = arith.constant 0.000000e+00 : f32
    %169 = vector.broadcast %cst_41 : f32 to vector<64x128xf32>
    %170 = arith.maximumf %168, %169 : vector<64x128xf32>
    %171 = vector.shape_cast %170 : vector<64x128xf32> to vector<8x8x128xf32>
    %c1_42 = arith.constant 1 : index
    %c1_43 = arith.constant 1 : index
    %c0_44 = arith.constant 0 : index
    %172 = vector.load %arg20[%c1_42, %c1_43, %c0_44] : memref<10x10x128xf32, #tpu.memory_space<vmem>>, vector<8x8x128xf32>
    tpu.vector_store %arg20[%c1_42, %c1_43, %c0_44], %171 {strides = array<i32>} : memref<10x10x128xf32, #tpu.memory_space<vmem>>, vector<8x8x128xf32>,
    %c0_45 = arith.constant 0 : index
    %c0_46 = arith.constant 0 : index
    %c0_47 = arith.constant 0 : index
    %173 = vector.load %arg20[%c0_45, %c0_46, %c0_47] : memref<10x10x128xf32, #tpu.memory_space<vmem>>, vector<10x10x128xf32>
    %c0_48 = arith.constant 0 : index
    %c0_49 = arith.constant 0 : index
    %174 = vector.load %arg11[%c0_48, %c0_49] : memref<9x128xf32, #tpu.memory_space<vmem>>, vector<9x128xf32>
    %c0_50 = arith.constant 0 : index
    %c0_51 = arith.constant 0 : index
    %175 = vector.load %arg12[%c0_50, %c0_51] : memref<1x128xf32, #tpu.memory_space<vmem>>, vector<1x128xf32>
    %c0_52 = arith.constant 0 : index
    %c0_53 = arith.constant 0 : index
    %176 = vector.load %arg13[%c0_52, %c0_53] : memref<16x64xf32, #tpu.memory_space<vmem>>, vector<16x64xf32>
    %c0_54 = arith.constant 0 : index
    %c0_55 = arith.constant 0 : index
    %177 = vector.load %arg14[%c0_54, %c0_55] : memref<128x128xf32, #tpu.memory_space<vmem>>, vector<128x128xf32>
    %c0_56 = arith.constant 0 : index
    %c0_57 = arith.constant 0 : index
    %178 = vector.load %arg15[%c0_56, %c0_57] : memref<1x128xf32, #tpu.memory_space<vmem>>, vector<1x128xf32>
    %cst_58 = arith.constant 0.000000e+00 : f32
    %179 = vector.broadcast %cst_58 : f32 to vector<8x8x128xf32>
    %180 = vector.extract_strided_slice %173 {offsets = [0, 0, 0], sizes = [8, 8, 128], strides = [1, 1, 1]} : vector<10x10x128xf32> to vector<8x8x128xf32>
    %181 = vector.extract_strided_slice %174 {offsets = [0, 0], sizes = [1, 128], strides = [1, 1]} : vector<9x128xf32> to vector<1x128xf32>
    %182 = vector.shape_cast %181 : vector<1x128xf32> to vector<128xf32>
    %183 = vector.shape_cast %182 : vector<128xf32> to vector<1x1x128xf32>
    %184 = vector.broadcast %183 : vector<1x1x128xf32> to vector<8x8x128xf32>
    %185 = arith.mulf %180, %184 : vector<8x8x128xf32>
    %186 = arith.addf %179, %185 : vector<8x8x128xf32>
    %187 = vector.extract_strided_slice %173 {offsets = [0, 1, 0], sizes = [8, 8, 128], strides = [1, 1, 1]} : vector<10x10x128xf32> to vector<8x8x128xf32>
    %188 = vector.extract_strided_slice %174 {offsets = [1, 0], sizes = [1, 128], strides = [1, 1]} : vector<9x128xf32> to vector<1x128xf32>
    %189 = vector.shape_cast %188 : vector<1x128xf32> to vector<128xf32>
    %190 = vector.shape_cast %189 : vector<128xf32> to vector<1x1x128xf32>
    %191 = vector.broadcast %190 : vector<1x1x128xf32> to vector<8x8x128xf32>
    %192 = arith.mulf %187, %191 : vector<8x8x128xf32>
    %193 = arith.addf %186, %192 : vector<8x8x128xf32>
    %194 = vector.extract_strided_slice %173 {offsets = [0, 2, 0], sizes = [8, 8, 128], strides = [1, 1, 1]} : vector<10x10x128xf32> to vector<8x8x128xf32>
    %195 = vector.extract_strided_slice %174 {offsets = [2, 0], sizes = [1, 128], strides = [1, 1]} : vector<9x128xf32> to vector<1x128xf32>
    %196 = vector.shape_cast %195 : vector<1x128xf32> to vector<128xf32>
    %197 = vector.shape_cast %196 : vector<128xf32> to vector<1x1x128xf32>
    %198 = vector.broadcast %197 : vector<1x1x128xf32> to vector<8x8x128xf32>
    %199 = arith.mulf %194, %198 : vector<8x8x128xf32>
    %200 = arith.addf %193, %199 : vector<8x8x128xf32>
    %201 = vector.extract_strided_slice %173 {offsets = [1, 0, 0], sizes = [8, 8, 128], strides = [1, 1, 1]} : vector<10x10x128xf32> to vector<8x8x128xf32>
    %202 = vector.extract_strided_slice %174 {offsets = [3, 0], sizes = [1, 128], strides = [1, 1]} : vector<9x128xf32> to vector<1x128xf32>
    %203 = vector.shape_cast %202 : vector<1x128xf32> to vector<128xf32>
    %204 = vector.shape_cast %203 : vector<128xf32> to vector<1x1x128xf32>
    %205 = vector.broadcast %204 : vector<1x1x128xf32> to vector<8x8x128xf32>
    %206 = arith.mulf %201, %205 : vector<8x8x128xf32>
    %207 = arith.addf %200, %206 : vector<8x8x128xf32>
    %208 = vector.extract_strided_slice %173 {offsets = [1, 1, 0], sizes = [8, 8, 128], strides = [1, 1, 1]} : vector<10x10x128xf32> to vector<8x8x128xf32>
    %209 = vector.extract_strided_slice %174 {offsets = [4, 0], sizes = [1, 128], strides = [1, 1]} : vector<9x128xf32> to vector<1x128xf32>
    %210 = vector.shape_cast %209 : vector<1x128xf32> to vector<128xf32>
    %211 = vector.shape_cast %210 : vector<128xf32> to vector<1x1x128xf32>
    %212 = vector.broadcast %211 : vector<1x1x128xf32> to vector<8x8x128xf32>
    %213 = arith.mulf %208, %212 : vector<8x8x128xf32>
    %214 = arith.addf %207, %213 : vector<8x8x128xf32>
    %215 = vector.extract_strided_slice %173 {offsets = [1, 2, 0], sizes = [8, 8, 128], strides = [1, 1, 1]} : vector<10x10x128xf32> to vector<8x8x128xf32>
    %216 = vector.extract_strided_slice %174 {offsets = [5, 0], sizes = [1, 128], strides = [1, 1]} : vector<9x128xf32> to vector<1x128xf32>
    %217 = vector.shape_cast %216 : vector<1x128xf32> to vector<128xf32>
    %218 = vector.shape_cast %217 : vector<128xf32> to vector<1x1x128xf32>
    %219 = vector.broadcast %218 : vector<1x1x128xf32> to vector<8x8x128xf32>
    %220 = arith.mulf %215, %219 : vector<8x8x128xf32>
    %221 = arith.addf %214, %220 : vector<8x8x128xf32>
    %222 = vector.extract_strided_slice %173 {offsets = [2, 0, 0], sizes = [8, 8, 128], strides = [1, 1, 1]} : vector<10x10x128xf32> to vector<8x8x128xf32>
    %223 = vector.extract_strided_slice %174 {offsets = [6, 0], sizes = [1, 128], strides = [1, 1]} : vector<9x128xf32> to vector<1x128xf32>
    %224 = vector.shape_cast %223 : vector<1x128xf32> to vector<128xf32>
    %225 = vector.shape_cast %224 : vector<128xf32> to vector<1x1x128xf32>
    %226 = vector.broadcast %225 : vector<1x1x128xf32> to vector<8x8x128xf32>
    %227 = arith.mulf %222, %226 : vector<8x8x128xf32>
    %228 = arith.addf %221, %227 : vector<8x8x128xf32>
    %229 = vector.extract_strided_slice %173 {offsets = [2, 1, 0], sizes = [8, 8, 128], strides = [1, 1, 1]} : vector<10x10x128xf32> to vector<8x8x128xf32>
    %230 = vector.extract_strided_slice %174 {offsets = [7, 0], sizes = [1, 128], strides = [1, 1]} : vector<9x128xf32> to vector<1x128xf32>
    %231 = vector.shape_cast %230 : vector<1x128xf32> to vector<128xf32>
    %232 = vector.shape_cast %231 : vector<128xf32> to vector<1x1x128xf32>
    %233 = vector.broadcast %232 : vector<1x1x128xf32> to vector<8x8x128xf32>
    %234 = arith.mulf %229, %233 : vector<8x8x128xf32>
    %235 = arith.addf %228, %234 : vector<8x8x128xf32>
    %236 = vector.extract_strided_slice %173 {offsets = [2, 2, 0], sizes = [8, 8, 128], strides = [1, 1, 1]} : vector<10x10x128xf32> to vector<8x8x128xf32>
    %237 = vector.extract_strided_slice %174 {offsets = [8, 0], sizes = [1, 128], strides = [1, 1]} : vector<9x128xf32> to vector<1x128xf32>
    %238 = vector.shape_cast %237 : vector<1x128xf32> to vector<128xf32>
    %239 = vector.shape_cast %238 : vector<128xf32> to vector<1x1x128xf32>
    %240 = vector.broadcast %239 : vector<1x1x128xf32> to vector<8x8x128xf32>
    %241 = arith.mulf %236, %240 : vector<8x8x128xf32>
    %242 = arith.addf %235, %241 : vector<8x8x128xf32>
    %243 = vector.shape_cast %175 : vector<1x128xf32> to vector<128xf32>
    %244 = vector.shape_cast %243 : vector<128xf32> to vector<1x1x128xf32>
    %245 = vector.broadcast %244 : vector<1x1x128xf32> to vector<8x8x128xf32>
    %246 = arith.addf %242, %245 : vector<8x8x128xf32>
    %cst_59 = arith.constant 0.000000e+00 : f32
    %247 = vector.broadcast %cst_59 : f32 to vector<8x8x128xf32>
    %248 = arith.maximumf %246, %247 : vector<8x8x128xf32>
    %249 = vector.shape_cast %248 : vector<8x8x128xf32> to vector<64x128xf32>
    %cst_60 = arith.constant dense<0.000000e+00> : vector<16x128xf32>
    %250 = tpu.matmul %176, %249, %cst_60 {dimension_numbers = #tpu.dot_dimension_numbers<[1], [0], [0], [1], [0, 0, 1, 1], [], []>} : vector<16x64xf32>, vector<64x128xf32>, vector<16x128xf32> -> vector<16x128xf32>
    %cst_61 = arith.constant dense<0.000000e+00> : vector<16x128xf32>
    %251 = tpu.matmul %250, %177, %cst_61 {dimension_numbers = #tpu.dot_dimension_numbers<[1], [0], [0], [1], [0, 0, 1, 1], [], []>} : vector<16x128xf32>, vector<128x128xf32>, vector<16x128xf32> -> vector<16x128xf32>
    %252 = vector.broadcast %178 : vector<1x128xf32> to vector<16x128xf32>
    %253 = arith.addf %251, %252 : vector<16x128xf32>
    %cst_62 = arith.constant 0.000000e+00 : f32
    %254 = vector.broadcast %cst_62 : f32 to vector<16x128xf32>
    %255 = arith.maximumf %253, %254 : vector<16x128xf32>
    %c0_63 = arith.constant 0 : index
    %c0_64 = arith.constant 0 : index
    %256 = vector.load %arg16[%c0_63, %c0_64] : memref<128x128xf32, #tpu.memory_space<vmem>>, vector<128x128xf32>
    %c0_65 = arith.constant 0 : index
    %c0_66 = arith.constant 0 : index
    %257 = vector.load %arg17[%c0_65, %c0_66] : memref<1x128xf32, #tpu.memory_space<vmem>>, vector<1x128xf32>
    %cst_67 = arith.constant dense<0.000000e+00> : vector<128xf32>
    %258 = vector.multi_reduction <add>, %255, %cst_67 [0] : vector<16x128xf32> to vector<128xf32>
    %259 = vector.shape_cast %258 : vector<128xf32> to vector<1x128xf32>
    %cst_68 = arith.constant 6.250000e-02 : f32
    %260 = vector.broadcast %cst_68 : f32 to vector<1x128xf32>
    %261 = arith.mulf %259, %260 : vector<1x128xf32>
    %cst_69 = arith.constant dense<0.000000e+00> : vector<1x128xf32>
    %262 = tpu.matmul %261, %256, %cst_69 {dimension_numbers = #tpu.dot_dimension_numbers<[1], [0], [0], [1], [0, 0, 1, 1], [], []>} : vector<1x128xf32>, vector<128x128xf32>, vector<1x128xf32> -> vector<1x128xf32>
    %263 = arith.addf %262, %257 : vector<1x128xf32>
    %c0_70 = arith.constant 0 : index
    %c0_71 = arith.constant 0 : index
    %c0_72 = arith.constant 0 : index
    %264 = vector.load %arg18[%c0_70, %c0_71, %c0_72] : memref<1x1x128xf32, #tpu.memory_space<vmem>>, vector<1x1x128xf32>
    %265 = vector.shape_cast %264 : vector<1x1x128xf32> to vector<1x128xf32>
    %266 = vector.shape_cast %263 : vector<1x128xf32> to vector<1x1x128xf32>
    tpu.vector_store %arg18[%c0_70, %c0_71, %c0_72], %266 {strides = array<i32>} : memref<1x1x128xf32, #tpu.memory_space<vmem>>, vector<1x1x128xf32>,
    return
  }
  func.func @transform_0(%arg0: i32) -> (i32, i32, i32, i32) {
    %c0_i32 = arith.constant 0 : i32
    %c0_i32_0 = arith.constant 0 : i32
    %c0_i32_1 = arith.constant 0 : i32
    %c0_i32_2 = arith.constant 0 : i32
    return %arg0, %c0_i32, %c0_i32_0, %c0_i32_1 : i32, i32, i32, i32
  }
  func.func @transform_1(%arg0: i32) -> (i32, i32) {
    %c0_i32 = arith.constant 0 : i32
    %c0_i32_0 = arith.constant 0 : i32
    %c0_i32_1 = arith.constant 0 : i32
    return %c0_i32, %c0_i32_0 : i32, i32
  }
  func.func @transform_2(%arg0: i32) -> (i32, i32) {
    %c0_i32 = arith.constant 0 : i32
    %c0_i32_0 = arith.constant 0 : i32
    %c0_i32_1 = arith.constant 0 : i32
    return %c0_i32, %c0_i32_0 : i32, i32
  }
  func.func @transform_3(%arg0: i32) -> (i32, i32) {
    %c0_i32 = arith.constant 0 : i32
    %c0_i32_0 = arith.constant 0 : i32
    %c0_i32_1 = arith.constant 0 : i32
    return %c0_i32, %c0_i32_0 : i32, i32
  }
  func.func @transform_4(%arg0: i32) -> (i32, i32) {
    %c0_i32 = arith.constant 0 : i32
    %c0_i32_0 = arith.constant 0 : i32
    %c0_i32_1 = arith.constant 0 : i32
    return %c0_i32, %c0_i32_0 : i32, i32
  }
  func.func @transform_5(%arg0: i32) -> (i32, i32) {
    %c0_i32 = arith.constant 0 : i32
    %c0_i32_0 = arith.constant 0 : i32
    %c0_i32_1 = arith.constant 0 : i32
    return %c0_i32, %c0_i32_0 : i32, i32
  }
  func.func @transform_6(%arg0: i32) -> (i32, i32) {
    %c0_i32 = arith.constant 0 : i32
    %c0_i32_0 = arith.constant 0 : i32
    %c0_i32_1 = arith.constant 0 : i32
    return %c0_i32, %c0_i32_0 : i32, i32
  }
  func.func @transform_7(%arg0: i32) -> (i32, i32) {
    %c0_i32 = arith.constant 0 : i32
    %c0_i32_0 = arith.constant 0 : i32
    %c0_i32_1 = arith.constant 0 : i32
    return %c0_i32, %c0_i32_0 : i32, i32
  }
  func.func @transform_8(%arg0: i32) -> (i32, i32) {
    %c0_i32 = arith.constant 0 : i32
    %c0_i32_0 = arith.constant 0 : i32
    %c0_i32_1 = arith.constant 0 : i32
    return %c0_i32, %c0_i32_0 : i32, i32
  }
  func.func @transform_9(%arg0: i32) -> (i32, i32) {
    %c0_i32 = arith.constant 0 : i32
    %c0_i32_0 = arith.constant 0 : i32
    %c0_i32_1 = arith.constant 0 : i32
    return %c0_i32, %c0_i32_0 : i32, i32
  }
  func.func @transform_10(%arg0: i32) -> (i32, i32) {
    %c0_i32 = arith.constant 0 : i32
    %c0_i32_0 = arith.constant 0 : i32
    %c0_i32_1 = arith.constant 0 : i32
    return %c0_i32, %c0_i32_0 : i32, i32
  }
  func.func @transform_11(%arg0: i32) -> (i32, i32) {
    %c0_i32 = arith.constant 0 : i32
    %c0_i32_0 = arith.constant 0 : i32
    %c0_i32_1 = arith.constant 0 : i32
    return %c0_i32, %c0_i32_0 : i32, i32
  }
  func.func @transform_12(%arg0: i32) -> (i32, i32) {
    %c0_i32 = arith.constant 0 : i32
    %c0_i32_0 = arith.constant 0 : i32
    %c0_i32_1 = arith.constant 0 : i32
    return %c0_i32, %c0_i32_0 : i32, i32
  }
  func.func @transform_13(%arg0: i32) -> (i32, i32) {
    %c0_i32 = arith.constant 0 : i32
    %c0_i32_0 = arith.constant 0 : i32
    %c0_i32_1 = arith.constant 0 : i32
    return %c0_i32, %c0_i32_0 : i32, i32
  }
  func.func @transform_14(%arg0: i32) -> (i32, i32) {
    %c0_i32 = arith.constant 0 : i32
    %c0_i32_0 = arith.constant 0 : i32
    %c0_i32_1 = arith.constant 0 : i32
    return %c0_i32, %c0_i32_0 : i32, i32
  }
  func.func @transform_15(%arg0: i32) -> (i32, i32) {
    %c0_i32 = arith.constant 0 : i32
    %c0_i32_0 = arith.constant 0 : i32
    %c0_i32_1 = arith.constant 0 : i32
    return %c0_i32, %c0_i32_0 : i32, i32
  }
  func.func @transform_16(%arg0: i32) -> (i32, i32) {
    %c0_i32 = arith.constant 0 : i32
    %c0_i32_0 = arith.constant 0 : i32
    %c0_i32_1 = arith.constant 0 : i32
    return %c0_i32, %c0_i32_0 : i32, i32
  }
  func.func @transform_17(%arg0: i32) -> (i32, i32, i32) {
    %c0_i32 = arith.constant 0 : i32
    %c0_i32_0 = arith.constant 0 : i32
    %c0_i32_1 = arith.constant 0 : i32
    return %arg0, %c0_i32, %c0_i32_0 : i32, i32, i32
  }
}

</mosaic_0001>

<bundles_post_ra>
// kernel: _lambda_.1
= control target key start
LH: loop header
LB: loop body
LE: loop exit
PB: predicated region body
PF: predicated region fallthrough
CT: control target
= control target key end

     0   :  { %s9908_s0 = inlined_call_operand.vmem [shape: f32[2,18,18,128], index: 0, kind: input, shape index: {}]   ;;  %s9909_s1 = inlined_call_operand.vmem [shape: f32[9,128], index: 1, kind: input, shape index: {}]   ;;  %s9910_s2 = inlined_call_operand.vmem [shape: f32[1,128], index: 2, kind: input, shape index: {}]   ;;  %s9911_s3 = inlined_call_operand.vmem [shape: f32[128,128], index: 3, kind: input, shape index: {}]   ;;  %s9912_s4 = inlined_call_operand.vmem [shape: f32[1,128], index: 4, kind: input, shape index: {}]   ;;  %s9913_s5 = inlined_call_operand.vmem [shape: f32[9,128], index: 5, kind: input, shape index: {}]   ;;  %s9914_s6 = inlined_call_operand.vmem [shape: f32[1,128], index: 6, kind: input, shape index: {}]   ;;  %s9915_s7 = inlined_call_operand.vmem [shape: f32[64,256], index: 7, kind: input, shape index: {}]   ;;  %s9916_s8 = inlined_call_operand.vmem [shape: f32[128,128], index: 8, kind: input, shape index: {}]   ;;  %s9917_s9 = inlined_call_operand.vmem [shape: f32[1,128], index: 9, kind: input, shape index: {}]   ;;  %s9918_s10 = inlined_call_operand.vmem [shape: f32[9,128], index: 10, kind: input, shape index: {}]   ;;  %s9919_s11 = inlined_call_operand.vmem [shape: f32[1,128], index: 11, kind: input, shape index: {}]   ;;  %s9920_s12 = inlined_call_operand.vmem [shape: f32[16,64], index: 12, kind: input, shape index: {}]   ;;  %s9921_s13 = inlined_call_operand.vmem [shape: f32[128,128], index: 13, kind: input, shape index: {}]   ;;  %s9922_s14 = inlined_call_operand.vmem [shape: f32[1,128], index: 14, kind: input, shape index: {}]   ;;  %s9923_s15 = inlined_call_operand.vmem [shape: f32[128,128], index: 15, kind: input, shape index: {}]   ;;  %s9924_s16 = inlined_call_operand.vmem [shape: f32[1,128], index: 16, kind: input, shape index: {}]   ;;  %s9925_s17 = inlined_call_operand.hbm [shape: f32[2,1,128], index: 17, kind: output, shape index: {}]  }
   0x1   :  { %9936 = sst [smem:[#allocation15_spill]] %s9908_s0 }
   0x2   :  { %9937 = sst [smem:[#allocation16_spill]] %s9909_s1 }
   0x3   :  { %9938 = sst [smem:[#allocation17_spill]] %s9910_s2 }
   0x4   :  { %22 = vsyncpa [#allocation5], 0 }
   0x5   :  { %24 = vsyncpa [#allocation5 + $0x1], 0  ;;  %s6494_s24 = smov 0   ;;  %s6496_s25 = smov 0  }
   0x6   :  { %s6498_s26 = smov 0   ;;  %s6500_s27 = smov 0  }
   0x7 LB: > { %9939 = sst [smem:[#allocation7_spill]] %s6386_s24  ;;  %s6515_s28 = sadd.s32 4294967295, %s6398_s27   ;;  %s6398_s27 = sphi %s6500_s27, %s9964_s27   ;;  %s6394_s26 = sphi %s6498_s26, %s9966_s26   ;;  %s6390_s25 = sphi %s6496_s25, %s9968_s25   ;;  %s6386_s24 = sphi %s6494_s24, %s9967_s24  }
   0x8   : > { %9940 = sst [smem:[#allocation8_spill]] %s6394_s26  ;;  %s5700_s29 = sadd.s32 4294967294, %s6398_s27  }
   0x9   : > { %s6519_s0 = sadd.s32 1, %s6398_s27   ;;  %s399_s30 = sadd.s32 1, %s6394_s26 }
   0xa   : > { %9941 = sst [smem:[#allocation9_spill]] %s6519_s0  ;;  %s396_s18 = ssub.s32 %s6398_s27, %s6519_s0 }
   0xb   : > { %p409_p0 = scmp.ne.s32.totalorder %s6394_s26, %s6390_s25  ;;  %p397_p1 = scmp.eq.s32.totalorder %s396_s18, 0 }
   0xc   : > { %p410_p2 = scmp.eq.s32.totalorder %s6515_s28, 1  ;;  %p415_p3 = scmp.ne.s32.totalorder %s6390_s25, %s6386_s24 }
   0xd   : > { %p416_p4 = scmp.eq.s32.totalorder %s5700_s29, 1  ;;  %p5703_p7 = scmp.ge.s32.totalorder %s6398_s27, 1 }
   0xe   : > { %s6530_s19 = scalar_select %p397_p1, %s6394_s26, %s399_s30  }
   0xf   : > { %p6532_p5 = por %p410_p2, %p409_p0  ;;  %p6536_p6 = por %p416_p4, %p415_p3 }
  0x10   : > { %9942 = sst [smem:[#allocation10_spill]] %s6530_s19  ;;  %p490_p8 = scmp.lt.s32.totalorder %s6398_s27, 3 }
  0x11   : > { %s9944_s20 = scalar_select %p6536_p6, 1, 0 }
  0x12   : > { %p491_p9 = pnand %p5703_p7, %p490_p8 }
  0x13   : > { %9945 = sst [smem:[#allocation11_spill]] %s9944_s20 }
  0x14   : > { %494 = sbr.rel (%p491_p9) target bundleno = 1915 (0x77b), region = 88 }
  0x1b   : > { %v677_v0 = vld [vmem:[%s9911_s3] sm:$0xff]  ;;  %v678_v1 = vld [vmem:[%s9911_s3 + $0x8] sm:$0xff]  ;;  %v679_v2 = vld [vmem:[%s9911_s3 + $0x10] sm:$0xff]  ;;  %p541_p10 = scmp.lt.s32.totalorder %s6515_s28, 1  ;;  %v694_v3 = vlaneseq  ;;  %vm862_vm0 = vcmask 1046528   ;;  %vm1107_vm1 = vcmask 1045504  }
  0x1c   : > { %v6105_v4 = vpack.c.bf16 %v678_v1, %v677_v0  ;;  %v680_v5 = vld [vmem:[%s9911_s3 + $0x18] sm:$0xff]  ;;  %v681_v6 = vld [vmem:[%s9911_s3 + $0x20] sm:$0xff]  ;;  %v682_v7 = vld [vmem:[%s9911_s3 + $0x28] sm:$0xff]  ;;  %s9946_s22 = sld [smem:[#allocation16_spill]]  ;;  %s9947_s29 = sld [smem:[#allocation15_spill]]  ;;  %vm5371_vm2 = vcmask 523264  }
  0x1d   : > { %v6109_v8 = vpack.c.bf16 %v680_v5, %v679_v2  ;;  %v683_v9 = vld [vmem:[%s9911_s3 + $0x30] sm:$0xff]  ;;  %v684_v10 = vld [vmem:[%s9911_s3 + $0x38] sm:$0xff]  ;;  %v685_v11 = vld [vmem:[%s9911_s3 + $0x40] sm:$0xff]  ;;  %s542_s19 = scalar_select %p541_p10, %s6515_s28, 1  ;;  %v6571_v12 = vshrl.u32 %v694_v3, 7  ;;  %v6113_v16 = vpack.c.bf16 %v682_v7, %v681_v6  ;;  %vm6402_vm3 = vmmov 0  }
  0x1e   : > { %6106 = vmatprep.subr.bf16.mxu0 %v6105_v4  ;;  %v686_v13 = vld [vmem:[%s9911_s3 + $0x48] sm:$0xff]  ;;  %v687_v14 = vld [vmem:[%s9911_s3 + $0x50] sm:$0xff]  ;;  %v688_v15 = vld [vmem:[%s9911_s3 + $0x58] sm:$0xff]  ;;  %v6582_v17 = vpack.c.bf16 %v684_v10, %v683_v9  ;;  %s9951_s2 = sld [smem:[#allocation17_spill]]  ;;  %s5716_s30 = sshll.u32 %s6515_s28, 4 }
  0x1f   : > { %6108 = vmatpush3.bf16.msra.mxu0 %v6105_v4  ;;  %v689_v18 = vld [vmem:[%s9911_s3 + $0x60] sm:$0xff]  ;;  %v690_v19 = vld [vmem:[%s9911_s3 + $0x68] sm:$0xff]  ;;  %s6273_s0 = smul.u32 432, %s542_s19  ;;  %v6591_v20 = vsub.s32 0, %v6571_v12  ;;  %v6594_v21 = vsub.s32 1, %v6571_v12  ;;  %v6596_v22 = vpack.c.bf16 %v686_v13, %v685_v11  ;;  %v6598_v23 = vpack.c.bf16 %v688_v15, %v687_v14  ;;  %v691_v51 = vld [vmem:[%s9911_s3 + $0x70] sm:$0xff]  ;;  %s9866_s21 = scalar_lea.hbm %s9925_s17, %s5716_s30 }
  0x20   : > { %6110 = vmatprep.subr.bf16.mxu0 %v6109_v8  ;;  %v6604_v25 = vsub.s32 2, %v6571_v12  ;;  %v6607_v26 = vsub.s32 3, %v6571_v12  ;;  %v6609_v27 = vpack.c.bf16 %v690_v19, %v689_v18  ;;  %v6623_v30 = vsub.s32 4, %v6571_v12  ;;  %v692_v52 = vld [vmem:[%s9911_s3 + $0x78] sm:$0xff]  ;;  %s6403_s28 = smov [#allocation4]  }
  0x21   : > { %v6634_v35 = vsub.s32 5, %v6571_v12  ;;  %v6637_v36 = vsub.s32 6, %v6571_v12  ;;  %v6690_v4 = vpack.c.bf16 %v692_v52, %v691_v51  ;;  %v6697_v7 = vsub.s32 7, %v6571_v12 }
  0x22   : > { %v674_v24 = vld [vmem:[%s9946_s22] sm:$0xff]  ;;  %s6614_s24 = scalar_lea.vmem %s9947_s29, %s6273_s0  ;;  %9948 = vst [vmem:[#allocation12_spill] sm:$0xff] %v6623_v30  ;;  %v6674_v53 = vld [vmem:[%s9946_s22 + $0x8] ss:$0 sm:$0xff]  ;;  %s6340_s29 = sshll.u32 %s6403_s28, 4  ;;  %s6341_s29 = int_to_ptr.vmem [resolvable:$false] %s6340_s29 }
  0x23   : > { %v6617_v28 = vrot.slane %v674_v24, %v6591_v20  ;;  %v6620_v29 = vrot.slane %v674_v24, %v6594_v21  ;;  %v620_v31 = vld [vmem:[%s6614_s24] sm:$0xff]  ;;  %v621_v32 = vld [vmem:[%s6614_s24 + $0x8] sm:$0xff]  ;;  %v6628_v33 = vrot.slane %v674_v24, %v6604_v25  ;;  %v6631_v34 = vrot.slane %v674_v24, %v6607_v26  ;;  %9949 = vst [vmem:[#allocation13_spill] sm:$0xff] %v6634_v35  ;;  %v6640_v37 = vld [vmem:[%s6614_s24 + $0x18] sm:$0xff] }
  0x24   : > { %9950 = vst [vmem:[#allocation14_spill] sm:$0xff] %v6637_v36  ;;  %6112 = vmatpush3.bf16.msra.mxu0 %v6109_v8  ;;  %v6648_v41 = vrot.slane %v674_v24, %v6623_v30  ;;  %v6651_v42 = vld [vmem:[%s6614_s24 + $0x20] sm:$0xff]  ;;  %v6658_v46 = vrot.slane %v674_v24, %v6634_v35  ;;  %v6682_v61 = vrot.slane %v674_v24, %v6637_v36  ;;  %v6686_v62 = vld [vmem:[%s6614_s24 + $0x30] sm:$0xff]  ;;  %v6693_v5 = vld [vmem:[%s6614_s24 + $0x38] sm:$0xff] }
  0x25   : > { %v698_v38 = vmul.f32 %v6617_v28, %v620_v31  ;;  %v766_v39 = vmul.f32 %v6620_v29, %v620_v31  ;;  %v6645_v40 = vmul.f32 %v6620_v29, %v621_v32  ;;  %6114 = vmatprep.subr.bf16.mxu0 %v6113_v16  ;;  %v1011_v43 = vmul.f32 %v6628_v33, %v620_v31  ;;  %v622_v3 = vld [vmem:[%s6614_s24 + $0x10] sm:$0x3]  ;;  %v6713_v12 = vld [vmem:[%s6614_s24 + $0x28] sm:$0x3] }
  0x26   : > { %v1012_v44 = vmul.f32 %v6628_v33, %v621_v32  ;;  %v1256_v45 = vmul.f32 %v6631_v34, %v6640_v37  ;;  %v1324_v49 = vmul.f32 %v6648_v41, %v6640_v37  ;;  %v1325_v50 = vmul.f32 %v6648_v41, %v6651_v42 }
  0x27   : > { %v863_v47 = vrot.slane %v766_v39, 1  ;;  %v864_v48 = vrot.slane %v6645_v40, 1  ;;  %v1108_v54 = vrot.slane %v1011_v43, 2  ;;  %v1568_v56 = vmul.f32 %v6658_v46, %v6640_v37 }
  0x28   : > { %v1109_v55 = vrot.slane %v1012_v44, 2  ;;  %v1569_v57 = vmul.f32 %v6658_v46, %v6651_v42  ;;  %6116 = vmatpush3.bf16.msra.mxu0 %v6113_v16  ;;  %v1420_v59 = vrot.slane %v1324_v49, 1  ;;  %v1421_v60 = vrot.slane %v1325_v50, 1 }
  0x29   : > { %v865_v58 = vsel %vm862_vm0, %v863_v47, %v864_v48  ;;  %6118 = vmatprep.subr.bf16.mxu0 %v6582_v17  ;;  %v1664_v1 = vrot.slane %v1568_v56, 2  ;;  %v2124_v8 = vmul.f32 %v6674_v53, %v6686_v62  ;;  %v1812_v11 = vmul.f32 %v6682_v61, %v6686_v62 }
  0x2a   : > { %v975_v63 = vadd.f32 %v865_v58, %v698_v38  ;;  %v1110_v0 = vsel %vm1107_vm1, %v1108_v54, %v1109_v55  ;;  %v1665_v2 = vrot.slane %v1569_v57, 2  ;;  %v1422_v6 = vsel %vm862_vm0, %v1420_v59, %v1421_v60  ;;  %v6738_v57 = vld [vmem:[%s6614_s24 + $0x40] sm:$0x3] }
  0x2b   : > { %v6706_v13 = vmul.f32 %v6674_v53, %v6693_v5  ;;  %v6710_v14 = vrot.slane %v674_v24, %v6697_v7  ;;  %v699_v15 = vmul.f32 %v6617_v28, %v621_v32  ;;  %v768_v16 = vmul.f32 %v6620_v29, %v622_v3 }
  0x2c   : > { %v1220_v9 = vadd.f32 %v1110_v0, %v975_v63  ;;  %v1666_v10 = vsel %vm1107_vm1, %v1664_v1, %v1665_v2  ;;  %6120 = vmatpush3.bf16.msra.mxu0 %v6582_v17  ;;  %v1013_v18 = vmul.f32 %v6628_v33, %v622_v3  ;;  %v2220_v31 = vrot.slane %v2124_v8, 2 }
  0x2d   : > { %6122 = vmatprep.subr.bf16.mxu0 %v6596_v22  ;;  %v2221_v38 = vrot.slane %v6706_v13, 2  ;;  %v1326_v17 = vmul.f32 %v6648_v41, %v6713_v12  ;;  %v1880_v24 = vmul.f32 %v6710_v14, %v6686_v62  ;;  %v1881_v32 = vmul.f32 %v6710_v14, %v6693_v5 }
  0x2e   : > { %v1288_v19 = vadd.f32 %v1256_v45, %v1220_v9  ;;  %v866_v39 = vrot.slane %v768_v16, 1  ;;  %v1111_v40 = vrot.slane %v1013_v18, 2  ;;  %v1257_v44 = vmul.f32 %v6631_v34, %v6651_v42  ;;  %v6768_v16 = vld [vmem:[%s9951_s2] ss:$0 sm:$0xff] }
  0x2f   : > { %v1423_v45 = vrot.slane %v1326_v17, 1  ;;  %v1570_v47 = vmul.f32 %v6658_v46, %v6713_v12  ;;  %v1976_v49 = vrot.slane %v1880_v24, 1  ;;  %v1977_v50 = vrot.slane %v1881_v32, 1 }
  0x30   : > { %v1532_v43 = vadd.f32 %v1422_v6, %v1288_v19  ;;  %6124 = vmatpush3.bf16.msra.mxu0 %v6596_v22  ;;  %v867_v51 = vsel %vm862_vm0, %v864_v48, %v866_v39  ;;  %v1112_v52 = vsel %vm1107_vm1, %v1109_v55, %v1111_v40  ;;  %v2222_v56 = vsel %vm1107_vm1, %v2220_v31, %v2221_v38 }
  0x31   : > { %6126 = vmatprep.subr.bf16.mxu0 %v6598_v23  ;;  %v976_v58 = vadd.f32 %v867_v51, %v699_v15  ;;  %v1667_v59 = vrot.slane %v1570_v47, 2  ;;  %v1978_v63 = vsel %vm862_vm0, %v1976_v49, %v1977_v50  ;;  %v1424_v22 = vsel %vm862_vm0, %v1421_v60, %v1423_v45 }
  0x32   : > { %v1776_v54 = vadd.f32 %v1666_v10, %v1532_v43  ;;  %v1882_v48 = vmul.f32 %v6710_v14, %v6738_v57  ;;  %v2126_v55 = vmul.f32 %v6674_v53, %v6738_v57  ;;  %v1813_v6 = vmul.f32 %v6682_v61, %v6693_v5 }
  0x33   : > { %v1221_v1 = vadd.f32 %v1112_v52, %v976_v58  ;;  %v1668_v3 = vsel %vm1107_vm1, %v1665_v2, %v1667_v59  ;;  %v700_v9 = vmul.f32 %v6617_v28, %v6640_v37  ;;  %v769_v60 = vmul.f32 %v6620_v29, %v6640_v37 }
  0x34   : > { %v1844_v0 = vadd.f32 %v1812_v11, %v1776_v54  ;;  %6128 = vmatpush3.bf16.msra.mxu0 %v6598_v23  ;;  %v1979_v8 = vrot.slane %v1882_v48, 1  ;;  %v6756_v10 = vmul.f32 %v6620_v29, %v6651_v42  ;;  %v1014_v15 = vmul.f32 %v6628_v33, %v6640_v37 }
  0x35   : > { %6130 = vmatprep.subr.bf16.mxu0 %v6609_v27  ;;  %v1289_v2 = vadd.f32 %v1257_v44, %v1221_v1  ;;  %v6763_v23 = vmul.f32 %v6628_v33, %v6651_v42  ;;  %v2223_v19 = vrot.slane %v2126_v55, 2  ;;  %v868_v31 = vrot.slane %v769_v60, 1  ;;  %v6796_v55 = vld [vmem:[%s6614_s24 + $0x50] sm:$0xff] }
  0x36   : > { %v2088_v11 = vadd.f32 %v1978_v63, %v1844_v0  ;;  %v1980_v18 = vsel %vm862_vm0, %v1977_v50, %v1979_v8  ;;  %v869_v17 = vrot.slane %v6756_v10, 1  ;;  %v1113_v39 = vrot.slane %v1014_v15, 2 }
  0x37   : > { %v1533_v32 = vadd.f32 %v1424_v22, %v1289_v2  ;;  %v1114_v37 = vrot.slane %v6763_v23, 2  ;;  %v1258_v43 = vmul.f32 %v6631_v34, %v6686_v62  ;;  %v1327_v44 = vmul.f32 %v6648_v41, %v6686_v62  ;;  %v6792_v22 = vld [vmem:[%s6614_s24 + $0x48] sm:$0xff] }
  0x38   : > { %v2332_v24 = vadd.f32 %v2222_v56, %v2088_v11  ;;  %6132 = vmatpush3.bf16.msra.mxu0 %v6609_v27  ;;  %v870_v40 = vsel %vm862_vm0, %v868_v31, %v869_v17  ;;  %v1328_v45 = vmul.f32 %v6648_v41, %v6693_v5  ;;  %v1571_v54 = vmul.f32 %v6658_v46, %v6686_v62 }
  0x39   : > { %6134 = vmatprep.subr.bf16.mxu0 %v6690_v4  ;;  %v1777_v49 = vadd.f32 %v1668_v3, %v1533_v32  ;;  %v977_v50 = vadd.f32 %v870_v40, %v700_v9  ;;  %v1115_v27 = vsel %vm1107_vm1, %v1113_v39, %v1114_v37  ;;  %v1425_v51 = vrot.slane %v1327_v44, 1 }
  0x3a   : > { %v2370_v47 = vadd.f32 %v6768_v16, %v2332_v24  ;;  %v1426_v52 = vrot.slane %v1328_v45, 1  ;;  %v1572_v56 = vmul.f32 %v6658_v46, %v6693_v5  ;;  %v2224_v63 = vsel %vm1107_vm1, %v2221_v38, %v2223_v19 }
  0x3b   : > { %v1845_v59 = vadd.f32 %v1813_v6, %v1777_v49  ;;  %v1222_v48 = vadd.f32 %v1115_v27, %v977_v50  ;;  %v1669_v1 = vrot.slane %v1571_v54, 2  ;;  %v1883_v8 = vmul.f32 %v6710_v14, %v6792_v22 }
  0x3c   : > { %v2402_v58 = vmax.f32 %v2370_v47, 0.0  ;;  %6136 = vmatpush3.bf16.msra.mxu0 %v6690_v4  ;;  %v1427_v0 = vsel %vm862_vm0, %v1425_v51, %v1426_v52  ;;  %v1670_v3 = vrot.slane %v1572_v56, 2  ;;  %v1884_v13 = vmul.f32 %v6710_v14, %v6796_v55  ;;  %v6829_v51 = vld [vmem:[%s6614_s24 + $0x58] sm:$0x3] }
  0x3d   : > { %v2089_v6 = vadd.f32 %v1980_v18, %v1845_v59  ;;  %v1290_v9 = vadd.f32 %v1258_v43, %v1222_v48  ;;  %v2127_v38 = vmul.f32 %v6674_v53, %v6792_v22  ;;  %v1814_v60 = vmul.f32 %v6682_v61, %v6792_v22 }
  0x3e   : > { %5924 = vmatprep.mubr.f32.mxu0 %v2402_v58  ;;  %v1671_v4 = vsel %vm1107_vm1, %v1669_v1, %v1670_v3  ;;  %v1981_v10 = vrot.slane %v1883_v8, 1  ;;  %v6810_v11 = vmul.f32 %v6674_v53, %v6796_v55  ;;  %v1982_v23 = vrot.slane %v1884_v13, 1 }
  0x3f   : > { %v2333_v2 = vadd.f32 %v2224_v63, %v2089_v6  ;;  %v1534_v15 = vadd.f32 %v1427_v0, %v1290_v9  ;;  %v2225_v18 = vrot.slane %v2127_v38, 2  ;;  %v701_v31 = vmul.f32 %v6617_v28, %v6651_v42 }
  0x40   : > { %v2226_v19 = vrot.slane %v6810_v11, 2  ;;  %v771_v24 = vmul.f32 %v6620_v29, %v6713_v12  ;;  %v1016_v32 = vmul.f32 %v6628_v33, %v6713_v12  ;;  %v1259_v43 = vmul.f32 %v6631_v34, %v6693_v5 }
  0x41   : > { %v2371_v39 = vadd.f32 %v6768_v16, %v2333_v2  ;;  %v1778_v40 = vadd.f32 %v1671_v4, %v1534_v15  ;;  %v1329_v44 = vmul.f32 %v6648_v41, %v6738_v57  ;;  %v1983_v45 = vsel %vm862_vm0, %v1981_v10, %v1982_v23 }
  0x42   : > { %v871_v47 = vrot.slane %v771_v24, 1  ;;  %v1116_v49 = vrot.slane %v1016_v32, 2  ;;  %v1573_v42 = vmul.f32 %v6658_v46, %v6738_v57  ;;  %v2227_v12 = vsel %vm1107_vm1, %v2225_v18, %v2226_v19 }
  0x43   : > { %v2403_v50 = vmax.f32 %v2371_v39, 0.0  ;;  %v1846_v27 = vadd.f32 %v1814_v60, %v1778_v40  ;;  %v1428_v54 = vrot.slane %v1329_v44, 1  ;;  %v1885_v63 = vmul.f32 %v6710_v14, %v6829_v51 }
  0x44   : > { %v872_v56 = vsel %vm862_vm0, %v869_v17, %v871_v47  ;;  %v1117_v58 = vsel %vm1107_vm1, %v1114_v37, %v1116_v49  ;;  %v1672_v59 = vrot.slane %v1573_v42, 2  ;;  %v1815_v1 = vmul.f32 %v6682_v61, %v6796_v55 }
  0x45   : > { %5925 = vmatmul.mubr.f32.vlgmr.msra.gmra.mrb[0].mxu0 %v2403_v50  ;;  %v2090_v48 = vadd.f32 %v1983_v45, %v1846_v27  ;;  %v978_v0 = vadd.f32 %v872_v56, %v701_v31  ;;  %v2129_v8 = vmul.f32 %v6674_v53, %v6829_v51  ;;  %v1429_v6 = vsel %vm862_vm0, %v1426_v52, %v1428_v54  ;;  %v6874_v54 = vld [vmem:[%s6614_s24 + $0x68] sm:$0xff] }
  0x46   : > { %v1673_v9 = vsel %vm1107_vm1, %v1670_v3, %v1672_v59  ;;  %v1984_v17 = vrot.slane %v1885_v63, 1  ;;  %v772_v37 = vmul.f32 %v6620_v29, %v6686_v62  ;;  %v702_v4 = vmul.f32 %v6617_v28, %v6686_v62 }
  0x47   : > { %v2334_v13 = vadd.f32 %v2227_v12, %v2090_v48  ;;  %v1223_v38 = vadd.f32 %v1117_v58, %v978_v0  ;;  %v6847_v60 = vmul.f32 %v6620_v29, %v6693_v5  ;;  %v2228_v10 = vrot.slane %v2129_v8, 2  ;;  %v6871_v12 = vld [vmem:[%s6614_s24 + $0x60] sm:$0xff] }
  0x48   : > { %v873_v11 = vrot.slane %v772_v37, 1  ;;  %v1017_v52 = vmul.f32 %v6628_v33, %v6686_v62  ;;  %v6853_v3 = vmul.f32 %v6628_v33, %v6693_v5  ;;  %v1985_v18 = vsel %vm862_vm0, %v1982_v23, %v1984_v17 }
  0x49   : > { %v2372_v2 = vadd.f32 %v6768_v16, %v2334_v13  ;;  %v1291_v15 = vadd.f32 %v1259_v43, %v1223_v38  ;;  %v874_v31 = vrot.slane %v6847_v60, 1  ;;  %v1260_v39 = vmul.f32 %v6631_v34, %v6792_v22 }
  0x4a   : > { %v1118_v24 = vrot.slane %v1017_v52, 2  ;;  %v1119_v32 = vrot.slane %v6853_v3, 2  ;;  %v1330_v62 = vmul.f32 %v6648_v41, %v6792_v22  ;;  %v1331_v23 = vmul.f32 %v6648_v41, %v6796_v55 }
  0x4b   : > { %v2404_v40 = vmax.f32 %v2372_v2, 0.0  ;;  %v1535_v44 = vadd.f32 %v1429_v6, %v1291_v15  ;;  %v875_v45 = vsel %vm862_vm0, %v873_v11, %v874_v31  ;;  %v1574_v42 = vmul.f32 %v6658_v46, %v6792_v22 }
  0x4c   : > { %v979_v43 = vadd.f32 %v875_v45, %v702_v4  ;;  %v1120_v47 = vsel %vm1107_vm1, %v1118_v24, %v1119_v32  ;;  %v1430_v49 = vrot.slane %v1330_v62, 1  ;;  %v2229_v27 = vsel %vm1107_vm1, %v2226_v19, %v2228_v10 }
  0x4d   : > { %5927 = vmatprep.mubr.f32.mxu0 %v2404_v40  ;;  %v1779_v50 = vadd.f32 %v1673_v9, %v1535_v44  ;;  %v1431_v56 = vrot.slane %v1331_v23, 1  ;;  %v1575_v58 = vmul.f32 %v6658_v46, %v6796_v55  ;;  %v1674_v63 = vrot.slane %v1574_v42, 2 }
  0x4e   : > { %v1224_v59 = vadd.f32 %v1120_v47, %v979_v43  ;;  %v1886_v48 = vmul.f32 %v6710_v14, %v6871_v12  ;;  %v1887_v0 = vmul.f32 %v6710_v14, %v6874_v54  ;;  %v2130_v9 = vmul.f32 %v6674_v53, %v6871_v12  ;;  %v6909_v43 = vld [vmem:[%s6614_s24 + $0x70] sm:$0x3] }
  0x4f   : > { %v1847_v8 = vadd.f32 %v1815_v1, %v1779_v50  ;;  %v1432_v6 = vsel %vm862_vm0, %v1430_v49, %v1431_v56  ;;  %v1675_v19 = vrot.slane %v1575_v58, 2  ;;  %v6887_v38 = vmul.f32 %v6674_v53, %v6874_v54 }
  0x50   : > { %v1292_v17 = vadd.f32 %v1260_v39, %v1224_v59  ;;  %v1986_v37 = vrot.slane %v1886_v48, 1  ;;  %v1987_v13 = vrot.slane %v1887_v0, 1  ;;  %v1816_v10 = vmul.f32 %v6682_v61, %v6871_v12 }
  0x51   : > { %v2091_v4 = vadd.f32 %v1985_v18, %v1847_v8  ;;  %v1676_v60 = vsel %vm1107_vm1, %v1674_v63, %v1675_v19  ;;  %v2230_v1 = vrot.slane %v2130_v9, 2  ;;  %v2231_v52 = vrot.slane %v6887_v38, 2 }
  0x52   : > { %v1536_v11 = vadd.f32 %v1432_v6, %v1292_v17  ;;  %v703_v3 = vmul.f32 %v6617_v28, %v6693_v5  ;;  %v774_v2 = vmul.f32 %v6620_v29, %v6738_v57  ;;  %v1988_v24 = vsel %vm862_vm0, %v1986_v37, %v1987_v13 }
  0x53   : > { %v2335_v15 = vadd.f32 %v2229_v27, %v2091_v4  ;;  %v1019_v18 = vmul.f32 %v6628_v33, %v6738_v57  ;;  %v1332_v39 = vmul.f32 %v6648_v41, %v6829_v51  ;;  %v1261_v44 = vmul.f32 %v6631_v34, %v6796_v55 }
  0x54   : > { %v1780_v62 = vadd.f32 %v1676_v60, %v1536_v11  ;;  %v876_v40 = vrot.slane %v774_v2, 1  ;;  %v1576_v5 = vmul.f32 %v6658_v46, %v6829_v51  ;;  %v2232_v23 = vsel %vm1107_vm1, %v2230_v1, %v2231_v52 }
  0x55   : > { %v2373_v45 = vadd.f32 %v6768_v16, %v2335_v15  ;;  %v1121_v47 = vrot.slane %v1019_v18, 2  ;;  %v1433_v49 = vrot.slane %v1332_v39, 1  ;;  %v1888_v27 = vmul.f32 %v6710_v14, %v6909_v43 }
  0x56   : > { %v1848_v57 = vadd.f32 %v1816_v10, %v1780_v62  ;;  %v877_v42 = vsel %vm862_vm0, %v874_v31, %v876_v40  ;;  %v1677_v50 = vrot.slane %v1576_v5, 2  ;;  %v1817_v48 = vmul.f32 %v6682_v61, %v6874_v54 }
  0x57   : > { %v2405_v58 = vmax.f32 %v2373_v45, 0.0  ;;  %v980_v59 = vadd.f32 %v877_v42, %v703_v3  ;;  %v1122_v63 = vsel %vm1107_vm1, %v1119_v32, %v1121_v47  ;;  %v1434_v8 = vsel %vm862_vm0, %v1431_v56, %v1433_v49  ;;  %v6950_v42 = vld [vmem:[%s6614_s24 + $0x78] sm:$0xff] }
  0x58   : > { %v2092_v0 = vadd.f32 %v1988_v24, %v1848_v57  ;;  %v1989_v6 = vrot.slane %v1888_v27, 1  ;;  %v2132_v9 = vmul.f32 %v6674_v53, %v6909_v43  ;;  %v1678_v17 = vsel %vm1107_vm1, %v1675_v19, %v1677_v50  ;;  %v6953_v50 = vld [vmem:[%s6614_s24 + $0x80] sm:$0xff] }
  0x59   : > { %5928 = vmatmul.mubr.f32.gmra.mrb[2].mxu0 %v2405_v58  ;;  %v1225_v31 = vadd.f32 %v1122_v63, %v980_v59  ;;  %v775_v37 = vmul.f32 %v6620_v29, %v6792_v22  ;;  %v6925_v32 = vmul.f32 %v6620_v29, %v6796_v55  ;;  %v704_v56 = vmul.f32 %v6617_v28, %v6792_v22 }
  0x5a   : > { %v2336_v38 = vadd.f32 %v2232_v23, %v2092_v0  ;;  %v1990_v4 = vsel %vm862_vm0, %v1987_v13, %v1989_v6  ;;  %v1020_v60 = vmul.f32 %v6628_v33, %v6792_v22  ;;  %v1021_v11 = vmul.f32 %v6628_v33, %v6796_v55 }
  0x5b   : > { %v1293_v10 = vadd.f32 %v1261_v44, %v1225_v31  ;;  %v878_v1 = vrot.slane %v775_v37, 1  ;;  %v879_v19 = vrot.slane %v6925_v32, 1  ;;  %v2233_v2 = vrot.slane %v2132_v9, 2 }
  0x5c   : > { %v2374_v3 = vadd.f32 %v6768_v16, %v2336_v38  ;;  %v1123_v15 = vrot.slane %v1020_v60, 2  ;;  %v1262_v13 = vmul.f32 %v6631_v34, %v6871_v12  ;;  %v1124_v22 = vrot.slane %v1021_v11, 2 }
  0x5d   : > { %v1537_v24 = vadd.f32 %v1434_v8, %v1293_v10  ;;  %v880_v18 = vsel %vm862_vm0, %v878_v1, %v879_v19  ;;  %v1333_v39 = vmul.f32 %v6648_v41, %v6871_v12  ;;  %v1334_v44 = vmul.f32 %v6648_v41, %v6874_v54 }
  0x5e   : > { %v2406_v62 = vmax.f32 %v2374_v3, 0.0  ;;  %v981_v40 = vadd.f32 %v880_v18, %v704_v56  ;;  %v1577_v5 = vmul.f32 %v6658_v46, %v6871_v12  ;;  %v1125_v23 = vsel %vm1107_vm1, %v1123_v15, %v1124_v22 }
  0x5f   : > { %v1781_v45 = vadd.f32 %v1678_v17, %v1537_v24  ;;  %v1435_v47 = vrot.slane %v1333_v39, 1  ;;  %v1578_v49 = vmul.f32 %v6658_v46, %v6874_v54  ;;  %v2234_v57 = vsel %vm1107_vm1, %v2231_v52, %v2233_v2 }
  0x60   : > { %5930 = vmatprep.mubr.f32.mxu0 %v2406_v62  ;;  %v1226_v27 = vadd.f32 %v1125_v23, %v981_v40  ;;  %v1436_v58 = vrot.slane %v1334_v44, 1  ;;  %v1679_v59 = vrot.slane %v1577_v5, 2  ;;  %v1889_v8 = vmul.f32 %v6710_v14, %v6950_v42  ;;  %v6982_v62 = vld [vmem:[%s6614_s24 + $0x88] sm:$0x3] }
  0x61   : > { %v1849_v63 = vadd.f32 %v1817_v48, %v1781_v45  ;;  %v1680_v0 = vrot.slane %v1578_v49, 2  ;;  %v1890_v6 = vmul.f32 %v6710_v14, %v6953_v50  ;;  %v2133_v52 = vmul.f32 %v6674_v53, %v6950_v42 }
  0x62   : > { %v1294_v9 = vadd.f32 %v1262_v13, %v1226_v27  ;;  %v1437_v31 = vsel %vm862_vm0, %v1435_v47, %v1436_v58  ;;  %v6964_v17 = vmul.f32 %v6674_v53, %v6953_v50  ;;  %v1991_v32 = vrot.slane %v1889_v8, 1 }
  0x63   : > { %v2093_v37 = vadd.f32 %v1990_v4, %v1849_v63  ;;  %v1681_v48 = vsel %vm1107_vm1, %v1679_v59, %v1680_v0  ;;  %v1992_v38 = vrot.slane %v1890_v6, 1  ;;  %v1818_v60 = vmul.f32 %v6682_v61, %v6950_v42 }
  0x64   : > { %v1538_v56 = vadd.f32 %v1437_v31, %v1294_v9  ;;  %v2235_v10 = vrot.slane %v2133_v52, 2  ;;  %v2236_v1 = vrot.slane %v6964_v17, 2  ;;  %v705_v3 = vmul.f32 %v6617_v28, %v6796_v55 }
  0x65   : > { %v2337_v11 = vadd.f32 %v2234_v57, %v2093_v37  ;;  %v777_v2 = vmul.f32 %v6620_v29, %v6829_v51  ;;  %v1022_v4 = vmul.f32 %v6628_v33, %v6829_v51  ;;  %v1993_v13 = vsel %vm862_vm0, %v1991_v32, %v1992_v38 }
  0x66   : > { %v1782_v15 = vadd.f32 %v1681_v48, %v1538_v56  ;;  %v2237_v24 = vsel %vm1107_vm1, %v2235_v10, %v2236_v1  ;;  %v1335_v18 = vmul.f32 %v6648_v41, %v6909_v43  ;;  %v1579_v44 = vmul.f32 %v6658_v46, %v6909_v43 }
  0x67   : > { %v2375_v39 = vadd.f32 %v6768_v16, %v2337_v11  ;;  %v881_v40 = vrot.slane %v777_v2, 1  ;;  %v1126_v55 = vrot.slane %v1022_v4, 2  ;;  %v1263_v51 = vmul.f32 %v6631_v34, %v6874_v54 }
  0x68   : > { %v1850_v5 = vadd.f32 %v1818_v60, %v1782_v15  ;;  %v1438_v45 = vrot.slane %v1335_v18, 1  ;;  %v1891_v23 = vmul.f32 %v6710_v14, %v6982_v62  ;;  %v1682_v27 = vrot.slane %v1579_v44, 2 }
  0x69   : > { %v2407_v47 = vmax.f32 %v2375_v39, 0.0  ;;  %v882_v49 = vsel %vm862_vm0, %v879_v19, %v881_v40  ;;  %v1127_v57 = vsel %vm1107_vm1, %v1124_v22, %v1126_v55  ;;  %v1819_v8 = vmul.f32 %v6682_v61, %v6953_v50 }
  0x6a   : > { %v2094_v59 = vadd.f32 %v1993_v13, %v1850_v5  ;;  %v982_v63 = vadd.f32 %v882_v49, %v705_v3  ;;  %v1994_v6 = vrot.slane %v1891_v23, 1  ;;  %v1439_v9 = vsel %vm862_vm0, %v1436_v58, %v1438_v45  ;;  %v7028_v45 = vld [vmem:[%s6614_s24 + $0x90] sm:$0xff]  ;;  %v7031_v23 = vld [vmem:[%s6614_s24 + $0x98] sm:$0xff] }
  0x6b   : > { %5931 = vmatmul.mubr.f32.gmra.mrb[4].mxu0 %v2407_v47  ;;  %v1683_v31 = vsel %vm1107_vm1, %v1680_v0, %v1682_v27  ;;  %v2135_v52 = vmul.f32 %v6674_v53, %v6982_v62  ;;  %v778_v19 = vmul.f32 %v6620_v29, %v6871_v12  ;;  %v706_v37 = vmul.f32 %v6617_v28, %v6871_v12 }
  0x6c   : > { %v2338_v17 = vadd.f32 %v2237_v24, %v2094_v59  ;;  %v1227_v22 = vadd.f32 %v1127_v57, %v982_v63  ;;  %v7004_v48 = vmul.f32 %v6620_v29, %v6874_v54  ;;  %v1995_v32 = vsel %vm862_vm0, %v1992_v38, %v1994_v6 }
  0x6d   : > { %v883_v58 = vrot.slane %v778_v19, 1  ;;  %v1023_v0 = vmul.f32 %v6628_v33, %v6871_v12  ;;  %v7011_v56 = vmul.f32 %v6628_v33, %v6874_v54  ;;  %v2238_v11 = vrot.slane %v2135_v52, 2 }
  0x6e   : > { %v2376_v60 = vadd.f32 %v6768_v16, %v2338_v17  ;;  %v1295_v10 = vadd.f32 %v1263_v51, %v1227_v22  ;;  %v884_v3 = vrot.slane %v7004_v48, 1  ;;  %v1264_v38 = vmul.f32 %v6631_v34, %v6950_v42 }
  0x6f   : > { %v1128_v2 = vrot.slane %v1023_v0, 2  ;;  %v1129_v4 = vrot.slane %v7011_v56, 2  ;;  %v1336_v12 = vmul.f32 %v6648_v41, %v6950_v42  ;;  %v1337_v18 = vmul.f32 %v6648_v41, %v6953_v50 }
  0x70   : > { %v2408_v15 = vmax.f32 %v2376_v60, 0.0  ;;  %v1539_v13 = vadd.f32 %v1439_v9, %v1295_v10  ;;  %v885_v24 = vsel %vm862_vm0, %v883_v58, %v884_v3  ;;  %v1580_v44 = vmul.f32 %v6658_v46, %v6950_v42 }
  0x71   : > { %v983_v39 = vadd.f32 %v885_v24, %v706_v37  ;;  %v1130_v40 = vsel %vm1107_vm1, %v1128_v2, %v1129_v4  ;;  %v1440_v55 = vrot.slane %v1336_v12, 1  ;;  %v2239_v51 = vsel %vm1107_vm1, %v2236_v1, %v2238_v11 }
  0x72   : > { %5933 = vmatprep.mubr.f32.mxu0 %v2408_v15  ;;  %v1783_v5 = vadd.f32 %v1683_v31, %v1539_v13  ;;  %v1441_v47 = vrot.slane %v1337_v18, 1  ;;  %v1581_v49 = vmul.f32 %v6658_v46, %v6953_v50  ;;  %v1684_v27 = vrot.slane %v1580_v44, 2 }
  0x73   : > { %v1228_v57 = vadd.f32 %v1130_v40, %v983_v39  ;;  %v1892_v59 = vmul.f32 %v6710_v14, %v7028_v45  ;;  %v1893_v63 = vmul.f32 %v6710_v14, %v7031_v23  ;;  %v2136_v31 = vmul.f32 %v6674_v53, %v7028_v45  ;;  %v7066_v39 = vld [vmem:[%s6614_s24 + $0xa0] sm:$0x3] }
  0x74   : > { %v1851_v6 = vadd.f32 %v1819_v8, %v1783_v5  ;;  %v1442_v9 = vsel %vm862_vm0, %v1440_v55, %v1441_v47  ;;  %v1685_v1 = vrot.slane %v1581_v49, 2  ;;  %v7044_v22 = vmul.f32 %v6674_v53, %v7031_v23 }
  0x75   : > { %v1296_v52 = vadd.f32 %v1264_v38, %v1228_v57  ;;  %v1996_v19 = vrot.slane %v1892_v59, 1  ;;  %v1997_v17 = vrot.slane %v1893_v63, 1  ;;  %v1820_v58 = vmul.f32 %v6682_v61, %v7028_v45 }
  0x76   : > { %v2095_v37 = vadd.f32 %v1995_v32, %v1851_v6  ;;  %v1686_v48 = vsel %vm1107_vm1, %v1684_v27, %v1685_v1  ;;  %v2240_v8 = vrot.slane %v2136_v31, 2  ;;  %v2241_v56 = vrot.slane %v7044_v22, 2 }
  0x77   : > { %v1540_v0 = vadd.f32 %v1442_v9, %v1296_v52  ;;  %v707_v60 = vmul.f32 %v6617_v28, %v6874_v54  ;;  %v780_v10 = vmul.f32 %v6620_v29, %v6909_v43  ;;  %v1998_v2 = vsel %vm862_vm0, %v1996_v19, %v1997_v17 }
  0x78   : > { %v2339_v11 = vadd.f32 %v2239_v51, %v2095_v37  ;;  %v1025_v32 = vmul.f32 %v6628_v33, %v6909_v43  ;;  %v1338_v38 = vmul.f32 %v6648_v41, %v6982_v62  ;;  %v1265_v13 = vmul.f32 %v6631_v34, %v6953_v50 }
  0x79   : > { %v1784_v12 = vadd.f32 %v1686_v48, %v1540_v0  ;;  %v886_v15 = vrot.slane %v780_v10, 1  ;;  %v1582_v54 = vmul.f32 %v6658_v46, %v6982_v62  ;;  %v2242_v18 = vsel %vm1107_vm1, %v2240_v8, %v2241_v56 }
  0x7a   : > { %v2377_v24 = vadd.f32 %v6768_v16, %v2339_v11  ;;  %v1131_v40 = vrot.slane %v1025_v32, 2  ;;  %v1443_v55 = vrot.slane %v1338_v38, 1  ;;  %v1894_v51 = vmul.f32 %v6710_v14, %v7066_v39 }
  0x7b   : > { %v1852_v43 = vadd.f32 %v1820_v58, %v1784_v12  ;;  %v887_v44 = vsel %vm862_vm0, %v884_v3, %v886_v15  ;;  %v1687_v5 = vrot.slane %v1582_v54, 2  ;;  %v1821_v59 = vmul.f32 %v6682_v61, %v7031_v23 }
  0x7c   : > { %v2409_v49 = vmax.f32 %v2377_v24, 0.0  ;;  %v984_v57 = vadd.f32 %v887_v44, %v707_v60  ;;  %v1132_v27 = vsel %vm1107_vm1, %v1129_v4, %v1131_v40  ;;  %v1444_v6 = vsel %vm862_vm0, %v1441_v47, %v1443_v55  ;;  %v7107_v44 = vld [vmem:[%s6614_s24 + $0xa8] sm:$0xff] }
  0x7d   : > { %v2096_v63 = vadd.f32 %v1998_v2, %v1852_v43  ;;  %v1999_v9 = vrot.slane %v1894_v51, 1  ;;  %v2138_v31 = vmul.f32 %v6674_v53, %v7066_v39  ;;  %v1688_v52 = vsel %vm1107_vm1, %v1685_v1, %v1687_v5  ;;  %v7110_v5 = vld [vmem:[%s6614_s24 + $0xb0] sm:$0xff] }
  0x7e   : > { %5934 = vmatmul.mubr.f32.gmra.mrb[6].mxu0 %v2409_v49  ;;  %v1229_v3 = vadd.f32 %v1132_v27, %v984_v57  ;;  %v781_v19 = vmul.f32 %v6620_v29, %v6950_v42  ;;  %v7082_v4 = vmul.f32 %v6620_v29, %v6953_v50  ;;  %v708_v47 = vmul.f32 %v6617_v28, %v6950_v42 }
  0x7f   : > { %v2340_v22 = vadd.f32 %v2242_v18, %v2096_v63  ;;  %v2000_v37 = vsel %vm862_vm0, %v1997_v17, %v1999_v9  ;;  %v1026_v48 = vmul.f32 %v6628_v33, %v6950_v42  ;;  %v1027_v0 = vmul.f32 %v6628_v33, %v6953_v50 }
  0x80   : > { %v1297_v58 = vadd.f32 %v1265_v13, %v1229_v3  ;;  %v888_v8 = vrot.slane %v781_v19, 1  ;;  %v889_v1 = vrot.slane %v7082_v4, 1  ;;  %v2243_v10 = vrot.slane %v2138_v31, 2 }
  0x81   : > { %v2378_v60 = vadd.f32 %v6768_v16, %v2340_v22  ;;  %v1133_v11 = vrot.slane %v1026_v48, 2  ;;  %v1266_v17 = vmul.f32 %v6631_v34, %v7028_v45  ;;  %v1134_v42 = vrot.slane %v1027_v0, 2 }
  0x82   : > { %v1541_v2 = vadd.f32 %v1444_v6, %v1297_v58  ;;  %v890_v32 = vsel %vm862_vm0, %v888_v8, %v889_v1  ;;  %v1339_v38 = vmul.f32 %v6648_v41, %v7028_v45  ;;  %v1340_v13 = vmul.f32 %v6648_v41, %v7031_v23 }
  0x83   : > { %v2410_v12 = vmax.f32 %v2378_v60, 0.0  ;;  %v985_v15 = vadd.f32 %v890_v32, %v708_v47  ;;  %v1583_v54 = vmul.f32 %v6658_v46, %v7028_v45  ;;  %v1135_v18 = vsel %vm1107_vm1, %v1133_v11, %v1134_v42 }
  0x84   : > { %v1785_v24 = vadd.f32 %v1688_v52, %v1541_v2  ;;  %v1445_v40 = vrot.slane %v1339_v38, 1  ;;  %v1584_v55 = vmul.f32 %v6658_v46, %v7031_v23  ;;  %v2244_v43 = vsel %vm1107_vm1, %v2241_v56, %v2243_v10 }
  0x85   : > { %5936 = vmatprep.mubr.f32.mxu0 %v2410_v12  ;;  %v1230_v51 = vadd.f32 %v1135_v18, %v985_v15  ;;  %v1446_v49 = vrot.slane %v1340_v13, 1  ;;  %v1689_v57 = vrot.slane %v1583_v54, 2  ;;  %v1895_v6 = vmul.f32 %v6710_v14, %v7107_v44  ;;  %v7139_v12 = vld [vmem:[%s6614_s24 + $0xb8] sm:$0x3] }
  0x86   : > { %v1853_v27 = vadd.f32 %v1821_v59, %v1785_v24  ;;  %v1690_v63 = vrot.slane %v1584_v55, 2  ;;  %v1896_v9 = vmul.f32 %v6710_v14, %v7110_v5  ;;  %v2139_v56 = vmul.f32 %v6674_v53, %v7107_v44 }
  0x87   : > { %v1298_v31 = vadd.f32 %v1266_v17, %v1230_v51  ;;  %v1447_v3 = vsel %vm862_vm0, %v1445_v40, %v1446_v49  ;;  %v7121_v52 = vmul.f32 %v6674_v53, %v7110_v5  ;;  %v2001_v4 = vrot.slane %v1895_v6, 1 }
  0x88   : > { %v2097_v19 = vadd.f32 %v2000_v37, %v1853_v27  ;;  %v1691_v59 = vsel %vm1107_vm1, %v1689_v57, %v1690_v63  ;;  %v2002_v22 = vrot.slane %v1896_v9, 1  ;;  %v1822_v48 = vmul.f32 %v6682_v61, %v7107_v44 }
  0x89   : > { %v1542_v47 = vadd.f32 %v1447_v3, %v1298_v31  ;;  %v2245_v58 = vrot.slane %v2139_v56, 2  ;;  %v2246_v8 = vrot.slane %v7121_v52, 2  ;;  %v709_v60 = vmul.f32 %v6617_v28, %v6953_v50 }
  0x8a   : > { %v2341_v0 = vadd.f32 %v2244_v43, %v2097_v19  ;;  %v783_v10 = vmul.f32 %v6620_v29, %v6982_v62  ;;  %v1028_v37 = vmul.f32 %v6628_v33, %v6982_v62  ;;  %v2003_v17 = vsel %vm862_vm0, %v2001_v4, %v2002_v22 }
  0x8b   : > { %v1786_v11 = vadd.f32 %v1691_v59, %v1542_v47  ;;  %v2247_v2 = vsel %vm1107_vm1, %v2245_v58, %v2246_v8  ;;  %v1341_v32 = vmul.f32 %v6648_v41, %v7066_v39  ;;  %v1585_v13 = vmul.f32 %v6658_v46, %v7066_v39 }
  0x8c   : > { %v2379_v38 = vadd.f32 %v6768_v16, %v2341_v0  ;;  %v891_v15 = vrot.slane %v783_v10, 1  ;;  %v1136_v50 = vrot.slane %v1028_v37, 2  ;;  %v1267_v62 = vmul.f32 %v6631_v34, %v7031_v23 }
  0x8d   : > { %v1854_v54 = vadd.f32 %v1822_v48, %v1786_v11  ;;  %v1448_v24 = vrot.slane %v1341_v32, 1  ;;  %v1897_v18 = vmul.f32 %v6710_v14, %v7139_v12  ;;  %v1692_v51 = vrot.slane %v1585_v13, 2 }
  0x8e   : > { %v2411_v40 = vmax.f32 %v2379_v38, 0.0  ;;  %v892_v55 = vsel %vm862_vm0, %v889_v1, %v891_v15  ;;  %v1137_v43 = vsel %vm1107_vm1, %v1134_v42, %v1136_v50  ;;  %v1823_v6 = vmul.f32 %v6682_v61, %v7110_v5 }
  0x8f   : > { %v2098_v57 = vadd.f32 %v2003_v17, %v1854_v54  ;;  %v986_v27 = vadd.f32 %v892_v55, %v709_v60  ;;  %v2004_v9 = vrot.slane %v1897_v18, 1  ;;  %v1449_v31 = vsel %vm862_vm0, %v1446_v49, %v1448_v24  ;;  %v7185_v24 = vld [vmem:[%s6614_s24 + $0xc0] sm:$0xff]  ;;  %v7188_v18 = vld [vmem:[%s6614_s24 + $0xc8] sm:$0xff] }
  0x90   : > { %5937 = vmatmul.mubr.f32.gmra.mrb[8].mxu0 %v2411_v40  ;;  %v1693_v3 = vsel %vm1107_vm1, %v1690_v63, %v1692_v51  ;;  %v2141_v56 = vmul.f32 %v6674_v53, %v7139_v12  ;;  %v784_v1 = vmul.f32 %v6620_v29, %v7028_v45  ;;  %v710_v19 = vmul.f32 %v6617_v28, %v7028_v45 }
  0x91   : > { %v2342_v52 = vadd.f32 %v2247_v2, %v2098_v57  ;;  %v1231_v42 = vadd.f32 %v1137_v43, %v986_v27  ;;  %v7161_v59 = vmul.f32 %v6620_v29, %v7031_v23  ;;  %v2005_v4 = vsel %vm862_vm0, %v2002_v22, %v2004_v9 }
  0x92   : > { %v893_v49 = vrot.slane %v784_v1, 1  ;;  %v1029_v63 = vmul.f32 %v6628_v33, %v7028_v45  ;;  %v7168_v47 = vmul.f32 %v6628_v33, %v7031_v23  ;;  %v2248_v0 = vrot.slane %v2141_v56, 2 }
  0x93   : > { %v2380_v48 = vadd.f32 %v6768_v16, %v2342_v52  ;;  %v1299_v58 = vadd.f32 %v1267_v62, %v1231_v42  ;;  %v894_v60 = vrot.slane %v7161_v59, 1  ;;  %v1268_v22 = vmul.f32 %v6631_v34, %v7107_v44 }
  0x94   : > { %v1138_v10 = vrot.slane %v1029_v63, 2  ;;  %v1139_v37 = vrot.slane %v7168_v47, 2  ;;  %v1342_v45 = vmul.f32 %v6648_v41, %v7107_v44  ;;  %v1343_v32 = vmul.f32 %v6648_v41, %v7110_v5 }
  0x95   : > { %v2412_v11 = vmax.f32 %v2380_v48, 0.0  ;;  %v1543_v17 = vadd.f32 %v1449_v31, %v1299_v58  ;;  %v895_v2 = vsel %vm862_vm0, %v893_v49, %v894_v60  ;;  %v1586_v13 = vmul.f32 %v6658_v46, %v7107_v44 }
  0x96   : > { %v987_v38 = vadd.f32 %v895_v2, %v710_v19  ;;  %v1140_v15 = vsel %vm1107_vm1, %v1138_v10, %v1139_v37  ;;  %v1450_v50 = vrot.slane %v1342_v45, 1  ;;  %v2249_v62 = vsel %vm1107_vm1, %v2246_v8, %v2248_v0 }
  0x97   : > { %5939 = vmatprep.mubr.f32.mxu0 %v2412_v11  ;;  %v1787_v54 = vadd.f32 %v1693_v3, %v1543_v17  ;;  %v1451_v40 = vrot.slane %v1343_v32, 1  ;;  %v1587_v55 = vmul.f32 %v6658_v46, %v7110_v5  ;;  %v1694_v51 = vrot.slane %v1586_v13, 2  ;;  %v7223_v32 = vld [vmem:[%s6614_s24 + $0xd0] sm:$0x3] }
  0x98   : > { %v1232_v43 = vadd.f32 %v1140_v15, %v987_v38  ;;  %v1898_v57 = vmul.f32 %v6710_v14, %v7185_v24  ;;  %v1899_v27 = vmul.f32 %v6710_v14, %v7188_v18  ;;  %v2142_v3 = vmul.f32 %v6674_v53, %v7185_v24 }
  0x99   : > { %v1855_v9 = vadd.f32 %v1823_v6, %v1787_v54  ;;  %v1452_v31 = vsel %vm862_vm0, %v1450_v50, %v1451_v40  ;;  %v1695_v8 = vrot.slane %v1587_v55, 2  ;;  %v7201_v42 = vmul.f32 %v6674_v53, %v7188_v18 }
  0x9a   : > { %v1300_v56 = vadd.f32 %v1268_v22, %v1232_v43  ;;  %v2006_v1 = vrot.slane %v1898_v57, 1  ;;  %v2007_v52 = vrot.slane %v1899_v27, 1  ;;  %v1824_v49 = vmul.f32 %v6682_v61, %v7185_v24 }
  0x9b   : > { %v2099_v19 = vadd.f32 %v2005_v4, %v1855_v9  ;;  %v1696_v59 = vsel %vm1107_vm1, %v1694_v51, %v1695_v8  ;;  %v2250_v6 = vrot.slane %v2142_v3, 2  ;;  %v2251_v47 = vrot.slane %v7201_v42, 2 }
  0x9c   : > { %v1544_v63 = vadd.f32 %v1452_v31, %v1300_v56  ;;  %v711_v48 = vmul.f32 %v6617_v28, %v7031_v23  ;;  %v786_v58 = vmul.f32 %v6620_v29, %v7066_v39  ;;  %v2008_v53 = vsel %vm862_vm0, %v2006_v1, %v2007_v52  ;;  %v7235_v31 = vld [vmem:[%s9946_s22 + $0x8] ss:$0 sm:$0xff] }
  0x9d   : > { %v2343_v0 = vadd.f32 %v2249_v62, %v2099_v19  ;;  %v1031_v4 = vmul.f32 %v6628_v33, %v7066_v39  ;;  %v1344_v10 = vmul.f32 %v6648_v41, %v7139_v12  ;;  %v1269_v11 = vmul.f32 %v6631_v34, %v7110_v5 }
  0x9e   : > { %v1788_v22 = vadd.f32 %v1696_v59, %v1544_v63  ;;  %v896_v45 = vrot.slane %v786_v58, 1  ;;  %v1588_v23 = vmul.f32 %v6658_v46, %v7139_v12  ;;  %v2252_v2 = vsel %vm1107_vm1, %v2250_v6, %v2251_v47 }
  0x9f   : > { %v2381_v17 = vadd.f32 %v6768_v16, %v2343_v0  ;;  %v1141_v38 = vrot.slane %v1031_v4, 2  ;;  %v1453_v15 = vrot.slane %v1344_v10, 1  ;;  %v1900_v54 = vmul.f32 %v6710_v14, %v7223_v32 }
  0xa0   : > { %v1856_v39 = vadd.f32 %v1824_v49, %v1788_v22  ;;  %v897_v50 = vsel %vm862_vm0, %v894_v60, %v896_v45  ;;  %v1697_v13 = vrot.slane %v1588_v23, 2  ;;  %v1825_v51 = vmul.f32 %v6682_v61, %v7188_v18 }
  0xa1   : > { %v2413_v62 = vmax.f32 %v2381_v17, 0.0  ;;  %v988_v55 = vadd.f32 %v897_v50, %v711_v48  ;;  %v1142_v43 = vsel %vm1107_vm1, %v1139_v37, %v1141_v38  ;;  %v1454_v27 = vsel %vm862_vm0, %v1451_v40, %v1453_v15  ;;  %v7272_v50 = vld [vmem:[%s6614_s24 + $0xe0] sm:$0xff] }
  0xa2   : > { %v2100_v57 = vadd.f32 %v2008_v53, %v1856_v39  ;;  %v2009_v9 = vrot.slane %v1900_v54, 1  ;;  %v2144_v60 = vmul.f32 %v7235_v31, %v7223_v32  ;;  %v1698_v56 = vsel %vm1107_vm1, %v1695_v8, %v1697_v13  ;;  %v7269_v39 = vld [vmem:[%s6614_s24 + $0xd8] sm:$0xff] }
  0xa3   : > { %5940 = vmatmul.mubr.f32.gmra.mrb[10].mxu0 %v2413_v62  ;;  %v1233_v3 = vadd.f32 %v1142_v43, %v988_v55  ;;  %v787_v37 = vmul.f32 %v6620_v29, %v7107_v44  ;;  %v7244_v1 = vmul.f32 %v6620_v29, %v7110_v5  ;;  %v712_v19 = vmul.f32 %v6617_v28, %v7107_v44 }
  0xa4   : > { %v2344_v40 = vadd.f32 %v2252_v2, %v2100_v57  ;;  %v2010_v42 = vsel %vm862_vm0, %v2007_v52, %v2009_v9  ;;  %v1032_v59 = vmul.f32 %v6628_v33, %v7107_v44  ;;  %v1033_v63 = vmul.f32 %v6628_v33, %v7110_v5 }
  0xa5   : > { %v1301_v49 = vadd.f32 %v1269_v11, %v1233_v3  ;;  %v898_v6 = vrot.slane %v787_v37, 1  ;;  %v899_v8 = vrot.slane %v7244_v1, 1  ;;  %v2253_v58 = vrot.slane %v2144_v60, 2 }
  0xa6   : > { %v2382_v48 = vadd.f32 %v6768_v16, %v2344_v40  ;;  %v1143_v0 = vrot.slane %v1032_v59, 2  ;;  %v1270_v52 = vmul.f32 %v6631_v34, %v7185_v24  ;;  %v1144_v44 = vrot.slane %v1033_v63, 2 }
  0xa7   : > { %v1545_v53 = vadd.f32 %v1454_v27, %v1301_v49  ;;  %v900_v4 = vsel %vm862_vm0, %v898_v6, %v899_v8  ;;  %v1345_v10 = vmul.f32 %v6648_v41, %v7185_v24  ;;  %v1346_v11 = vmul.f32 %v6648_v41, %v7188_v18 }
  0xa8   : > { %v2414_v22 = vmax.f32 %v2382_v48, 0.0  ;;  %v989_v45 = vadd.f32 %v900_v4, %v712_v19  ;;  %v1589_v16 = vmul.f32 %v6658_v46, %v7185_v24  ;;  %v1145_v17 = vsel %vm1107_vm1, %v1143_v0, %v1144_v44  ;;  %v7302_v4 = vld [vmem:[%s9951_s2] ss:$0 sm:$0xff] }
  0xa9   : > { %v1789_v23 = vadd.f32 %v1698_v56, %v1545_v53  ;;  %v1455_v2 = vrot.slane %v1345_v10, 1  ;;  %v1590_v38 = vmul.f32 %v6658_v46, %v7188_v18  ;;  %v2254_v15 = vsel %vm1107_vm1, %v2251_v47, %v2253_v58  ;;  %v7306_v10 = vld [vmem:[%s6614_s24 + $0xe8] sm:$0x3] }
  0xaa   : > { %5942 = vmatprep.mubr.f32.mxu0 %v2414_v22  ;;  %v1234_v13 = vadd.f32 %v1145_v17, %v989_v45  ;;  %v1456_v54 = vrot.slane %v1346_v11, 1  ;;  %v1699_v62 = vrot.slane %v1589_v16, 2  ;;  %v1901_v57 = vmul.f32 %v6710_v14, %v7269_v39 }
  0xab   : > { %v1857_v55 = vadd.f32 %v1825_v51, %v1789_v23  ;;  %v1700_v43 = vrot.slane %v1590_v38, 2  ;;  %v1902_v27 = vmul.f32 %v6710_v14, %v7272_v50  ;;  %v2145_v47 = vmul.f32 %v7235_v31, %v7269_v39 }
  0xac   : > { %v1302_v9 = vadd.f32 %v1270_v52, %v1234_v13  ;;  %v1457_v60 = vsel %vm862_vm0, %v1455_v2, %v1456_v54  ;;  %v7283_v3 = vmul.f32 %v7235_v31, %v7272_v50  ;;  %v2011_v37 = vrot.slane %v1901_v57, 1 }
  0xad   : > { %v2101_v56 = vadd.f32 %v2010_v42, %v1857_v55  ;;  %v1701_v51 = vsel %vm1107_vm1, %v1699_v62, %v1700_v43  ;;  %v2012_v1 = vrot.slane %v1902_v27, 1  ;;  %v1826_v19 = vmul.f32 %v6682_v61, %v7269_v39 }
  0xae   : > { %v1546_v40 = vadd.f32 %v1457_v60, %v1302_v9  ;;  %v2255_v59 = vrot.slane %v2145_v47, 2  ;;  %v2256_v49 = vrot.slane %v7283_v3, 2  ;;  %v713_v63 = vmul.f32 %v6617_v28, %v7110_v5 }
  0xaf   : > { %v2345_v6 = vadd.f32 %v2254_v15, %v2101_v56  ;;  %v789_v48 = vmul.f32 %v6620_v29, %v7139_v12  ;;  %v1034_v42 = vmul.f32 %v6628_v33, %v7139_v12  ;;  %v2013_v0 = vsel %vm862_vm0, %v2011_v37, %v2012_v1 }
  0xb0   : > { %v1790_v58 = vadd.f32 %v1701_v51, %v1546_v40  ;;  %v2257_v52 = vsel %vm1107_vm1, %v2255_v59, %v2256_v49  ;;  %v1347_v53 = vmul.f32 %v6648_v41, %v7223_v32  ;;  %v1591_v12 = vmul.f32 %v6658_v46, %v7223_v32 }
  0xb1   : > { %v2383_v5 = vadd.f32 %v7302_v4, %v2345_v6  ;;  %v901_v22 = vrot.slane %v789_v48, 1  ;;  %v1146_v45 = vrot.slane %v1034_v42, 2  ;;  %v1271_v16 = vmul.f32 %v6631_v34, %v7188_v18 }
  0xb2   : > { %v1858_v11 = vadd.f32 %v1826_v19, %v1790_v58  ;;  %v1458_v23 = vrot.slane %v1347_v53, 1  ;;  %v1903_v17 = vmul.f32 %v6710_v14, %v7306_v10  ;;  %v1702_v13 = vrot.slane %v1591_v12, 2 }
  0xb3   : > { %v2415_v2 = vmax.f32 %v2383_v5, 0.0  ;;  %v902_v38 = vsel %vm862_vm0, %v899_v8, %v901_v22  ;;  %v1147_v15 = vsel %vm1107_vm1, %v1144_v44, %v1146_v45  ;;  %v1827_v57 = vmul.f32 %v6682_v61, %v7272_v50 }
  0xb4   : > { %v2102_v62 = vadd.f32 %v2013_v0, %v1858_v11  ;;  %v990_v55 = vadd.f32 %v902_v38, %v713_v63  ;;  %v2014_v27 = vrot.slane %v1903_v17, 1  ;;  %v1459_v9 = vsel %vm862_vm0, %v1456_v54, %v1458_v23  ;;  %v7352_v23 = vld [vmem:[%s6614_s24 + $0xf0] sm:$0xff]  ;;  %v7355_v17 = vld [vmem:[%s6614_s24 + $0xf8] sm:$0xff] }
  0xb5   : > { %5943 = vmatmul.mubr.f32.gmra.mrb[12].mxu0 %v2415_v2  ;;  %v1703_v60 = vsel %vm1107_vm1, %v1700_v43, %v1702_v13  ;;  %v2147_v47 = vmul.f32 %v7235_v31, %v7306_v10  ;;  %v790_v8 = vmul.f32 %v6620_v29, %v7185_v24  ;;  %v714_v56 = vmul.f32 %v6617_v28, %v7185_v24 }
  0xb6   : > { %v2346_v3 = vadd.f32 %v2257_v52, %v2102_v62  ;;  %v1235_v44 = vadd.f32 %v1147_v15, %v990_v55  ;;  %v7328_v51 = vmul.f32 %v6620_v29, %v7188_v18  ;;  %v2015_v37 = vsel %vm862_vm0, %v2012_v1, %v2014_v27 }
  0xb7   : > { %v903_v54 = vrot.slane %v790_v8, 1  ;;  %v1035_v43 = vmul.f32 %v6628_v33, %v7185_v24  ;;  %v7335_v40 = vmul.f32 %v6628_v33, %v7188_v18  ;;  %v2258_v6 = vrot.slane %v2147_v47, 2 }
  0xb8   : > { %v2384_v19 = vadd.f32 %v7302_v4, %v2346_v3  ;;  %v1303_v59 = vadd.f32 %v1271_v16, %v1235_v44  ;;  %v904_v63 = vrot.slane %v7328_v51, 1  ;;  %v1272_v1 = vmul.f32 %v6631_v34, %v7269_v39 }
  0xb9   : > { %v1148_v48 = vrot.slane %v1035_v43, 2  ;;  %v1149_v42 = vrot.slane %v7335_v40, 2  ;;  %v1348_v24 = vmul.f32 %v6648_v41, %v7269_v39  ;;  %v1349_v53 = vmul.f32 %v6648_v41, %v7272_v50 }
  0xba   : > { %v2416_v58 = vmax.f32 %v2384_v19, 0.0  ;;  %v1547_v0 = vadd.f32 %v1459_v9, %v1303_v59  ;;  %v905_v52 = vsel %vm862_vm0, %v903_v54, %v904_v63  ;;  %v1592_v12 = vmul.f32 %v6658_v46, %v7269_v39 }
  0xbb   : > { %v991_v5 = vadd.f32 %v905_v52, %v714_v56  ;;  %v1150_v22 = vsel %vm1107_vm1, %v1148_v48, %v1149_v42  ;;  %v1460_v45 = vrot.slane %v1348_v24, 1  ;;  %v2259_v16 = vsel %vm1107_vm1, %v2256_v49, %v2258_v6 }
  0xbc   : > { %5945 = vmatprep.mubr.f32.mxu0 %v2416_v58  ;;  %v1791_v11 = vadd.f32 %v1703_v60, %v1547_v0  ;;  %v1461_v2 = vrot.slane %v1349_v53, 1  ;;  %v1593_v38 = vmul.f32 %v6658_v46, %v7272_v50  ;;  %v1704_v13 = vrot.slane %v1592_v12, 2 }
  0xbd   : > { %v1236_v15 = vadd.f32 %v1150_v22, %v991_v5  ;;  %v1904_v62 = vmul.f32 %v6710_v14, %v7352_v23  ;;  %v1905_v55 = vmul.f32 %v6710_v14, %v7355_v17  ;;  %v2148_v60 = vmul.f32 %v7235_v31, %v7352_v23  ;;  %v7390_v5 = vld [vmem:[%s6614_s24 + $0x100] sm:$0x3] }
  0xbe   : > { %v1859_v27 = vadd.f32 %v1827_v57, %v1791_v11  ;;  %v1462_v9 = vsel %vm862_vm0, %v1460_v45, %v1461_v2  ;;  %v1705_v49 = vrot.slane %v1593_v38, 2  ;;  %v7368_v44 = vmul.f32 %v7235_v31, %v7355_v17 }
  0xbf   : > { %v1304_v47 = vadd.f32 %v1272_v1, %v1236_v15  ;;  %v2016_v8 = vrot.slane %v1904_v62, 1  ;;  %v2017_v3 = vrot.slane %v1905_v55, 1  ;;  %v1828_v54 = vmul.f32 %v6682_v61, %v7352_v23 }
  0xc0   : > { %v2103_v56 = vadd.f32 %v2015_v37, %v1859_v27  ;;  %v1706_v51 = vsel %vm1107_vm1, %v1704_v13, %v1705_v49  ;;  %v2260_v57 = vrot.slane %v2148_v60, 2  ;;  %v2261_v40 = vrot.slane %v7368_v44, 2 }
  0xc1   : > { %v1548_v43 = vadd.f32 %v1462_v9, %v1304_v47  ;;  %v715_v19 = vmul.f32 %v6617_v28, %v7188_v18  ;;  %v792_v59 = vmul.f32 %v6620_v29, %v7223_v32  ;;  %v2018_v48 = vsel %vm862_vm0, %v2016_v8, %v2017_v3 }
  0xc2   : > { %v2347_v6 = vadd.f32 %v2259_v16, %v2103_v56  ;;  %v1037_v37 = vmul.f32 %v6628_v33, %v7223_v32  ;;  %v1350_v1 = vmul.f32 %v6648_v41, %v7306_v10  ;;  %v1273_v0 = vmul.f32 %v6631_v34, %v7272_v50 }
  0xc3   : > { %v1792_v24 = vadd.f32 %v1706_v51, %v1548_v43  ;;  %v906_v58 = vrot.slane %v792_v59, 1  ;;  %v1594_v18 = vmul.f32 %v6658_v46, %v7306_v10  ;;  %v2262_v53 = vsel %vm1107_vm1, %v2260_v57, %v2261_v40 }
  0xc4   : > { %v2385_v52 = vadd.f32 %v7302_v4, %v2347_v6  ;;  %v1151_v22 = vrot.slane %v1037_v37, 2  ;;  %v1463_v45 = vrot.slane %v1350_v1, 1  ;;  %v1906_v16 = vmul.f32 %v6710_v14, %v7390_v5 }
  0xc5   : > { %v1860_v32 = vadd.f32 %v1828_v54, %v1792_v24  ;;  %v907_v12 = vsel %vm862_vm0, %v904_v63, %v906_v58  ;;  %v1707_v11 = vrot.slane %v1594_v18, 2  ;;  %v1829_v62 = vmul.f32 %v6682_v61, %v7355_v17 }
  0xc6   : > { %v2417_v38 = vmax.f32 %v2385_v52, 0.0  ;;  %v992_v15 = vadd.f32 %v907_v12, %v715_v19  ;;  %v1152_v13 = vsel %vm1107_vm1, %v1149_v42, %v1151_v22  ;;  %v1464_v27 = vsel %vm862_vm0, %v1461_v2, %v1463_v45  ;;  %v7431_v12 = vld [vmem:[%s6614_s24 + $0x108] sm:$0xff] }
  0xc7   : > { %v2104_v55 = vadd.f32 %v2018_v48, %v1860_v32  ;;  %v2019_v9 = vrot.slane %v1906_v16, 1  ;;  %v2150_v60 = vmul.f32 %v7235_v31, %v7390_v5  ;;  %v1708_v47 = vsel %vm1107_vm1, %v1705_v49, %v1707_v11  ;;  %v7434_v11 = vld [vmem:[%s6614_s24 + $0x110] sm:$0xff] }
  0xc8   : > { %5946 = vmatmul.mubr.f32.gmra.mrb[14].mxu0 %v2417_v38  ;;  %v1237_v63 = vadd.f32 %v1152_v13, %v992_v15  ;;  %v793_v8 = vmul.f32 %v6620_v29, %v7269_v39  ;;  %v7406_v42 = vmul.f32 %v6620_v29, %v7272_v50  ;;  %v716_v2 = vmul.f32 %v6617_v28, %v7269_v39 }
  0xc9   : > { %v2348_v44 = vadd.f32 %v2262_v53, %v2104_v55  ;;  %v2020_v56 = vsel %vm862_vm0, %v2017_v3, %v2019_v9  ;;  %v1038_v51 = vmul.f32 %v6628_v33, %v7269_v39  ;;  %v1039_v43 = vmul.f32 %v6628_v33, %v7272_v50 }
  0xca   : > { %v1305_v54 = vadd.f32 %v1273_v0, %v1237_v63  ;;  %v908_v57 = vrot.slane %v793_v8, 1  ;;  %v909_v49 = vrot.slane %v7406_v42, 1  ;;  %v2263_v59 = vrot.slane %v2150_v60, 2 }
  0xcb   : > { %v2386_v19 = vadd.f32 %v7302_v4, %v2348_v44  ;;  %v1153_v6 = vrot.slane %v1038_v51, 2  ;;  %v1274_v3 = vmul.f32 %v6631_v34, %v7352_v23  ;;  %v1154_v39 = vrot.slane %v1039_v43, 2 }
  0xcc   : > { %v1549_v48 = vadd.f32 %v1464_v27, %v1305_v54  ;;  %v910_v37 = vsel %vm862_vm0, %v908_v57, %v909_v49  ;;  %v1351_v1 = vmul.f32 %v6648_v41, %v7352_v23  ;;  %v1352_v0 = vmul.f32 %v6648_v41, %v7355_v17 }
  0xcd   : > { %v2418_v24 = vmax.f32 %v2386_v19, 0.0  ;;  %v993_v58 = vadd.f32 %v910_v37, %v716_v2  ;;  %v1595_v18 = vmul.f32 %v6658_v46, %v7352_v23  ;;  %v1155_v53 = vsel %vm1107_vm1, %v1153_v6, %v1154_v39 }
  0xce   : > { %v1793_v52 = vadd.f32 %v1708_v47, %v1549_v48  ;;  %v1465_v22 = vrot.slane %v1351_v1, 1  ;;  %v1596_v45 = vmul.f32 %v6658_v46, %v7355_v17  ;;  %v2264_v32 = vsel %vm1107_vm1, %v2261_v40, %v2263_v59 }
  0xcf   : > { %5948 = vmatprep.mubr.f32.mxu0 %v2418_v24  ;;  %v1238_v16 = vadd.f32 %v1155_v53, %v993_v58  ;;  %v1466_v38 = vrot.slane %v1352_v0, 1  ;;  %v1709_v15 = vrot.slane %v1595_v18, 2  ;;  %v1907_v27 = vmul.f32 %v6710_v14, %v7431_v12  ;;  %v7463_v24 = vld [vmem:[%s6614_s24 + $0x118] sm:$0x3] }
  0xd0   : > { %v1861_v13 = vadd.f32 %v1829_v62, %v1793_v52  ;;  %v1710_v55 = vrot.slane %v1596_v45, 2  ;;  %v1908_v9 = vmul.f32 %v6710_v14, %v7434_v11  ;;  %v2151_v40 = vmul.f32 %v7235_v31, %v7431_v12 }
  0xd1   : > { %v1306_v60 = vadd.f32 %v1274_v3, %v1238_v16  ;;  %v1467_v63 = vsel %vm862_vm0, %v1465_v22, %v1466_v38  ;;  %v7445_v47 = vmul.f32 %v7235_v31, %v7434_v11  ;;  %v2021_v42 = vrot.slane %v1907_v27, 1 }
  0xd2   : > { %v2105_v8 = vadd.f32 %v2020_v56, %v1861_v13  ;;  %v1711_v62 = vsel %vm1107_vm1, %v1709_v15, %v1710_v55  ;;  %v2022_v44 = vrot.slane %v1908_v9, 1  ;;  %v1830_v51 = vmul.f32 %v6682_v61, %v7431_v12 }
  0xd3   : > { %v1550_v2 = vadd.f32 %v1467_v63, %v1306_v60  ;;  %v2265_v54 = vrot.slane %v2151_v40, 2  ;;  %v2266_v57 = vrot.slane %v7445_v47, 2  ;;  %v717_v19 = vmul.f32 %v6617_v28, %v7272_v50 }
  0xd4   : > { %v2349_v43 = vadd.f32 %v2264_v32, %v2105_v8  ;;  %v795_v59 = vmul.f32 %v6620_v29, %v7306_v10  ;;  %v1040_v56 = vmul.f32 %v6628_v33, %v7306_v10  ;;  %v2023_v3 = vsel %vm862_vm0, %v2021_v42, %v2022_v44 }
  0xd5   : > { %v1794_v6 = vadd.f32 %v1711_v62, %v1550_v2  ;;  %v2267_v48 = vsel %vm1107_vm1, %v2265_v54, %v2266_v57  ;;  %v1353_v37 = vmul.f32 %v6648_v41, %v7390_v5  ;;  %v1597_v0 = vmul.f32 %v6658_v46, %v7390_v5 }
  0xd6   : > { %v2387_v1 = vadd.f32 %v7302_v4, %v2349_v43  ;;  %v911_v58 = vrot.slane %v795_v59, 1  ;;  %v1156_v50 = vrot.slane %v1040_v56, 2  ;;  %v1275_v10 = vmul.f32 %v6631_v34, %v7355_v17 }
  0xd7   : > { %v1862_v18 = vadd.f32 %v1830_v51, %v1794_v6  ;;  %v1468_v52 = vrot.slane %v1353_v37, 1  ;;  %v1909_v53 = vmul.f32 %v6710_v14, %v7463_v24  ;;  %v1712_v16 = vrot.slane %v1597_v0, 2 }
  0xd8   : > { %v2419_v22 = vmax.f32 %v2387_v1, 0.0  ;;  %v912_v45 = vsel %vm862_vm0, %v909_v49, %v911_v58  ;;  %v1157_v32 = vsel %vm1107_vm1, %v1154_v39, %v1156_v50  ;;  %v1831_v27 = vmul.f32 %v6682_v61, %v7434_v11 }
  0xd9   : > { %v2106_v15 = vadd.f32 %v2023_v3, %v1862_v18  ;;  %v994_v13 = vadd.f32 %v912_v45, %v717_v19  ;;  %v2024_v9 = vrot.slane %v1909_v53, 1  ;;  %v1469_v60 = vsel %vm862_vm0, %v1466_v38, %v1468_v52  ;;  %v7509_v52 = vld [vmem:[%s6614_s24 + $0x120] sm:$0xff]  ;;  %v7512_v53 = vld [vmem:[%s6614_s24 + $0x128] sm:$0xff] }
  0xda   : > { %5949 = vmatmul.mubr.f32.gmra.mrb[16].mxu0 %v2419_v22  ;;  %v1713_v63 = vsel %vm1107_vm1, %v1710_v55, %v1712_v16  ;;  %v2153_v40 = vmul.f32 %v7235_v31, %v7463_v24  ;;  %v796_v49 = vmul.f32 %v6620_v29, %v7352_v23  ;;  %v718_v8 = vmul.f32 %v6617_v28, %v7352_v23 }
  0xdb   : > { %v2350_v47 = vadd.f32 %v2267_v48, %v2106_v15  ;;  %v1239_v39 = vadd.f32 %v1157_v32, %v994_v13  ;;  %v7485_v62 = vmul.f32 %v6620_v29, %v7355_v17  ;;  %v2025_v42 = vsel %vm862_vm0, %v2022_v44, %v2024_v9 }
  0xdc   : > { %v913_v38 = vrot.slane %v796_v49, 1  ;;  %v1041_v55 = vmul.f32 %v6628_v33, %v7352_v23  ;;  %v7492_v2 = vmul.f32 %v6628_v33, %v7355_v17  ;;  %v2268_v43 = vrot.slane %v2153_v40, 2 }
  0xdd   : > { %v2388_v51 = vadd.f32 %v7302_v4, %v2350_v47  ;;  %v1307_v54 = vadd.f32 %v1275_v10, %v1239_v39  ;;  %v914_v19 = vrot.slane %v7485_v62, 1  ;;  %v1276_v44 = vmul.f32 %v6631_v34, %v7431_v12 }
  0xde   : > { %v1158_v59 = vrot.slane %v1041_v55, 2  ;;  %v1159_v56 = vrot.slane %v7492_v2, 2  ;;  %v1354_v23 = vmul.f32 %v6648_v41, %v7431_v12  ;;  %v1355_v37 = vmul.f32 %v6648_v41, %v7434_v11 }
  0xdf   : > { %v2420_v6 = vmax.f32 %v2388_v51, 0.0  ;;  %v1551_v3 = vadd.f32 %v1469_v60, %v1307_v54  ;;  %v915_v48 = vsel %vm862_vm0, %v913_v38, %v914_v19  ;;  %v1598_v0 = vmul.f32 %v6658_v46, %v7431_v12 }
  0xe0   : > { %v995_v1 = vadd.f32 %v915_v48, %v718_v8  ;;  %v1160_v58 = vsel %vm1107_vm1, %v1158_v59, %v1159_v56  ;;  %v1470_v50 = vrot.slane %v1354_v23, 1  ;;  %v2269_v10 = vsel %vm1107_vm1, %v2266_v57, %v2268_v43 }
  0xe1   : > { %5951 = vmatprep.mubr.f32.mxu0 %v2420_v6  ;;  %v1795_v18 = vadd.f32 %v1713_v63, %v1551_v3  ;;  %v1471_v22 = vrot.slane %v1355_v37, 1  ;;  %v1599_v45 = vmul.f32 %v6658_v46, %v7434_v11  ;;  %v1714_v16 = vrot.slane %v1598_v0, 2 }
  0xe2   : > { %v1240_v32 = vadd.f32 %v1160_v58, %v995_v1  ;;  %v1910_v15 = vmul.f32 %v6710_v14, %v7509_v52  ;;  %v1911_v13 = vmul.f32 %v6710_v14, %v7512_v53  ;;  %v2154_v63 = vmul.f32 %v7235_v31, %v7509_v52  ;;  %v7547_v1 = vld [vmem:[%s6614_s24 + $0x130] sm:$0x3] }
  0xe3   : > { %v1863_v9 = vadd.f32 %v1831_v27, %v1795_v18  ;;  %v1472_v60 = vsel %vm862_vm0, %v1470_v50, %v1471_v22  ;;  %v1715_v57 = vrot.slane %v1599_v45, 2  ;;  %v7525_v39 = vmul.f32 %v7235_v31, %v7512_v53 }
  0xe4   : > { %v1308_v40 = vadd.f32 %v1276_v44, %v1240_v32  ;;  %v2026_v49 = vrot.slane %v1910_v15, 1  ;;  %v2027_v47 = vrot.slane %v1911_v13, 1  ;;  %v1832_v38 = vmul.f32 %v6682_v61, %v7509_v52 }
  0xe5   : > { %v2107_v8 = vadd.f32 %v2025_v42, %v1863_v9  ;;  %v1716_v62 = vsel %vm1107_vm1, %v1714_v16, %v1715_v57  ;;  %v2270_v27 = vrot.slane %v2154_v63, 2  ;;  %v2271_v2 = vrot.slane %v7525_v39, 2 }
  0xe6   : > { %v1552_v55 = vadd.f32 %v1472_v60, %v1308_v40  ;;  %v719_v51 = vmul.f32 %v6617_v28, %v7355_v17  ;;  %v798_v54 = vmul.f32 %v6620_v29, %v7390_v5  ;;  %v2028_v59 = vsel %vm862_vm0, %v2026_v49, %v2027_v47 }
  0xe7   : > { %v2351_v43 = vadd.f32 %v2269_v10, %v2107_v8  ;;  %v1043_v42 = vmul.f32 %v6628_v33, %v7390_v5  ;;  %v1356_v44 = vmul.f32 %v6648_v41, %v7463_v24  ;;  %v1277_v3 = vmul.f32 %v6631_v34, %v7434_v11 }
  0xe8   : > { %v1796_v23 = vadd.f32 %v1716_v62, %v1552_v55  ;;  %v916_v6 = vrot.slane %v798_v54, 1  ;;  %v1600_v17 = vmul.f32 %v6658_v46, %v7463_v24  ;;  %v2272_v37 = vsel %vm1107_vm1, %v2270_v27, %v2271_v2 }
  0xe9   : > { %v2389_v48 = vadd.f32 %v7302_v4, %v2351_v43  ;;  %v1161_v58 = vrot.slane %v1043_v42, 2  ;;  %v1473_v50 = vrot.slane %v1356_v44, 1  ;;  %v1912_v10 = vmul.f32 %v6710_v14, %v7547_v1 }
  0xea   : > { %v1864_v5 = vadd.f32 %v1832_v38, %v1796_v23  ;;  %v917_v0 = vsel %vm862_vm0, %v914_v19, %v916_v6  ;;  %v1717_v18 = vrot.slane %v1600_v17, 2  ;;  %v1833_v15 = vmul.f32 %v6682_v61, %v7512_v53 }
  0xeb   : > { %v2421_v45 = vmax.f32 %v2389_v48, 0.0  ;;  %v996_v32 = vadd.f32 %v917_v0, %v719_v51  ;;  %v1162_v16 = vsel %vm1107_vm1, %v1159_v56, %v1161_v58  ;;  %v1474_v9 = vsel %vm862_vm0, %v1471_v22, %v1473_v50  ;;  %v7588_v0 = vld [vmem:[%s6614_s24 + $0x138] sm:$0xff] }
  0xec   : > { %v2108_v13 = vadd.f32 %v2028_v59, %v1864_v5  ;;  %v2029_v60 = vrot.slane %v1912_v10, 1  ;;  %v2156_v63 = vmul.f32 %v7235_v31, %v7547_v1  ;;  %v1718_v40 = vsel %vm1107_vm1, %v1715_v57, %v1717_v18  ;;  %v7591_v18 = vld [vmem:[%s6614_s24 + $0x140] sm:$0xff] }
  0xed   : > { %5952 = vmatmul.mubr.f32.gmra.mrb[18].mxu0 %v2421_v45  ;;  %v1241_v19 = vadd.f32 %v1162_v16, %v996_v32  ;;  %v799_v49 = vmul.f32 %v6620_v29, %v7431_v12  ;;  %v7563_v56 = vmul.f32 %v6620_v29, %v7434_v11  ;;  %v720_v22 = vmul.f32 %v6617_v28, %v7431_v12 }
  0xee   : > { %v2352_v39 = vadd.f32 %v2272_v37, %v2108_v13  ;;  %v2030_v8 = vsel %vm862_vm0, %v2027_v47, %v2029_v60  ;;  %v1044_v62 = vmul.f32 %v6628_v33, %v7431_v12  ;;  %v1045_v55 = vmul.f32 %v6628_v33, %v7434_v11 }
  0xef   : > { %v1309_v38 = vadd.f32 %v1277_v3, %v1241_v19  ;;  %v918_v27 = vrot.slane %v799_v49, 1  ;;  %v919_v57 = vrot.slane %v7563_v56, 1  ;;  %v2273_v54 = vrot.slane %v2156_v63, 2 }
  0xf0   : > { %v2390_v51 = vadd.f32 %v7302_v4, %v2352_v39  ;;  %v1163_v43 = vrot.slane %v1044_v62, 2  ;;  %v1278_v47 = vmul.f32 %v6631_v34, %v7509_v52  ;;  %v1164_v12 = vrot.slane %v1045_v55, 2 }
  0xf1   : > { %v1553_v59 = vadd.f32 %v1474_v9, %v1309_v38  ;;  %v920_v42 = vsel %vm862_vm0, %v918_v27, %v919_v57  ;;  %v1357_v44 = vmul.f32 %v6648_v41, %v7509_v52  ;;  %v1358_v3 = vmul.f32 %v6648_v41, %v7512_v53 }
  0xf2   : > { %v2422_v23 = vmax.f32 %v2390_v51, 0.0  ;;  %v997_v6 = vadd.f32 %v920_v42, %v720_v22  ;;  %v1601_v17 = vmul.f32 %v6658_v46, %v7509_v52  ;;  %v1165_v37 = vsel %vm1107_vm1, %v1163_v43, %v1164_v12 }
  0xf3   : > { %v1797_v48 = vadd.f32 %v1718_v40, %v1553_v59  ;;  %v1475_v58 = vrot.slane %v1357_v44, 1  ;;  %v1602_v50 = vmul.f32 %v6658_v46, %v7512_v53  ;;  %v2274_v5 = vsel %vm1107_vm1, %v2271_v2, %v2273_v54 }
  0xf4   : > { %5954 = vmatprep.mubr.f32.mxu0 %v2422_v23  ;;  %v1242_v10 = vadd.f32 %v1165_v37, %v997_v6  ;;  %v1476_v45 = vrot.slane %v1358_v3, 1  ;;  %v1719_v32 = vrot.slane %v1601_v17, 2  ;;  %v1913_v9 = vmul.f32 %v6710_v14, %v7588_v0  ;;  %v7620_v23 = vld [vmem:[%s6614_s24 + $0x148] sm:$0x3] }
  0xf5   : > { %v1865_v16 = vadd.f32 %v1833_v15, %v1797_v48  ;;  %v1720_v13 = vrot.slane %v1602_v50, 2  ;;  %v1914_v60 = vmul.f32 %v6710_v14, %v7591_v18  ;;  %v2157_v2 = vmul.f32 %v7235_v31, %v7588_v0 }
  0xf6   : > { %v1310_v63 = vadd.f32 %v1278_v47, %v1242_v10  ;;  %v1477_v19 = vsel %vm862_vm0, %v1475_v58, %v1476_v45  ;;  %v7602_v40 = vmul.f32 %v7235_v31, %v7591_v18  ;;  %v2031_v56 = vrot.slane %v1913_v9, 1 }
  0xf7   : > { %v2109_v49 = vadd.f32 %v2030_v8, %v1865_v16  ;;  %v1721_v15 = vsel %vm1107_vm1, %v1719_v32, %v1720_v13  ;;  %v2032_v39 = vrot.slane %v1914_v60, 1  ;;  %v1834_v62 = vmul.f32 %v6682_v61, %v7588_v0 }
  0xf8   : > { %v1554_v22 = vadd.f32 %v1477_v19, %v1310_v63  ;;  %v2275_v38 = vrot.slane %v2157_v2, 2  ;;  %v2276_v27 = vrot.slane %v7602_v40, 2  ;;  %v721_v51 = vmul.f32 %v6617_v28, %v7434_v11 }
  0xf9   : > { %v2353_v55 = vadd.f32 %v2274_v5, %v2109_v49  ;;  %v801_v54 = vmul.f32 %v6620_v29, %v7463_v24  ;;  %v1046_v8 = vmul.f32 %v6628_v33, %v7463_v24  ;;  %v2033_v47 = vsel %vm862_vm0, %v2031_v56, %v2032_v39 }
  0xfa   : > { %v1798_v43 = vadd.f32 %v1721_v15, %v1554_v22  ;;  %v2277_v59 = vsel %vm1107_vm1, %v2275_v38, %v2276_v27  ;;  %v1359_v42 = vmul.f32 %v6648_v41, %v7547_v1  ;;  %v1603_v3 = vmul.f32 %v6658_v46, %v7547_v1 }
  0xfb   : > { %v2391_v44 = vadd.f32 %v7302_v4, %v2353_v55  ;;  %v921_v6 = vrot.slane %v801_v54, 1  ;;  %v1166_v11 = vrot.slane %v1046_v8, 2  ;;  %v1279_v24 = vmul.f32 %v6631_v34, %v7512_v53 }
  0xfc   : > { %v1866_v17 = vadd.f32 %v1834_v62, %v1798_v43  ;;  %v1478_v48 = vrot.slane %v1359_v42, 1  ;;  %v1915_v37 = vmul.f32 %v6710_v14, %v7620_v23  ;;  %v1722_v10 = vrot.slane %v1603_v3, 2 }
  0xfd   : > { %v2423_v58 = vmax.f32 %v2391_v44, 0.0  ;;  %v922_v50 = vsel %vm862_vm0, %v919_v57, %v921_v6  ;;  %v1167_v5 = vsel %vm1107_vm1, %v1164_v12, %v1166_v11  ;;  %v1835_v9 = vmul.f32 %v6682_v61, %v7591_v18 }
  0xfe   : > { %v2110_v32 = vadd.f32 %v2033_v47, %v1866_v17  ;;  %v998_v16 = vadd.f32 %v922_v50, %v721_v51  ;;  %v2034_v60 = vrot.slane %v1915_v37, 1  ;;  %v1479_v63 = vsel %vm862_vm0, %v1476_v45, %v1478_v48  ;;  %v7666_v48 = vld [vmem:[%s6614_s24 + $0x150] sm:$0xff]  ;;  %v7669_v37 = vld [vmem:[%s6614_s24 + $0x158] sm:$0xff] }
  0xff   : > { %5955 = vmatmul.mubr.f32.gmra.mrb[20].mxu0 %v2423_v58  ;;  %v1723_v19 = vsel %vm1107_vm1, %v1720_v13, %v1722_v10  ;;  %v2159_v2 = vmul.f32 %v7235_v31, %v7620_v23  ;;  %v802_v57 = vmul.f32 %v6620_v29, %v7509_v52  ;;  %v722_v49 = vmul.f32 %v6617_v28, %v7509_v52 }
 0x100   : > { %v2354_v40 = vadd.f32 %v2277_v59, %v2110_v32  ;;  %v1243_v12 = vadd.f32 %v1167_v5, %v998_v16  ;;  %v7642_v15 = vmul.f32 %v6620_v29, %v7512_v53  ;;  %v2035_v56 = vsel %vm862_vm0, %v2032_v39, %v2034_v60 }
 0x101   : > { %v923_v45 = vrot.slane %v802_v57, 1  ;;  %v1047_v13 = vmul.f32 %v6628_v33, %v7509_v52  ;;  %v7649_v22 = vmul.f32 %v6628_v33, %v7512_v53  ;;  %v2278_v55 = vrot.slane %v2159_v2, 2 }
 0x102   : > { %v2392_v62 = vadd.f32 %v7302_v4, %v2354_v40  ;;  %v1311_v38 = vadd.f32 %v1279_v24, %v1243_v12  ;;  %v924_v51 = vrot.slane %v7642_v15, 1  ;;  %v1280_v39 = vmul.f32 %v6631_v34, %v7588_v0 }
 0x103   : > { %v1168_v54 = vrot.slane %v1047_v13, 2  ;;  %v1169_v8 = vrot.slane %v7649_v22, 2  ;;  %v1360_v52 = vmul.f32 %v6648_v41, %v7588_v0  ;;  %v1361_v42 = vmul.f32 %v6648_v41, %v7591_v18 }
 0x104   : > { %v2424_v43 = vmax.f32 %v2392_v62, 0.0  ;;  %v1555_v47 = vadd.f32 %v1479_v63, %v1311_v38  ;;  %v925_v59 = vsel %vm862_vm0, %v923_v45, %v924_v51  ;;  %v1604_v3 = vmul.f32 %v6658_v46, %v7588_v0 }
 0x105   : > { %v999_v44 = vadd.f32 %v925_v59, %v722_v49  ;;  %v1170_v6 = vsel %vm1107_vm1, %v1168_v54, %v1169_v8  ;;  %v1480_v11 = vrot.slane %v1360_v52, 1  ;;  %v2279_v24 = vsel %vm1107_vm1, %v2276_v27, %v2278_v55 }
 0x106   : > { %5957 = vmatprep.mubr.f32.mxu0 %v2424_v43  ;;  %v1799_v17 = vadd.f32 %v1723_v19, %v1555_v47  ;;  %v1481_v58 = vrot.slane %v1361_v42, 1  ;;  %v1605_v50 = vmul.f32 %v6658_v46, %v7591_v18  ;;  %v1724_v10 = vrot.slane %v1604_v3, 2 }
 0x107   : > { %v1244_v5 = vadd.f32 %v1170_v6, %v999_v44  ;;  %v1916_v32 = vmul.f32 %v6710_v14, %v7666_v48  ;;  %v1917_v16 = vmul.f32 %v6710_v14, %v7669_v37  ;;  %v2160_v19 = vmul.f32 %v7235_v31, %v7666_v48  ;;  %v7704_v44 = vld [vmem:[%s6614_s24 + $0x160] sm:$0x3] }
 0x108   : > { %v1867_v60 = vadd.f32 %v1835_v9, %v1799_v17  ;;  %v1482_v63 = vsel %vm862_vm0, %v1480_v11, %v1481_v58  ;;  %v1725_v27 = vrot.slane %v1605_v50, 2  ;;  %v7682_v12 = vmul.f32 %v7235_v31, %v7669_v37 }
 0x109   : > { %v1312_v2 = vadd.f32 %v1280_v39, %v1244_v5  ;;  %v2036_v57 = vrot.slane %v1916_v32, 1  ;;  %v2037_v40 = vrot.slane %v1917_v16, 1  ;;  %v1836_v45 = vmul.f32 %v6682_v61, %v7666_v48 }
 0x10a   : > { %v2111_v49 = vadd.f32 %v2035_v56, %v1867_v60  ;;  %v1726_v15 = vsel %vm1107_vm1, %v1724_v10, %v1725_v27  ;;  %v2280_v9 = vrot.slane %v2160_v19, 2  ;;  %v2281_v22 = vrot.slane %v7682_v12, 2 }
 0x10b   : > { %v1556_v13 = vadd.f32 %v1482_v63, %v1312_v2  ;;  %v723_v62 = vmul.f32 %v6617_v28, %v7512_v53  ;;  %v804_v38 = vmul.f32 %v6620_v29, %v7547_v1  ;;  %v2038_v54 = vsel %vm862_vm0, %v2036_v57, %v2037_v40 }
 0x10c   : > { %v2355_v55 = vadd.f32 %v2279_v24, %v2111_v49  ;;  %v1049_v56 = vmul.f32 %v6628_v33, %v7547_v1  ;;  %v1362_v39 = vmul.f32 %v6648_v41, %v7620_v23  ;;  %v1281_v47 = vmul.f32 %v6631_v34, %v7591_v18 }
 0x10d   : > { %v1800_v52 = vadd.f32 %v1726_v15, %v1556_v13  ;;  %v926_v43 = vrot.slane %v804_v38, 1  ;;  %v1606_v53 = vmul.f32 %v6658_v46, %v7620_v23  ;;  %v2282_v42 = vsel %vm1107_vm1, %v2280_v9, %v2281_v22 }
 0x10e   : > { %v2393_v59 = vadd.f32 %v7302_v4, %v2355_v55  ;;  %v1171_v6 = vrot.slane %v1049_v56, 2  ;;  %v1483_v11 = vrot.slane %v1362_v39, 1  ;;  %v1918_v24 = vmul.f32 %v6710_v14, %v7704_v44 }
 0x10f   : > { %v1868_v1 = vadd.f32 %v1836_v45, %v1800_v52  ;;  %v927_v3 = vsel %vm862_vm0, %v924_v51, %v926_v43  ;;  %v1727_v17 = vrot.slane %v1606_v53, 2  ;;  %v1837_v32 = vmul.f32 %v6682_v61, %v7669_v37 }
 0x110   : > { %v2425_v50 = vmax.f32 %v2393_v59, 0.0  ;;  %v1000_v5 = vadd.f32 %v927_v3, %v723_v62  ;;  %v1172_v10 = vsel %vm1107_vm1, %v1169_v8, %v1171_v6  ;;  %v1484_v60 = vsel %vm862_vm0, %v1481_v58, %v1483_v11  ;;  %v7752_v3 = vld [vmem:[%s6614_s24 + $0x168] sm:$0xff] }
 0x111   : > { %v2112_v16 = vadd.f32 %v2038_v54, %v1868_v1  ;;  %v2039_v63 = vrot.slane %v1918_v24, 1  ;;  %v2162_v19 = vmul.f32 %v7235_v31, %v7704_v44  ;;  %v1728_v2 = vsel %vm1107_vm1, %v1725_v27, %v1727_v17  ;;  %v7755_v17 = vld [vmem:[%s6614_s24 + $0x170] sm:$0xff] }
 0x112   : > { %5958 = vmatmul.mubr.f32.gmra.mrb[22].mxu0 %v2425_v50  ;;  %v1245_v51 = vadd.f32 %v1172_v10, %v1000_v5  ;;  %v805_v57 = vmul.f32 %v6620_v29, %v7588_v0  ;;  %v7720_v8 = vmul.f32 %v6620_v29, %v7591_v18  ;;  %v724_v58 = vmul.f32 %v6617_v28, %v7588_v0 }
 0x113   : > { %v2356_v12 = vadd.f32 %v2282_v42, %v2112_v16  ;;  %v2040_v49 = vsel %vm862_vm0, %v2037_v40, %v2039_v63  ;;  %v1050_v31 = vmul.f32 %v6628_v33, %v7588_v0  ;;  %v7730_v9 = vmul.f32 %v6628_v33, %v7591_v18 }
 0x114   : > { %v1313_v15 = vadd.f32 %v1281_v47, %v1245_v51  ;;  %v928_v45 = vrot.slane %v805_v57, 1  ;;  %v929_v27 = vrot.slane %v7720_v8, 1  ;;  %v2283_v62 = vrot.slane %v2162_v19, 2 }
 0x115   : > { %v2394_v13 = vadd.f32 %v7302_v4, %v2356_v12  ;;  %v1173_v38 = vrot.slane %v1050_v31, 2  ;;  %v1282_v40 = vmul.f32 %v6631_v34, %v7666_v48  ;;  %v1174_v54 = vrot.slane %v7730_v9, 2 }
 0x116   : > { %v1557_v55 = vadd.f32 %v1484_v60, %v1313_v15  ;;  %v930_v0 = vsel %vm862_vm0, %v928_v45, %v929_v27  ;;  %v1363_v56 = vmul.f32 %v6648_v41, %v7666_v48  ;;  %v1364_v43 = vmul.f32 %v6648_v41, %v7669_v37 }
 0x117   : > { %v2426_v39 = vmax.f32 %v2394_v13, 0.0  ;;  %v1001_v52 = vadd.f32 %v930_v0, %v724_v58  ;;  %v1607_v47 = vmul.f32 %v6658_v46, %v7666_v48  ;;  %v1175_v59 = vsel %vm1107_vm1, %v1173_v38, %v1174_v54 }
 0x118   : > { %v1801_v53 = vadd.f32 %v1728_v2, %v1557_v55  ;;  %v1485_v42 = vrot.slane %v1363_v56, 1  ;;  %v1608_v6 = vmul.f32 %v6658_v46, %v7669_v37  ;;  %v7748_v11 = vpop.f32.mrb[0].mxu0  ;;  %v2284_v1 = vsel %vm1107_vm1, %v2281_v22, %v2283_v62  ;;  %v7767_v2 = vld [vmem:[%s9946_s22 + $0x8] ss:$0 sm:$0xff] }
 0x119   : > { %5960 = vmatprep.mubr.f32.mxu0 %v2426_v39  ;;  %v1246_v24 = vadd.f32 %v1175_v59, %v1001_v52  ;;  %v1486_v50 = vrot.slane %v1364_v43, 1  ;;  %v1729_v5 = vrot.slane %v1607_v47, 2  ;;  %v7757_v10 = vpop.f32.mrb[1].mxu0  ;;  %v1919_v63 = vmul.f32 %v6710_v14, %v7752_v3  ;;  %v7791_v47 = vld [vmem:[%s6614_s24 + $0x178] sm:$0x3] }
 0x11a   : > { %v1869_v16 = vadd.f32 %v1837_v32, %v1801_v53  ;;  %v1730_v60 = vrot.slane %v1608_v6, 2  ;;  %v1920_v19 = vmul.f32 %v6710_v14, %v7755_v17  ;;  %v2163_v57 = vmul.f32 %v7767_v2, %v7752_v3 }
 0x11b   : > { %v1314_v51 = vadd.f32 %v1282_v40, %v1246_v24  ;;  %v1487_v22 = vsel %vm862_vm0, %v1485_v42, %v1486_v50  ;;  %v7773_v32 = vmul.f32 %v7767_v2, %v7755_v17  ;;  %v2041_v31 = vrot.slane %v1919_v63, 1 }
 0x11c   : > { %v2113_v12 = vadd.f32 %v2040_v49, %v1869_v16  ;;  %v1731_v58 = vsel %vm1107_vm1, %v1729_v5, %v1730_v60  ;;  %v2042_v15 = vrot.slane %v1920_v19, 1  ;;  %v1838_v9 = vmul.f32 %v6682_v61, %v7752_v3 }
 0x11d   : > { %v1558_v45 = vadd.f32 %v1487_v22, %v1314_v51  ;;  %v2285_v13 = vrot.slane %v2163_v57, 2  ;;  %v2286_v62 = vrot.slane %v7773_v32, 2  ;;  %v725_v40 = vmul.f32 %v6617_v28, %v7591_v18 }
 0x11e   : > { %v2357_v38 = vadd.f32 %v2284_v1, %v2113_v12  ;;  %v807_v55 = vmul.f32 %v6620_v29, %v7620_v23  ;;  %v1052_v49 = vmul.f32 %v6628_v33, %v7620_v23  ;;  %v2043_v56 = vsel %vm862_vm0, %v2041_v31, %v2042_v15 }
 0x11f   : > { %v1802_v0 = vadd.f32 %v1731_v58, %v1558_v45  ;;  %v2287_v39 = vsel %vm1107_vm1, %v2285_v13, %v2286_v62  ;;  %v1365_v52 = vmul.f32 %v6648_v41, %v7704_v44  ;;  %v1609_v59 = vmul.f32 %v6658_v46, %v7704_v44 }
 0x120   : > { %v2395_v43 = vadd.f32 %v7302_v4, %v2357_v38  ;;  %v931_v53 = vrot.slane %v807_v55, 1  ;;  %v1176_v18 = vrot.slane %v1052_v49, 2  ;;  %v1283_v23 = vmul.f32 %v6631_v34, %v7669_v37 }
 0x121   : > { %v1870_v42 = vadd.f32 %v1838_v9, %v1802_v0  ;;  %v1488_v6 = vrot.slane %v1365_v52, 1  ;;  %v1921_v1 = vmul.f32 %v6710_v14, %v7791_v47  ;;  %v1732_v63 = vrot.slane %v1609_v59, 2 }
 0x122   : > { %v2427_v24 = vmax.f32 %v2395_v43, 0.0  ;;  %v932_v5 = vsel %vm862_vm0, %v929_v27, %v931_v53  ;;  %v1177_v16 = vsel %vm1107_vm1, %v1174_v54, %v1176_v18  ;;  %v1839_v22 = vmul.f32 %v6682_v61, %v7755_v17  ;;  %v7832_v43 = vld [vmem:[%s6614_s24 + $0x180] sm:$0xff]  ;;  %v7835_v53 = vld [vmem:[%s6614_s24 + $0x188] sm:$0xff] }
 0x123   : > { %v2114_v19 = vadd.f32 %v2043_v56, %v1870_v42  ;;  %v1002_v51 = vadd.f32 %v932_v5, %v725_v40  ;;  %v2044_v57 = vrot.slane %v1921_v1, 1  ;;  %v1489_v32 = vsel %vm862_vm0, %v1486_v50, %v1488_v6 }
 0x124   : > { %5961 = vmatmul.mubr.f32.gmra.mrb[24].mxu0 %v2427_v24  ;;  %v1733_v12 = vsel %vm1107_vm1, %v1730_v60, %v1732_v63  ;;  %v2165_v58 = vmul.f32 %v7767_v2, %v7791_v47  ;;  %v808_v8 = vmul.f32 %v6620_v29, %v7666_v48  ;;  %v726_v31 = vmul.f32 %v6617_v28, %v7666_v48 }
 0x125   : > { %v2358_v27 = vadd.f32 %v2287_v39, %v2114_v19  ;;  %v1247_v54 = vadd.f32 %v1177_v16, %v1002_v51  ;;  %v7815_v45 = vmul.f32 %v6620_v29, %v7669_v37  ;;  %v2045_v50 = vsel %vm862_vm0, %v2042_v15, %v2044_v57 }
 0x126   : > { %v933_v60 = vrot.slane %v808_v8, 1  ;;  %v1053_v9 = vmul.f32 %v6628_v33, %v7666_v48  ;;  %v7822_v13 = vmul.f32 %v6628_v33, %v7669_v37  ;;  %v2288_v55 = vrot.slane %v2165_v58, 2 }
 0x127   : > { %v2396_v38 = vadd.f32 %v7302_v4, %v2358_v27  ;;  %v1315_v40 = vadd.f32 %v1283_v23, %v1247_v54  ;;  %v934_v49 = vrot.slane %v7815_v45, 1  ;;  %v1284_v15 = vmul.f32 %v6631_v34, %v7752_v3 }
 0x128   : > { %v1178_v0 = vrot.slane %v1053_v9, 2  ;;  %v1179_v56 = vrot.slane %v7822_v13, 2  ;;  %v1366_v39 = vmul.f32 %v6648_v41, %v7752_v3  ;;  %v1367_v18 = vmul.f32 %v6648_v41, %v7755_v17 }
 0x129   : > { %v2428_v48 = vmax.f32 %v2396_v38, 0.0  ;;  %v1559_v52 = vadd.f32 %v1489_v32, %v1315_v40  ;;  %v935_v4 = vsel %vm862_vm0, %v933_v60, %v934_v49  ;;  %v1610_v6 = vmul.f32 %v6658_v46, %v7752_v3 }
 0x12a   : > { %v1003_v59 = vadd.f32 %v935_v4, %v726_v31  ;;  %v1180_v42 = vsel %vm1107_vm1, %v1178_v0, %v1179_v56  ;;  %v1490_v23 = vrot.slane %v1366_v39, 1  ;;  %v2289_v24 = vsel %vm1107_vm1, %v2286_v62, %v2288_v55 }
 0x12b   : > { %5963 = vmatprep.mubr.f32.mxu0 %v2428_v48  ;;  %v1803_v1 = vadd.f32 %v1733_v12, %v1559_v52  ;;  %v1491_v5 = vrot.slane %v1367_v18, 1  ;;  %v1611_v16 = vmul.f32 %v6658_v46, %v7755_v17  ;;  %v1734_v19 = vrot.slane %v1610_v6, 2  ;;  %v7871_v52 = vld [vmem:[%s6614_s24 + $0x190] sm:$0x3] }
 0x12c   : > { %v1248_v63 = vadd.f32 %v1180_v42, %v1003_v59  ;;  %v1922_v51 = vmul.f32 %v6710_v14, %v7832_v43  ;;  %v1923_v57 = vmul.f32 %v6710_v14, %v7835_v53  ;;  %v7850_v32 = vpop.f32.mrb[2].mxu0  ;;  %v2166_v62 = vmul.f32 %v7767_v2, %v7832_v43 }
 0x12d   : > { %v1871_v58 = vadd.f32 %v1839_v22, %v1803_v1  ;;  %v1492_v8 = vsel %vm862_vm0, %v1490_v23, %v1491_v5  ;;  %v1735_v12 = vrot.slane %v1611_v16, 2  ;;  %v7855_v27 = vpop.f32.mrb[3].mxu0  ;;  %v7859_v60 = vmul.f32 %v7767_v2, %v7835_v53  ;;  %v7884_v23 = vld [vmem:[%s9951_s2] ss:$0 sm:$0xff]  ;;  %s6342_s2 = scalar_lea.vmem %s6341_s29, 32 }
 0x12e   : > { %v1316_v54 = vadd.f32 %v1284_v15, %v1248_v63  ;;  %v2046_v31 = vrot.slane %v1922_v51, 1  ;;  %v2047_v45 = vrot.slane %v1923_v57, 1  ;;  %v1840_v22 = vmul.f32 %v6682_v61, %v7832_v43 }
 0x12f   : > { %v2115_v9 = vadd.f32 %v2045_v50, %v1871_v58  ;;  %v1736_v13 = vsel %vm1107_vm1, %v1734_v19, %v1735_v12  ;;  %v2290_v38 = vrot.slane %v2166_v62, 2  ;;  %v2291_v55 = vrot.slane %v7859_v60, 2 }
 0x130   : > { %v1560_v40 = vadd.f32 %v1492_v8, %v1316_v54  ;;  %v727_v0 = vmul.f32 %v6617_v28, %v7669_v37  ;;  %v810_v15 = vmul.f32 %v6620_v29, %v7704_v44  ;;  %v2048_v48 = vsel %vm862_vm0, %v2046_v31, %v2047_v45 }
 0x131   : > { %v2359_v39 = vadd.f32 %v2289_v24, %v2115_v9  ;;  %v1055_v50 = vmul.f32 %v6628_v33, %v7704_v44  ;;  %v1368_v4 = vmul.f32 %v6648_v41, %v7791_v47  ;;  %v1285_v42 = vmul.f32 %v6631_v34, %v7755_v17 }
 0x132   : > { %v1804_v18 = vadd.f32 %v1736_v13, %v1560_v40  ;;  %v936_v59 = vrot.slane %v810_v15, 1  ;;  %v1612_v37 = vmul.f32 %v6658_v46, %v7791_v47  ;;  %v2292_v44 = vsel %vm1107_vm1, %v2290_v38, %v2291_v55 }
 0x133   : > { %v2397_v6 = vadd.f32 %v7884_v23, %v2359_v39  ;;  %v1181_v1 = vrot.slane %v1055_v50, 2  ;;  %v1493_v24 = vrot.slane %v1368_v4, 1  ;;  %v1924_v51 = vmul.f32 %v6710_v14, %v7871_v52 }
 0x134   : > { %v1872_v16 = vadd.f32 %v1840_v22, %v1804_v18  ;;  %v937_v63 = vsel %vm862_vm0, %v934_v49, %v936_v59  ;;  %v1737_v19 = vrot.slane %v1612_v37, 2  ;;  %v1841_v62 = vmul.f32 %v6682_v61, %v7835_v53 }
 0x135   : > { %v2429_v57 = vmax.f32 %v2397_v6, 0.0  ;;  %v1004_v58 = vadd.f32 %v937_v63, %v727_v0  ;;  %v1182_v8 = vsel %vm1107_vm1, %v1179_v56, %v1181_v1  ;;  %v1494_v31 = vsel %vm862_vm0, %v1491_v5, %v1493_v24  ;;  %v7923_v1 = vld [vmem:[%s6614_s24 + $0x1a0] sm:$0xff] }
 0x136   : > { %v2116_v54 = vadd.f32 %v2048_v48, %v1872_v16  ;;  %v2049_v60 = vrot.slane %v1924_v51, 1  ;;  %v2168_v9 = vmul.f32 %v7767_v2, %v7871_v52  ;;  %v1738_v13 = vsel %vm1107_vm1, %v1735_v12, %v1737_v19 }
 0x137   : > { %5964 = vmatmul.mubr.f32.gmra.mrb[26].mxu0 %v2429_v57  ;;  %v1249_v49 = vadd.f32 %v1182_v8, %v1004_v58  ;;  %v811_v22 = vmul.f32 %v6620_v29, %v7752_v3  ;;  %v7902_v56 = vmul.f32 %v6620_v29, %v7755_v17  ;;  %v728_v5 = vmul.f32 %v6617_v28, %v7752_v3 }
 0x138   : > { %v2360_v38 = vadd.f32 %v2292_v44, %v2116_v54  ;;  %v2050_v40 = vsel %vm862_vm0, %v2047_v45, %v2049_v60  ;;  %v1056_v0 = vmul.f32 %v6628_v33, %v7752_v3  ;;  %v7912_v48 = vmul.f32 %v6628_v33, %v7755_v17  ;;  %v671_v44 = vld [vmem:[%s6614_s24 + $0x198] sm:$0xff] }
 0x139   : > { %v1317_v15 = vadd.f32 %v1285_v42, %v1249_v49  ;;  %v938_v12 = vrot.slane %v811_v22, 1  ;;  %v939_v39 = vrot.slane %v7902_v56, 1  ;;  %v2293_v4 = vrot.slane %v2168_v9, 2 }
 0x13a   : > { %v2398_v50 = vadd.f32 %v7884_v23, %v2360_v38  ;;  %v1183_v45 = vrot.slane %v1056_v0, 2  ;;  %v1286_v18 = vmul.f32 %v6631_v34, %v7832_v43  ;;  %v1184_v3 = vrot.slane %v7912_v48, 2 }
 0x13b   : > { %v1561_v59 = vadd.f32 %v1494_v31, %v1317_v15  ;;  %v940_v37 = vsel %vm862_vm0, %v938_v12, %v939_v39  ;;  %v1369_v42 = vmul.f32 %v6648_v41, %v7832_v43  ;;  %v1370_v16 = vmul.f32 %v6648_v41, %v7835_v53 }
 0x13c   : > { %v2430_v6 = vmax.f32 %v2398_v50, 0.0  ;;  %v1005_v24 = vadd.f32 %v940_v37, %v728_v5  ;;  %v1613_v63 = vmul.f32 %v6658_v46, %v7832_v43  ;;  %v1185_v51 = vsel %vm1107_vm1, %v1183_v45, %v1184_v3  ;;  %v7958_v37 = vld [vmem:[%s6614_s24 + $0x1a8] sm:$0x3]  ;;  %s539_s24 = sand.u32 1, %s6390_s25  }
 0x13d   : > { %v1805_v19 = vadd.f32 %v1738_v13, %v1561_v59  ;;  %v1495_v57 = vrot.slane %v1369_v42, 1  ;;  %v7932_v58 = vmul.f32 %v6658_v46, %v7835_v53  ;;  %v2294_v8 = vsel %vm1107_vm1, %v2291_v55, %v2293_v4  ;;  %s540_s18 = scalar_lea.vmem [#allocation4], %s539_s24  ;;  %s5633_s19 = scalar_lea.sflag [#allocation5], %s539_s24 }
 0x13e   : > { %5966 = vmatprep.mubr.f32.mxu0 %v2430_v6  ;;  %v1250_v54 = vadd.f32 %v1185_v51, %v1005_v24  ;;  %v1496_v31 = vrot.slane %v1370_v16, 1  ;;  %v1739_v60 = vrot.slane %v1613_v63, 2  ;;  %v7935_v9 = vpop.f32.mrb[4].mxu0  ;;  %v1925_v43 = vmul.f32 %v6710_v14, %v671_v44  ;;  %s5645_s26 = sshll.u32 %s540_s18, 4  ;;  %s9868_s26 = int_to_ptr.vmem [resolvable:$true] %s5645_s26 }
 0x13f   : > { %v1873_v49 = vadd.f32 %v1841_v62, %v1805_v19  ;;  %v1740_v22 = vrot.slane %v7932_v58, 2  ;;  %v7941_v13 = vmul.f32 %v6710_v14, %v7923_v1  ;;  %v7943_v56 = vpop.f32.mrb[5].mxu0  ;;  %v2169_v5 = vmul.f32 %v7767_v2, %v671_v44  ;;  %s6336_s23 = scalar_lea.vmem %s9868_s26, 16  ;;  %p6343_p0 = scmp.lt.s32.totalorder %s9868_s26, %s6341_s29 }
 0x140   : > { %v1318_v38 = vadd.f32 %v1286_v18, %v1250_v54  ;;  %v1497_v55 = vsel %vm862_vm0, %v1495_v57, %v1496_v31  ;;  %v7949_v0 = vmul.f32 %v7767_v2, %v7923_v1  ;;  %v2051_v12 = vrot.slane %v1925_v43, 1  ;;  %p6337_p11 = scmp.ne.s32.totalorder %s9868_s26, %s6336_s23  ;;  %p6344_p1 = scmp.lt.s32.totalorder %s6342_s2, %s6336_s23 }
 0x141   : > { %v2117_v62 = vadd.f32 %v2050_v40, %v1873_v49  ;;  %v1741_v15 = vsel %vm1107_vm1, %v1739_v60, %v1740_v22  ;;  %v2052_v48 = vrot.slane %v7941_v13, 1  ;;  %v1842_v4 = vmul.f32 %v6682_v61, %v671_v44 }
 0x142   : > { %v1562_v50 = vadd.f32 %v1497_v55, %v1318_v38  ;;  %v2295_v45 = vrot.slane %v2169_v5, 2  ;;  %v2296_v59 = vrot.slane %v7949_v0, 2  ;;  %v813_v42 = vmul.f32 %v6620_v29, %v7791_v47  ;;  %p6338_p12 = pnand %p6337_p11, %p6532_p5  ;;  %p6345_p2 = por %p6344_p1, %p6343_p0 }
 0x143   : > { %v2361_v18 = vadd.f32 %v2294_v8, %v2117_v62  ;;  %v1058_v40 = vmul.f32 %v6628_v33, %v7791_v47  ;;  %v2053_v24 = vsel %vm862_vm0, %v2051_v12, %v2052_v48  ;;  %v729_v44 = vmul.f32 %v6617_v28, %v7755_v17  ;;  %v7983_v28 = vld [vmem:[%s9912_s4] ss:$0 sm:$0xff] }
 0x144   : > { %v1806_v6 = vadd.f32 %v1741_v15, %v1562_v50  ;;  %v1371_v16 = vmul.f32 %v6648_v41, %v7871_v52  ;;  %v941_v19 = vrot.slane %v813_v42, 1  ;;  %v7974_v29 = vmul.f32 %v6658_v46, %v7871_v52  ;;  %p6339_p13 = pneg %p6338_p12 }
 0x145   : > { %v2399_v63 = vadd.f32 %v7884_v23, %v2361_v18  ;;  %v1186_v51 = vrot.slane %v1058_v40, 2  ;;  %v7978_v57 = vmul.f32 %v6710_v14, %v7958_v37  ;;  %v2297_v17 = vsel %vm1107_vm1, %v2295_v45, %v2296_v59 }
 0x146   : > { %v1874_v33 = vadd.f32 %v1842_v4, %v1806_v6  ;;  %v1498_v47 = vrot.slane %v1371_v16, 1  ;;  %v942_v8 = vsel %vm862_vm0, %v939_v39, %v941_v19  ;;  %v7992_v14 = vmul.f32 %v6631_v34, %v7835_v53  ;;  %p6346_p3 = pnand %p6345_p2, %p6339_p13 }
 0x147   : > { %v2431_v41 = vmax.f32 %v2399_v63, 0.0  ;;  %v1187_v46 = vsel %vm1107_vm1, %v1184_v3, %v1186_v51  ;;  %v1006_v54 = vadd.f32 %v942_v8, %v729_v44  ;;  %v1742_v49 = vrot.slane %v7974_v29, 2 }
 0x148   : > { %v2118_v52 = vadd.f32 %v2053_v24, %v1874_v33  ;;  %v7995_v60 = vsel %vm862_vm0, %v1496_v31, %v1498_v47  ;;  %v8000_v43 = vadd.f32 %v7748_v11, %v7983_v28  ;;  %v2054_v3 = vrot.slane %v7978_v57, 1 }
 0x149   : > { %5967 = vmatmul.mubr.f32.gmra.mrb[28].mxu0 %v2431_v41  ;;  %v8004_v39 = vadd.f32 %v1187_v46, %v1006_v54  ;;  %v6400_v55 = vmov 0.0   ;;  %v2507_v34 = vadd.f32 %v7983_v28, %v7757_v10  ;;  %v2171_v11 = vmul.f32 %v7767_v2, %v7958_v37  ;;  %v2784_v41 = vld [vmem:[%s9913_s5] sm:$0xff] }
 0x14a   : > { %v8002_v38 = vadd.f32 %v2297_v17, %v2118_v52  ;;  %550 = vst [vmem:[#allocation2 + $0x20] sm:$0xff] %v6400_v55  ;;  %551 = vst [vmem:[#allocation2 + $0x28] sm:$0x3] %v6400_v55  ;;  %v2666_v53 = vmax.f32 %v8000_v43, 0.0  ;;  %v2522_v31 = vadd.f32 %v7850_v32, %v7983_v28  ;;  %v2517_v5 = vadd.f32 %v7983_v28, %v7855_v27 }
 0x14b   : > { %546 = vst [vmem:[#allocation2] sm:$0xff] %v6400_v55  ;;  %548 = vst [vmem:[#allocation2 + $0x10] sm:$0x3] %v6400_v55  ;;  %v1319_v15 = vadd.f32 %v7992_v14, %v8004_v39  ;;  %v2665_v12 = vmax.f32 %v2507_v34, 0.0  ;;  %v2532_v10 = vadd.f32 %v7935_v9, %v7983_v28  ;;  %v1743_v2 = vsel %vm1107_vm1, %v1740_v22, %v1742_v49 }
 0x14c   : > { %549 = vst [vmem:[#allocation2 + $0x18] sm:$0xff] %v6400_v55  ;;  %552 = vst [vmem:[#allocation2 + $0x30] sm:$0xff] %v6400_v55  ;;  %v2400_v62 = vadd.f32 %v7884_v23, %v8002_v38  ;;  %v2668_v32 = vmax.f32 %v2522_v31, 0.0  ;;  %v2667_v50 = vmax.f32 %v2517_v5, 0.0  ;;  %v2527_v27 = vadd.f32 %v7983_v28, %v7943_v56 }
 0x14d   : > { %553 = vst [vmem:[#allocation2 + $0x38] sm:$0xff] %v6400_v55  ;;  %554 = vst [vmem:[#allocation2 + $0x40] sm:$0x3] %v6400_v55  ;;  %v1563_v45 = vadd.f32 %v7995_v60, %v1319_v15  ;;  %v1843_v18 = vmul.f32 %v6682_v61, %v7923_v1  ;;  %v2670_v9 = vmax.f32 %v2532_v10, 0.0  ;;  %v2298_v37 = vrot.slane %v2171_v11, 2 }
 0x14e   : > { %555 = vst [vmem:[#allocation2 + $0x48] sm:$0xff] %v6400_v55  ;;  %556 = vst [vmem:[#allocation2 + $0x50] sm:$0xff] %v6400_v55  ;;  %v2432_v4 = vmax.f32 %v2400_v62, 0.0  ;;  %v2669_v58 = vmax.f32 %v2527_v27, 0.0  ;;  %v2055_v56 = vsel %vm862_vm0, %v2052_v48, %v2054_v3  ;;  %v8119_v8 = vrot.slane %v2784_v41, %v6594_v21 }
 0x14f   : > { %557 = vst [vmem:[#allocation2 + $0x58] sm:$0x3] %v6400_v55  ;;  %558 = vst [vmem:[#allocation2 + $0x60] sm:$0xff] %v6400_v55  ;;  %v1807_v22 = vadd.f32 %v1743_v2, %v1563_v45  ;;  %v2299_v6 = vsel %vm1107_vm1, %v2296_v59, %v2298_v37  ;;  %v8123_v14 = vrot.slane %v2784_v41, %v6604_v25 }
 0x150   : > { %559 = vst [vmem:[#allocation2 + $0x68] sm:$0xff] %v6400_v55  ;;  %560 = vst [vmem:[#allocation2 + $0x70] sm:$0x3] %v6400_v55  ;;  %5969 = vmatprep.mubr.f32.mxu0 %v2432_v4  ;;  %v2892_v60 = vmul.f32 0.0, %v8119_v8  ;;  %v8128_v38 = vrot.slane %v2784_v41, %v6591_v20  ;;  %v8137_v31 = vrot.slane %v2784_v41, %v6634_v35 }
 0x151   : > { %561 = vst [vmem:[#allocation2 + $0x78] sm:$0xff] %v6400_v55  ;;  %562 = vst [vmem:[#allocation2 + $0x80] sm:$0xff] %v6400_v55  ;;  %v5935_v42 = vpop.f32.mrb[6].mxu0  ;;  %v1875_v40 = vadd.f32 %v1843_v18, %v1807_v22  ;;  %v8141_v62 = vrot.slane %v2784_v41, %v6607_v26  ;;  %v8161_v22 = vrot.slane %v2784_v41, %v6697_v7 }
 0x152   : > { %563 = vst [vmem:[#allocation2 + $0x88] sm:$0x3] %v6400_v55  ;;  %564 = vst [vmem:[#allocation2 + $0x90] sm:$0xff] %v6400_v55  ;;  %v2542_v61 = vadd.f32 %v5935_v42, %v7983_v28  ;;  %v2536_v1 = vpop.f32.mrb[7].mxu0  ;;  %v2732_v52 = vld [vmem:[#allocation2 + $0x10] sm:$0x3] }
 0x153   : > { %565 = vst [vmem:[#allocation2 + $0x98] sm:$0xff] %v6400_v55  ;;  %566 = vst [vmem:[#allocation2 + $0xa0] sm:$0x3] %v6400_v55  ;;  %v2537_v24 = vadd.f32 %v7983_v28, %v2536_v1  ;;  %v2119_v44 = vadd.f32 %v2055_v56, %v1875_v40  ;;  %v2894_v49 = vmul.f32 %v8119_v8, %v2732_v52  ;;  %v2988_v39 = vrot.slane %v2892_v60, 1 }
 0x154   : > { %567 = vst [vmem:[#allocation2 + $0xa8] sm:$0xff] %v6400_v55  ;;  %568 = vst [vmem:[#allocation2 + $0xb0] sm:$0xff] %v6400_v55  ;;  %v2672_v16 = vmax.f32 %v2542_v61, 0.0  ;;  %v3138_v34 = vmul.f32 %v8123_v14, %v2732_v52  ;;  %v2824_v11 = vmul.f32 0.0, %v8128_v38  ;;  %v8166_v61 = vrot.slane %v2784_v41, %v6637_v36 }
 0x155   : > { %569 = vst [vmem:[#allocation2 + $0xb8] sm:$0x3] %v6400_v55  ;;  %570 = vst [vmem:[#allocation2 + $0xc0] sm:$0xff] %v6400_v55  ;;  %v2671_v63 = vmax.f32 %v2537_v24, 0.0  ;;  %v2363_v19 = vadd.f32 %v2299_v6, %v2119_v44  ;;  %v2991_v3 = vrot.slane %v2894_v49, 1 }
 0x156   : > { %571 = vst [vmem:[#allocation2 + $0xc8] sm:$0xff] %v6400_v55  ;;  %572 = vst [vmem:[#allocation2 + $0xd0] sm:$0x3] %v6400_v55  ;;  %v3235_v45 = vrot.slane %v3138_v34, 2 }
 0x157   : > { %573 = vst [vmem:[#allocation2 + $0xd8] sm:$0xff] %v6400_v55  ;;  %574 = vst [vmem:[#allocation2 + $0xe0] sm:$0xff] %v6400_v55  ;;  %v2401_v13 = vadd.f32 %v7884_v23, %v2363_v19  ;;  %v2992_v5 = vsel %vm862_vm0, %v2988_v39, %v2991_v3 }
 0x158   : > { %575 = vst [vmem:[#allocation2 + $0xe8] sm:$0x3] %v6400_v55  ;;  %576 = vst [vmem:[#allocation2 + $0xf0] sm:$0xff] %v6400_v55  ;;  %v3101_v10 = vadd.f32 %v2992_v5, %v2824_v11 }
 0x159   : > { %577 = vst [vmem:[#allocation2 + $0xf8] sm:$0xff] %v6400_v55  ;;  %578 = vst [vmem:[#allocation2 + $0x100] sm:$0x3] %v6400_v55  ;;  %v2433_v48 = vmax.f32 %v2401_v13, 0.0 }
 0x15a   : > { %579 = vst [vmem:[#allocation2 + $0x108] sm:$0xff] %v6400_v55  ;;  %580 = vst [vmem:[#allocation2 + $0x110] sm:$0xff] %v6400_v55 }
 0x15b   : > { %581 = vst [vmem:[#allocation2 + $0x118] sm:$0x3] %v6400_v55  ;;  %582 = vst [vmem:[#allocation2 + $0x120] sm:$0xff] %v6400_v55  ;;  %5970 = vmatmul.mubr.f32.gmra.mrb[30].mxu0 %v2433_v48 }
 0x15c   : > { %583 = vst [vmem:[#allocation2 + $0x128] sm:$0xff] %v6400_v55  ;;  %584 = vst [vmem:[#allocation2 + $0x130] sm:$0x3] %v6400_v55 }
 0x15d   : > { %585 = vst [vmem:[#allocation2 + $0x138] sm:$0xff] %v6400_v55  ;;  %586 = vst [vmem:[#allocation2 + $0x140] sm:$0xff] %v6400_v55 }
 0x15e   : > { %587 = vst [vmem:[#allocation2 + $0x148] sm:$0x3] %v6400_v55  ;;  %588 = vst [vmem:[#allocation2 + $0x150] sm:$0xff] %v6400_v55 }
 0x15f   : > { %589 = vst [vmem:[#allocation2 + $0x158] sm:$0xff] %v6400_v55  ;;  %590 = vst [vmem:[#allocation2 + $0x160] sm:$0x3] %v6400_v55 }
 0x160   : > { %591 = vst [vmem:[#allocation2 + $0x168] sm:$0xff] %v6400_v55  ;;  %592 = vst [vmem:[#allocation2 + $0x170] sm:$0xff] %v6400_v55 }
 0x161   : > { %593 = vst [vmem:[#allocation2 + $0x178] sm:$0x3] %v6400_v55  ;;  %594 = vst [vmem:[#allocation2 + $0x180] sm:$0xff] %v6400_v55 }
 0x162   : > { %595 = vst [vmem:[#allocation2 + $0x188] sm:$0xff] %v6400_v55  ;;  %596 = vst [vmem:[#allocation2 + $0x190] sm:$0x3] %v6400_v55 }
 0x163   : > { %599 = vst [vmem:[#allocation2 + $0x1a8] sm:$0x3] %v6400_v55  ;;  %601 = vst [vmem:[#allocation3 + $0x8] sm:$0x3] %v6400_v55  ;;  %v5938_v51 = vpop.f32.mrb[8].mxu0 }
 0x164   : > { %602 = vst [vmem:[#allocation3 + $0x10] sm:$0xff] %v6400_v55  ;;  %603 = vst [vmem:[#allocation3 + $0x18] sm:$0x3] %v6400_v55  ;;  %v2552_v29 = vadd.f32 %v5938_v51, %v7983_v28  ;;  %v2546_v33 = vpop.f32.mrb[9].mxu0 }
 0x165   : > { %604 = vst [vmem:[#allocation3 + $0x20] sm:$0xff] %v6400_v55  ;;  %605 = vst [vmem:[#allocation3 + $0x28] sm:$0x3] %v6400_v55  ;;  %v2547_v0 = vadd.f32 %v7983_v28, %v2546_v33 }
 0x166   : > { %606 = vst [vmem:[#allocation3 + $0x30] sm:$0xff] %v6400_v55  ;;  %607 = vst [vmem:[#allocation3 + $0x38] sm:$0x3] %v6400_v55  ;;  %v2674_v47 = vmax.f32 %v2552_v29, 0.0 }
 0x167   : > { %608 = vst [vmem:[#allocation3 + $0x40] sm:$0xff] %v6400_v55  ;;  %609 = vst [vmem:[#allocation3 + $0x48] sm:$0x3] %v6400_v55  ;;  %v2673_v59 = vmax.f32 %v2547_v0, 0.0 }
 0x168   : > { %610 = vst [vmem:[#allocation3 + $0x50] sm:$0xff] %v6400_v55  ;;  %611 = vst [vmem:[#allocation3 + $0x58] sm:$0x3] %v6400_v55 }
 0x169   : > { %612 = vst [vmem:[#allocation3 + $0x60] sm:$0xff] %v6400_v55  ;;  %613 = vst [vmem:[#allocation3 + $0x68] sm:$0x3] %v6400_v55 }
 0x16a   : > { %614 = vst [vmem:[#allocation3 + $0x70] sm:$0xff] %v6400_v55  ;;  %615 = vst [vmem:[#allocation3 + $0x78] sm:$0x3] %v6400_v55 }
 0x16b   : > { %616 = vst [vmem:[#allocation3 + $0x80] sm:$0xff] %v6400_v55  ;;  %617 = vst [vmem:[#allocation3 + $0x88] sm:$0x3] %v6400_v55 }
 0x16c   : > { %619 = vst [vmem:[#allocation3 + $0x98] sm:$0x3] %v6400_v55  ;;  %2699 = vst [vmem:[#allocation2 + $0x21] sm:$0xff] %v2666_v53  ;;  %v3136_v55 = vmul.f32 0.0, %v8123_v14  ;;  %v8134_v53 = vrot.slane %v2784_v41, %v6623_v30 }
 0x16d   : > { %2698 = vst [vmem:[#allocation2 + $0x19] sm:$0xff] %v2665_v12  ;;  %2701 = vst [vmem:[#allocation2 + $0x39] sm:$0xff] %v2668_v32  ;;  %v3100_v12 = vadd.f32 %v2988_v39, %v2824_v11 }
 0x16e   : > { %2700 = vst [vmem:[#allocation2 + $0x31] sm:$0xff] %v2667_v50  ;;  %2703 = vst [vmem:[#allocation2 + $0x51] sm:$0xff] %v2670_v9  ;;  %v3232_v2 = vrot.slane %v3136_v55, 2 }
 0x16f   : > { %2702 = vst [vmem:[#allocation2 + $0x49] sm:$0xff] %v2669_v58  ;;  %2705 = vst [vmem:[#allocation2 + $0x69] sm:$0xff] %v2672_v16 }
 0x170   : > { %2704 = vst [vmem:[#allocation2 + $0x61] sm:$0xff] %v2671_v63  ;;  %2707 = vst [vmem:[#allocation2 + $0x81] sm:$0xff] %v2674_v47  ;;  %v3236_v42 = vsel %vm1107_vm1, %v3232_v2, %v3235_v45  ;;  %v3344_v40 = vadd.f32 %v3232_v2, %v3100_v12 }
 0x171   : > { %2706 = vst [vmem:[#allocation2 + $0x79] sm:$0xff] %v2673_v59  ;;  %v3345_v1 = vadd.f32 %v3236_v42, %v3101_v10  ;;  %v8186_v59 = vld [vmem:[%s9913_s5 + $0x8] ss:$0 sm:$0xff] }
 0x173   : > { %v2735_v15 = vld [vmem:[#allocation2 + $0x28] sm:$0x3] }
 0x174   : > { %v8143_v32 = vld [vmem:[#allocation2 + $0x18] sm:$0xff]  ;;  %v8145_v50 = vld [vmem:[#allocation2 + $0x20] sm:$0xff]  ;;  %v8148_v27 = vmul.f32 %v8119_v8, %v2735_v15  ;;  %v8151_v4 = vmul.f32 %v8123_v14, %v2735_v15  ;;  %v3450_v18 = vmul.f32 %v8134_v53, %v2735_v15  ;;  %v3694_v0 = vmul.f32 %v8137_v31, %v2735_v15 }
 0x175   : > { %v3380_v9 = vmul.f32 %v8141_v62, %v8143_v32  ;;  %v3381_v37 = vmul.f32 %v8141_v62, %v8145_v50  ;;  %v3448_v58 = vmul.f32 %v8134_v53, %v8143_v32  ;;  %v3449_v6 = vmul.f32 %v8134_v53, %v8145_v50  ;;  %v8170_v44 = vld [vmem:[#allocation2 + $0x30] sm:$0xff]  ;;  %v8172_v16 = vld [vmem:[#allocation2 + $0x38] sm:$0xff]  ;;  %v8178_v51 = vld [vmem:[#allocation2 + $0x40] sm:$0x3] }
 0x176   : > { %v5941_v57 = vpop.f32.mrb[10].mxu0  ;;  %v2996_v56 = vrot.slane %v8148_v27, 1  ;;  %v3547_v19 = vrot.slane %v3450_v18, 1  ;;  %v3692_v13 = vmul.f32 %v8137_v31, %v8143_v32  ;;  %v3693_v48 = vmul.f32 %v8137_v31, %v8145_v50 }
 0x177   : > { %v2562_v17 = vadd.f32 %v5941_v57, %v7983_v28  ;;  %v2556_v23 = vpop.f32.mrb[11].mxu0  ;;  %v3544_v24 = vrot.slane %v3448_v58, 1  ;;  %v3412_v63 = vadd.f32 %v3380_v9, %v3344_v40  ;;  %v3413_v29 = vadd.f32 %v3381_v37, %v3345_v1 }
 0x178   : > { %v2557_v46 = vadd.f32 %v7983_v28, %v2556_v23  ;;  %v3545_v33 = vrot.slane %v3449_v6, 1  ;;  %v3936_v47 = vmul.f32 %v8166_v61, %v8170_v44  ;;  %v3788_v57 = vrot.slane %v3692_v13, 2 }
 0x179   : > { %v2676_v54 = vmax.f32 %v2562_v17, 0.0  ;;  %v3789_v41 = vrot.slane %v3693_v48, 2  ;;  %v3937_v17 = vmul.f32 %v8166_v61, %v8172_v16  ;;  %v4004_v23 = vmul.f32 %v8161_v22, %v8170_v44 }
 0x17a   : > { %v2675_v43 = vmax.f32 %v2557_v46, 0.0  ;;  %v3546_v46 = vsel %vm862_vm0, %v3544_v24, %v3545_v33  ;;  %v3548_v52 = vsel %vm862_vm0, %v3545_v33, %v3547_v19  ;;  %v4005_v60 = vmul.f32 %v8161_v22, %v8172_v16 }
 0x17b   : > { %2709 = vst [vmem:[#allocation2 + $0x99] sm:$0xff] %v2676_v54  ;;  %v3791_v54 = vrot.slane %v3694_v0, 2  ;;  %v3656_v49 = vadd.f32 %v3546_v46, %v3412_v63  ;;  %v3790_v39 = vsel %vm1107_vm1, %v3788_v57, %v3789_v41  ;;  %v4006_v3 = vmul.f32 %v8161_v22, %v8178_v51 }
 0x17c   : > { %2708 = vst [vmem:[#allocation2 + $0x91] sm:$0xff] %v2675_v43  ;;  %v3657_v43 = vadd.f32 %v3548_v52, %v3413_v29  ;;  %v4100_v11 = vrot.slane %v4004_v23, 1  ;;  %v4101_v5 = vrot.slane %v4005_v60, 1  ;;  %v4248_v15 = vmul.f32 %v8186_v59, %v8170_v44 }
 0x17d   : > { %v3792_v34 = vsel %vm1107_vm1, %v3789_v41, %v3791_v54  ;;  %v3900_v2 = vadd.f32 %v3790_v39, %v3656_v49  ;;  %v4103_v18 = vrot.slane %v4006_v3, 1  ;;  %v4249_v58 = vmul.f32 %v8186_v59, %v8172_v16 }
 0x17e   : > { %v3901_v45 = vadd.f32 %v3792_v34, %v3657_v43  ;;  %v4102_v37 = vsel %vm862_vm0, %v4100_v11, %v4101_v5  ;;  %v4250_v42 = vmul.f32 %v8186_v59, %v8178_v51  ;;  %v4344_v19 = vrot.slane %v4248_v15, 2 }
 0x17f   : > { %v3968_v1 = vadd.f32 %v3936_v47, %v3900_v2  ;;  %v4104_v24 = vsel %vm862_vm0, %v4101_v5, %v4103_v18  ;;  %v4345_v13 = vrot.slane %v4249_v58, 2  ;;  %v2826_v0 = vmul.f32 %v8128_v38, %v8143_v32  ;;  %v8217_v47 = vld [vmem:[%s9914_s6] ss:$0 sm:$0xff] }
 0x180   : > { %v3969_v6 = vadd.f32 %v3937_v17, %v3901_v45  ;;  %v4347_v48 = vrot.slane %v4250_v42, 2  ;;  %v2827_v57 = vmul.f32 %v8128_v38, %v8145_v50  ;;  %v2895_v23 = vmul.f32 %v8119_v8, %v8143_v32 }
 0x181   : > { %v4212_v29 = vadd.f32 %v4102_v37, %v3968_v1  ;;  %v4346_v41 = vsel %vm1107_vm1, %v4344_v19, %v4345_v13  ;;  %v2896_v46 = vmul.f32 %v8119_v8, %v8145_v50  ;;  %v3139_v60 = vmul.f32 %v8123_v14, %v8143_v32 }
 0x182   : > { %v4213_v33 = vadd.f32 %v4104_v24, %v3969_v6  ;;  %v4348_v17 = vsel %vm1107_vm1, %v4345_v13, %v4347_v48  ;;  %v3140_v49 = vmul.f32 %v8123_v14, %v8145_v50  ;;  %v2993_v43 = vrot.slane %v2895_v23, 1  ;;  %v8252_v24 = vld [vmem:[#allocation2 + $0x50] sm:$0xff] }
 0x183   : > { %v4456_v52 = vadd.f32 %v4346_v41, %v4212_v29  ;;  %v2994_v39 = vrot.slane %v2896_v46, 1  ;;  %v3240_v3 = vrot.slane %v8151_v4, 2  ;;  %v3237_v5 = vrot.slane %v3139_v60, 2  ;;  %v8258_v29 = vld [vmem:[#allocation2 + $0x58] sm:$0x3] }
 0x184   : > { %v4457_v54 = vadd.f32 %v4348_v17, %v4213_v33  ;;  %v3238_v15 = vrot.slane %v3140_v49, 2  ;;  %v3383_v50 = vmul.f32 %v8141_v62, %v8172_v16  ;;  %v3451_v4 = vmul.f32 %v8134_v53, %v8170_v44 }
 0x185   : > { %v4494_v34 = vadd.f32 %v8217_v47, %v4456_v52  ;;  %v2997_v32 = vsel %vm862_vm0, %v2994_v39, %v2996_v56  ;;  %v3452_v27 = vmul.f32 %v8134_v53, %v8172_v16  ;;  %v3453_v56 = vmul.f32 %v8134_v53, %v8178_v51 }
 0x186   : > { %v4495_v11 = vadd.f32 %v8217_v47, %v4457_v54  ;;  %v3103_v18 = vadd.f32 %v2997_v32, %v2827_v57  ;;  %v3239_v37 = vsel %vm1107_vm1, %v3237_v5, %v3238_v15  ;;  %v3241_v58 = vsel %vm1107_vm1, %v3238_v15, %v3240_v3 }
 0x187   : > { %v3549_v6 = vrot.slane %v3451_v4, 1  ;;  %v3552_v19 = vrot.slane %v3453_v56, 1  ;;  %v3695_v13 = vmul.f32 %v8137_v31, %v8170_v44  ;;  %v3696_v48 = vmul.f32 %v8137_v31, %v8172_v16 }
 0x188   : > { %v5944_v55 = vpop.f32.mrb[12].mxu0  ;;  %v4527_v2 = vmax.f32 %v4495_v11, 0.0  ;;  %v3347_v1 = vadd.f32 %v3241_v58, %v3103_v18  ;;  %v3697_v57 = vmul.f32 %v8137_v31, %v8178_v51  ;;  %v4252_v32 = vmul.f32 %v8186_v59, %v8252_v24 }
 0x189   : > { %v2572_v12 = vadd.f32 %v5944_v55, %v7983_v28  ;;  %v2566_v10 = vpop.f32.mrb[13].mxu0  ;;  %v3382_v55 = vmul.f32 %v8141_v62, %v8170_v44  ;;  %v3793_v46 = vrot.slane %v3695_v13, 2  ;;  %v3794_v52 = vrot.slane %v3696_v48, 2 }
 0x18a   : > { %v2567_v9 = vadd.f32 %v7983_v28, %v2566_v10  ;;  %v4526_v10 = vmax.f32 %v4494_v34, 0.0  ;;  %v3796_v49 = vrot.slane %v3697_v57, 2  ;;  %v4009_v34 = vmul.f32 %v8161_v22, %v8258_v29 }
 0x18b   : > { %v2678_v40 = vmax.f32 %v2572_v12, 0.0  ;;  %v2995_v12 = vsel %vm862_vm0, %v2993_v43, %v2994_v39  ;;  %v3939_v43 = vmul.f32 %v8166_v61, %v8252_v24  ;;  %v3795_v39 = vsel %vm1107_vm1, %v3793_v46, %v3794_v52 }
 0x18c   : > { %v2677_v63 = vmax.f32 %v2567_v9, 0.0  ;;  %v3102_v45 = vadd.f32 %v2995_v12, %v2826_v0  ;;  %v8242_v9 = vld [vmem:[#allocation2 + $0x48] sm:$0xff]  ;;  %v8250_v42 = vpack.c.bf16 %v4527_v2, %v4526_v10  ;;  %v3415_v0 = vadd.f32 %v3383_v50, %v3347_v1 }
 0x18d   : > { %2711 = vst [vmem:[#allocation2 + $0xb1] sm:$0xff] %v2678_v40  ;;  %v3938_v41 = vmul.f32 %v8166_v61, %v8242_v9  ;;  %v4007_v3 = vmul.f32 %v8161_v22, %v8242_v9  ;;  %v3797_v5 = vsel %vm1107_vm1, %v3794_v52, %v3796_v49  ;;  %v4251_v12 = vmul.f32 %v8186_v59, %v8242_v9 }
 0x18e   : > { %2710 = vst [vmem:[#allocation2 + $0xa9] sm:$0xff] %v2677_v63  ;;  %v3346_v40 = vadd.f32 %v3239_v37, %v3102_v45  ;;  %v3550_v63 = vrot.slane %v3452_v27, 1  ;;  %v4108_v58 = vrot.slane %v4009_v34, 1  ;;  %v4253_v27 = vmul.f32 %v8186_v59, %v8258_v29 }
 0x18f   : > { %v4105_v2 = vrot.slane %v4007_v3, 1  ;;  %v4350_v48 = vrot.slane %v4252_v32, 2  ;;  %v2828_v57 = vmul.f32 %v8128_v38, %v8170_v44  ;;  %v2899_v46 = vmul.f32 %v8119_v8, %v8172_v16 }
 0x190   : > { %v3414_v33 = vadd.f32 %v3382_v55, %v3346_v40  ;;  %v3551_v17 = vsel %vm862_vm0, %v3549_v6, %v3550_v63  ;;  %v3553_v23 = vsel %vm862_vm0, %v3550_v63, %v3552_v19  ;;  %v4008_v55 = vmul.f32 %v8161_v22, %v8252_v24 }
 0x191   : > { %v3659_v60 = vadd.f32 %v3553_v23, %v3415_v0  ;;  %v4349_v6 = vrot.slane %v4251_v12, 2  ;;  %v4352_v0 = vrot.slane %v4253_v27, 2  ;;  %v2898_v23 = vmul.f32 %v8119_v8, %v8170_v44 }
 0x192   : > { %v3658_v54 = vadd.f32 %v3551_v17, %v3414_v33  ;;  %v4106_v45 = vrot.slane %v4008_v55, 1  ;;  %v2900_v52 = vmul.f32 %v8119_v8, %v8178_v51  ;;  %v3142_v49 = vmul.f32 %v8123_v14, %v8170_v44 }
 0x193   : > { %v3903_v10 = vadd.f32 %v3797_v5, %v3659_v60  ;;  %v4351_v17 = vsel %vm1107_vm1, %v4349_v6, %v4350_v48  ;;  %v2998_v3 = vrot.slane %v2898_v23, 1  ;;  %v2999_v55 = vrot.slane %v2899_v46, 1 }
 0x194   : > { %v3902_v15 = vadd.f32 %v3795_v39, %v3658_v54  ;;  %v4107_v1 = vsel %vm862_vm0, %v4105_v2, %v4106_v45  ;;  %v4109_v19 = vsel %vm862_vm0, %v4106_v45, %v4108_v58  ;;  %v4353_v54 = vsel %vm1107_vm1, %v4350_v48, %v4352_v0 }
 0x195   : > { %v3971_v40 = vadd.f32 %v3939_v43, %v3903_v10  ;;  %v3143_v43 = vmul.f32 %v8123_v14, %v8172_v16  ;;  %v3001_v34 = vrot.slane %v2900_v52, 1  ;;  %v3144_v5 = vmul.f32 %v8123_v14, %v8178_v51 }
 0x196   : > { %v3970_v37 = vadd.f32 %v3938_v41, %v3902_v15  ;;  %v2829_v41 = vmul.f32 %v8128_v38, %v8172_v16  ;;  %v3242_v15 = vrot.slane %v3142_v49, 2  ;;  %v3384_v16 = vmul.f32 %v8141_v62, %v8242_v9 }
 0x197   : > { %v4215_v33 = vadd.f32 %v4109_v19, %v3971_v40  ;;  %v3243_v12 = vrot.slane %v3143_v43, 2  ;;  %v3002_v44 = vsel %vm862_vm0, %v2999_v55, %v3001_v34  ;;  %v3245_v58 = vrot.slane %v3144_v5, 2 }
 0x198   : > { %v4214_v13 = vadd.f32 %v4107_v1, %v3970_v37  ;;  %v3105_v2 = vadd.f32 %v3002_v44, %v2829_v41  ;;  %v3385_v51 = vmul.f32 %v8141_v62, %v8252_v24  ;;  %v3454_v27 = vmul.f32 %v8134_v53, %v8242_v9 }
 0x199   : > { %v4459_v39 = vadd.f32 %v4353_v54, %v4215_v33  ;;  %v3244_v45 = vsel %vm1107_vm1, %v3242_v15, %v3243_v12  ;;  %v3455_v19 = vmul.f32 %v8134_v53, %v8252_v24  ;;  %v3456_v5 = vmul.f32 %v8134_v53, %v8258_v29 }
 0x19a   : > { %v4458_v60 = vadd.f32 %v4351_v17, %v4214_v13  ;;  %v3554_v15 = vrot.slane %v3454_v27, 1 }
 0x19b   : > { %v5947_v11 = vpop.f32.mrb[14].mxu0  ;;  %v4497_v32 = vadd.f32 %v8217_v47, %v4459_v39  ;;  %v3557_v27 = vrot.slane %v3456_v5, 1 }
 0x19c   : > { %v2582_v50 = vadd.f32 %v5947_v11, %v7983_v28  ;;  %v2576_v4 = vpop.f32.mrb[15].mxu0  ;;  %v4496_v11 = vadd.f32 %v8217_v47, %v4458_v60  ;;  %v3246_v60 = vsel %vm1107_vm1, %v3243_v12, %v3245_v58 }
 0x19d   : > { %v2577_v18 = vadd.f32 %v7983_v28, %v2576_v4  ;;  %v4529_v37 = vmax.f32 %v4497_v32, 0.0  ;;  %v3349_v39 = vadd.f32 %v3246_v60, %v3105_v2  ;;  %v8336_v2 = vld [vmem:[#allocation2 + $0x60] sm:$0xff] }
 0x19e   : > { %v2680_v56 = vmax.f32 %v2582_v50, 0.0  ;;  %v3000_v50 = vsel %vm862_vm0, %v2998_v3, %v2999_v55  ;;  %v4528_v4 = vmax.f32 %v4496_v11, 0.0 }
 0x19f   : > { %v2679_v63 = vmax.f32 %v2577_v18, 0.0  ;;  %v3104_v10 = vadd.f32 %v3000_v50, %v2828_v57 }
 0x1a0   : > { %2713 = vst [vmem:[#allocation2 + $0xc9] sm:$0xff] %v2680_v56  ;;  %v8325_v54 = vpack.c.bf16 %v4529_v37, %v4528_v4 }
 0x1a1   : > { %2712 = vst [vmem:[#allocation2 + $0xc1] sm:$0xff] %v2679_v63  ;;  %v3348_v63 = vadd.f32 %v3244_v45, %v3104_v10  ;;  %v3417_v45 = vadd.f32 %v3385_v51, %v3349_v39  ;;  %v4254_v39 = vmul.f32 %v8186_v59, %v8336_v2 }
 0x1a3   : > { %v3416_v3 = vadd.f32 %v3384_v16, %v3348_v63 }
 0x1a7   : > { %v2756_v18 = vld [vmem:[#allocation2 + $0xd0] sm:$0x3] }
 0x1a8   : > { %v2754_v56 = vld [vmem:[#allocation2 + $0xc0] sm:$0xff]  ;;  %v2755_v40 = vld [vmem:[#allocation2 + $0xc8] sm:$0xff]  ;;  %v2918_v1 = vmul.f32 %v8119_v8, %v2756_v18  ;;  %v3162_v6 = vmul.f32 %v8123_v14, %v2756_v18  ;;  %v3555_v18 = vrot.slane %v3455_v19, 1 }
 0x1a9   : > { %v2840_v13 = vmul.f32 %v8128_v38, %v2754_v56  ;;  %v2841_v48 = vmul.f32 %v8128_v38, %v2755_v40  ;;  %v2916_v33 = vmul.f32 %v8119_v8, %v2754_v56  ;;  %v2917_v0 = vmul.f32 %v8119_v8, %v2755_v40 }
 0x1aa   : > { %v3031_v57 = vrot.slane %v2918_v1, 1  ;;  %v3160_v41 = vmul.f32 %v8123_v14, %v2754_v56  ;;  %v3161_v17 = vmul.f32 %v8123_v14, %v2755_v40  ;;  %v3275_v23 = vrot.slane %v3162_v6, 2  ;;  %v8338_v40 = vld [vmem:[#allocation2 + $0x68] sm:$0xff]  ;;  %v8340_v6 = vld [vmem:[#allocation2 + $0x70] sm:$0x3] }
 0x1ab   : > { %v3028_v46 = vrot.slane %v2916_v33, 1  ;;  %v3029_v52 = vrot.slane %v2917_v0, 1  ;;  %v3556_v63 = vsel %vm862_vm0, %v3554_v15, %v3555_v18  ;;  %v3558_v51 = vsel %vm862_vm0, %v3555_v18, %v3557_v27 }
 0x1ac   : > { %v3272_v49 = vrot.slane %v3160_v41, 2  ;;  %v3273_v43 = vrot.slane %v3161_v17, 2  ;;  %v3660_v19 = vadd.f32 %v3556_v63, %v3416_v3  ;;  %v3700_v33 = vmul.f32 %v8137_v31, %v8258_v29 }
 0x1ad   : > { %v5950_v55 = vpop.f32.mrb[16].mxu0  ;;  %v3030_v34 = vsel %vm862_vm0, %v3028_v46, %v3029_v52  ;;  %v3032_v11 = vsel %vm862_vm0, %v3029_v52, %v3031_v57  ;;  %v3940_v0 = vmul.f32 %v8166_v61, %v8336_v2  ;;  %v3661_v57 = vadd.f32 %v3558_v51, %v3417_v45 }
 0x1ae   : > { %v2592_v32 = vadd.f32 %v5950_v55, %v7983_v28  ;;  %v2586_v50 = vpop.f32.mrb[17].mxu0  ;;  %v3116_v44 = vadd.f32 %v3030_v34, %v2840_v13  ;;  %v3117_v4 = vadd.f32 %v3032_v11, %v2841_v48  ;;  %v3274_v12 = vsel %vm1107_vm1, %v3272_v49, %v3273_v43 }
 0x1af   : > { %v2587_v10 = vadd.f32 %v7983_v28, %v2586_v50  ;;  %v3276_v16 = vsel %vm1107_vm1, %v3273_v43, %v3275_v23  ;;  %v3698_v13 = vmul.f32 %v8137_v31, %v8242_v9  ;;  %v3699_v48 = vmul.f32 %v8137_v31, %v8252_v24 }
 0x1b0   : > { %v2682_v37 = vmax.f32 %v2592_v32, 0.0  ;;  %v3360_v58 = vadd.f32 %v3274_v12, %v3116_v44  ;;  %v3361_v56 = vadd.f32 %v3276_v16, %v3117_v4  ;;  %v3941_v23 = vmul.f32 %v8166_v61, %v8338_v40 }
 0x1b1   : > { %v2681_v1 = vmax.f32 %v2587_v10, 0.0  ;;  %v3798_v41 = vrot.slane %v3698_v13, 2  ;;  %v3799_v17 = vrot.slane %v3699_v48, 2  ;;  %v3801_v46 = vrot.slane %v3700_v33, 2 }
 0x1b2   : > { %2715 = vst [vmem:[#allocation2 + $0xe1] sm:$0xff] %v2682_v37  ;;  %v4010_v52 = vmul.f32 %v8161_v22, %v8336_v2  ;;  %v4011_v60 = vmul.f32 %v8161_v22, %v8338_v40  ;;  %v4012_v49 = vmul.f32 %v8161_v22, %v8340_v6  ;;  %v8365_v3 = vmul.f32 %v8186_v59, %v8338_v40 }
 0x1b3   : > { %2714 = vst [vmem:[#allocation2 + $0xd9] sm:$0xff] %v2681_v1  ;;  %v3800_v43 = vsel %vm1107_vm1, %v3798_v41, %v3799_v17  ;;  %v8369_v55 = vmul.f32 %v8186_v59, %v8340_v6  ;;  %v3802_v34 = vsel %vm1107_vm1, %v3799_v17, %v3801_v46  ;;  %v4354_v44 = vrot.slane %v4254_v39, 2 }
 0x1b4   : > { %v3904_v11 = vadd.f32 %v3800_v43, %v3660_v19  ;;  %v4110_v5 = vrot.slane %v4010_v52, 1  ;;  %v4111_v15 = vrot.slane %v4011_v60, 1  ;;  %v3905_v32 = vadd.f32 %v3802_v34, %v3661_v57 }
 0x1b5   : > { %v4113_v50 = vrot.slane %v4012_v49, 1  ;;  %v9932_v4 = vrot.slane %v8365_v3, 2  ;;  %v4357_v16 = vrot.slane %v8369_v55, 2  ;;  %v8377_v45 = vmul.f32 %v8128_v38, %v8242_v9 }
 0x1b6   : > { %v3972_v12 = vadd.f32 %v3940_v0, %v3904_v11  ;;  %v4112_v10 = vsel %vm862_vm0, %v4110_v5, %v4111_v15  ;;  %v3973_v37 = vadd.f32 %v3941_v23, %v3905_v32  ;;  %v8387_v63 = vmul.f32 %v8128_v38, %v8252_v24 }
 0x1b7   : > { %v4114_v27 = vsel %vm862_vm0, %v4111_v15, %v4113_v50  ;;  %v8383_v1 = vsel %vm1107_vm1, %v4354_v44, %v9932_v4 }
 0x1b9   : > { %v2759_v18 = vld [vmem:[#allocation2 + $0xe8] sm:$0x3] }
 0x1ba   : > { %v2757_v13 = vld [vmem:[#allocation2 + $0xd8] sm:$0xff]  ;;  %v2758_v48 = vld [vmem:[#allocation2 + $0xe0] sm:$0xff]  ;;  %v3474_v51 = vmul.f32 %v8134_v53, %v2759_v18  ;;  %v3718_v19 = vmul.f32 %v8137_v31, %v2759_v18  ;;  %v2921_v33 = vmul.f32 %v8119_v8, %v2759_v18  ;;  %v3165_v0 = vmul.f32 %v8123_v14, %v2759_v18 }
 0x1bb   : > { %v3396_v57 = vmul.f32 %v8141_v62, %v2757_v13  ;;  %v3397_v41 = vmul.f32 %v8141_v62, %v2758_v48  ;;  %v3472_v17 = vmul.f32 %v8134_v53, %v2757_v13  ;;  %v3473_v23 = vmul.f32 %v8134_v53, %v2758_v48 }
 0x1bc   : > { %v3587_v46 = vrot.slane %v3474_v51, 1  ;;  %v3716_v52 = vmul.f32 %v8137_v31, %v2757_v13  ;;  %v3717_v60 = vmul.f32 %v8137_v31, %v2758_v48  ;;  %v3831_v49 = vrot.slane %v3718_v19, 2 }
 0x1bd   : > { %v3428_v43 = vadd.f32 %v3396_v57, %v3360_v58  ;;  %v3429_v39 = vadd.f32 %v3397_v41, %v3361_v56  ;;  %v3584_v55 = vrot.slane %v3472_v17, 1  ;;  %v3585_v34 = vrot.slane %v3473_v23, 1 }
 0x1be   : > { %v3828_v11 = vrot.slane %v3716_v52, 2  ;;  %v3829_v5 = vrot.slane %v3717_v60, 2  ;;  %v2842_v15 = vmul.f32 %v8128_v38, %v2757_v13  ;;  %v2843_v32 = vmul.f32 %v8128_v38, %v2758_v48 }
 0x1bf   : > { %v3586_v50 = vsel %vm862_vm0, %v3584_v55, %v3585_v34  ;;  %v3588_v44 = vsel %vm862_vm0, %v3585_v34, %v3587_v46  ;;  %v2919_v18 = vmul.f32 %v8119_v8, %v2757_v13  ;;  %v2920_v51 = vmul.f32 %v8119_v8, %v2758_v48 }
 0x1c0   : > { %v5953_v4 = vpop.f32.mrb[18].mxu0  ;;  %v3672_v19 = vadd.f32 %v3586_v50, %v3428_v43  ;;  %v3673_v58 = vadd.f32 %v3588_v44, %v3429_v39  ;;  %v3830_v56 = vsel %vm1107_vm1, %v3828_v11, %v3829_v5  ;;  %v3832_v57 = vsel %vm1107_vm1, %v3829_v5, %v3831_v49 }
 0x1c1   : > { %v2602_v41 = vadd.f32 %v5953_v4, %v7983_v28  ;;  %v2596_v17 = vpop.f32.mrb[19].mxu0  ;;  %v3033_v23 = vrot.slane %v2919_v18, 1  ;;  %v3034_v52 = vrot.slane %v2920_v51, 1  ;;  %v3036_v60 = vrot.slane %v2921_v33, 1 }
 0x1c2   : > { %v2597_v55 = vadd.f32 %v7983_v28, %v2596_v17  ;;  %v3916_v46 = vadd.f32 %v3830_v56, %v3672_v19  ;;  %v3917_v34 = vadd.f32 %v3832_v57, %v3673_v58  ;;  %v3163_v36 = vmul.f32 %v8123_v14, %v2757_v13 }
 0x1c3   : > { %v2684_v35 = vmax.f32 %v2602_v41, 0.0  ;;  %v3035_v43 = vsel %vm862_vm0, %v3033_v23, %v3034_v52  ;;  %v3037_v39 = vsel %vm862_vm0, %v3034_v52, %v3036_v60  ;;  %v3164_v11 = vmul.f32 %v8123_v14, %v2758_v48 }
 0x1c4   : > { %v2683_v49 = vmax.f32 %v2597_v55, 0.0  ;;  %v3118_v5 = vadd.f32 %v3035_v43, %v2842_v15  ;;  %v3119_v4 = vadd.f32 %v3037_v39, %v2843_v32  ;;  %v3277_v50 = vrot.slane %v3163_v36, 2 }
 0x1c5   : > { %2717 = vst [vmem:[#allocation2 + $0xf9] sm:$0xff] %v2684_v35  ;;  %v3278_v44 = vrot.slane %v3164_v11, 2  ;;  %v3280_v33 = vrot.slane %v3165_v0, 2  ;;  %v4216_v18 = vadd.f32 %v4112_v10, %v3972_v12  ;;  %v4217_v28 = vadd.f32 %v4114_v27, %v3973_v37 }
 0x1c6   : > { %2716 = vst [vmem:[#allocation2 + $0xf1] sm:$0xff] %v2683_v49  ;;  %v9952_v51 = vrot.slane %v8365_v3, 2  ;;  %v2901_v19 = vmul.f32 %v8119_v8, %v8242_v9  ;;  %v2902_v48 = vmul.f32 %v8119_v8, %v8252_v24  ;;  %v2903_v15 = vmul.f32 %v8119_v8, %v8258_v29 }
 0x1c7   : > { %v3279_v35 = vsel %vm1107_vm1, %v3277_v50, %v3278_v44  ;;  %v3281_v36 = vsel %vm1107_vm1, %v3278_v44, %v3280_v33  ;;  %v4460_v12 = vadd.f32 %v8383_v1, %v4216_v18  ;;  %v8433_v56 = vmul.f32 %v8123_v14, %v8242_v9 }
 0x1c8   : > { %v4358_v13 = vsel %vm1107_vm1, %v9952_v51, %v4357_v16  ;;  %v3362_v37 = vadd.f32 %v3279_v35, %v3118_v5  ;;  %v3363_v3 = vadd.f32 %v3281_v36, %v3119_v4  ;;  %v3003_v27 = vrot.slane %v2901_v19, 1 }
 0x1c9   : > { %v4461_v10 = vadd.f32 %v4358_v13, %v4217_v28  ;;  %v3004_v16 = vrot.slane %v2902_v48, 1  ;;  %v8426_v0 = vadd.f32 %v8217_v47, %v4460_v12  ;;  %v3006_v58 = vrot.slane %v2903_v15, 1 }
 0x1ca   : > { %v8438_v1 = vmul.f32 %v8123_v14, %v8252_v24  ;;  %v8442_v41 = vmul.f32 %v8123_v14, %v8258_v29  ;;  %v8446_v17 = vmul.f32 %v8141_v62, %v8336_v2 }
 0x1cb   : > { %v8429_v32 = vadd.f32 %v8217_v47, %v4461_v10  ;;  %v3005_v57 = vsel %vm862_vm0, %v3003_v27, %v3004_v16  ;;  %v3007_v9 = vsel %vm862_vm0, %v3004_v16, %v3006_v58 }
 0x1cc   : > { %v8452_v60 = vadd.f32 %v3005_v57, %v8377_v45  ;;  %v8454_v55 = vld [vmem:[#allocation2 + $0x100] sm:$0x3]  ;;  %v8457_v24 = vadd.f32 %v3007_v9, %v8387_v63 }
 0x1cd   : > { %v8462_v11 = vld [vmem:[#allocation2 + $0xf0] sm:$0xff]  ;;  %v8464_v49 = vld [vmem:[#allocation2 + $0xf8] sm:$0xff]  ;;  %v4030_v5 = vmul.f32 %v8161_v22, %v8454_v55  ;;  %v4274_v45 = vmul.f32 %v8186_v59, %v8454_v55  ;;  %v3477_v63 = vmul.f32 %v8134_v53, %v8454_v55  ;;  %v8474_v4 = vmul.f32 %v8137_v31, %v8454_v55 }
 0x1ce   : > { %v3952_v50 = vmul.f32 %v8166_v61, %v8462_v11  ;;  %v3953_v44 = vmul.f32 %v8166_v61, %v8464_v49  ;;  %v4028_v33 = vmul.f32 %v8161_v22, %v8462_v11  ;;  %v4029_v18 = vmul.f32 %v8161_v22, %v8464_v49 }
 0x1cf   : > { %v4143_v28 = vrot.slane %v4030_v5, 1  ;;  %v4272_v51 = vmul.f32 %v8186_v59, %v8462_v11  ;;  %v4273_v13 = vmul.f32 %v8186_v59, %v8464_v49  ;;  %v4387_v19 = vrot.slane %v4274_v45, 2 }
 0x1d0   : > { %v3984_v48 = vadd.f32 %v3952_v50, %v3916_v46  ;;  %v3985_v15 = vadd.f32 %v3953_v44, %v3917_v34  ;;  %v4140_v35 = vrot.slane %v4028_v33, 1  ;;  %v4141_v36 = vrot.slane %v4029_v18, 1  ;;  %v8501_v34 = vld [vmem:[%s9912_s4] ss:$0 sm:$0xff] }
 0x1d1   : > { %v4384_v12 = vrot.slane %v4272_v51, 2  ;;  %v4385_v10 = vrot.slane %v4273_v13, 2  ;;  %v3398_v27 = vmul.f32 %v8141_v62, %v8462_v11  ;;  %v3399_v16 = vmul.f32 %v8141_v62, %v8464_v49 }
 0x1d2   : > { %v5956_v58 = vpop.f32.mrb[20].mxu0  ;;  %v4142_v57 = vsel %vm862_vm0, %v4140_v35, %v4141_v36  ;;  %v4144_v9 = vsel %vm862_vm0, %v4141_v36, %v4143_v28  ;;  %v3475_v5 = vmul.f32 %v8134_v53, %v8462_v11  ;;  %v3476_v46 = vmul.f32 %v8134_v53, %v8464_v49 }
 0x1d3   : > { %v2612_v45 = vadd.f32 %v8501_v34, %v5956_v58  ;;  %v2606_v50 = vpop.f32.mrb[21].mxu0  ;;  %v4228_v44 = vadd.f32 %v4142_v57, %v3984_v48  ;;  %v4229_v33 = vadd.f32 %v4144_v9, %v3985_v15  ;;  %v4386_v18 = vsel %vm1107_vm1, %v4384_v12, %v4385_v10 }
 0x1d4   : > { %v2607_v28 = vadd.f32 %v8501_v34, %v2606_v50  ;;  %v4388_v51 = vsel %vm1107_vm1, %v4385_v10, %v4387_v19  ;;  %v3430_v13 = vadd.f32 %v3398_v27, %v3362_v37  ;;  %v3431_v35 = vadd.f32 %v3399_v16, %v3363_v3 }
 0x1d5   : > { %v2686_v36 = vmax.f32 %v2612_v45, 0.0  ;;  %v4472_v39 = vadd.f32 %v4386_v18, %v4228_v44  ;;  %v4473_v29 = vadd.f32 %v4388_v51, %v4229_v33  ;;  %v3589_v43 = vrot.slane %v3475_v5, 1 }
 0x1d6   : > { %v2685_v52 = vmax.f32 %v2607_v28, 0.0  ;;  %v3590_v23 = vrot.slane %v3476_v46, 1  ;;  %v3592_v30 = vrot.slane %v3477_v63, 1  ;;  %v3719_v58 = vmul.f32 %v8137_v31, %v8462_v11 }
 0x1d7   : > { %2719 = vst [vmem:[#allocation2 + $0x111] sm:$0xff] %v2686_v36  ;;  %v4510_v48 = vadd.f32 %v8217_v47, %v4472_v39  ;;  %v4511_v15 = vadd.f32 %v8217_v47, %v4473_v29  ;;  %v3720_v19 = vmul.f32 %v8137_v31, %v8464_v49  ;;  %v3836_v37 = vrot.slane %v8474_v4, 2 }
 0x1d8   : > { %2718 = vst [vmem:[#allocation2 + $0x109] sm:$0xff] %v2685_v52  ;;  %v3591_v3 = vsel %vm862_vm0, %v3589_v43, %v3590_v23  ;;  %v3593_v12 = vsel %vm862_vm0, %v3590_v23, %v3592_v30  ;;  %v3833_v10 = vrot.slane %v3719_v58, 2  ;;  %v2844_v63 = vmul.f32 %v8128_v38, %v8462_v11 }
 0x1d9   : > { %v4542_v27 = vmax.f32 %v4510_v48, 0.0  ;;  %v4543_v16 = vmax.f32 %v4511_v15, 0.0  ;;  %v3674_v57 = vadd.f32 %v3591_v3, %v3430_v13  ;;  %v3675_v39 = vadd.f32 %v3593_v12, %v3431_v35 }
 0x1da   : > { %v3834_v9 = vrot.slane %v3720_v19, 2  ;;  %v2845_v29 = vmul.f32 %v8128_v38, %v8464_v49  ;;  %v2922_v4 = vmul.f32 %v8119_v8, %v8462_v11  ;;  %v2923_v52 = vmul.f32 %v8119_v8, %v8464_v49 }
 0x1db   : > { %v6137_v43 = vpack.c.bf16 %v4543_v16, %v4542_v27  ;;  %v2924_v30 = vmul.f32 %v8119_v8, %v8454_v55  ;;  %v3166_v23 = vmul.f32 %v8123_v14, %v8462_v11  ;;  %v3167_v5 = vmul.f32 %v8123_v14, %v8464_v49 }
 0x1dc   : > { %v3835_v46 = vsel %vm1107_vm1, %v3833_v10, %v3834_v9  ;;  %v3837_v45 = vsel %vm1107_vm1, %v3834_v9, %v3836_v37  ;;  %v3038_v50 = vrot.slane %v2922_v4, 1  ;;  %v3039_v44 = vrot.slane %v2923_v52, 1 }
 0x1dd   : > { %6138 = vmatprep.subr.bf16.mxu1 %v6137_v43  ;;  %v3918_v33 = vadd.f32 %v3835_v46, %v3674_v57  ;;  %v3919_v18 = vadd.f32 %v3837_v45, %v3675_v39  ;;  %v3041_v28 = vrot.slane %v2924_v30, 1  ;;  %v3168_v51 = vmul.f32 %v8123_v14, %v8454_v55 }
 0x1de   : > { %6140 = vmatpush3.bf16.msra.mxu1 %v8250_v42  ;;  %v8535_v13 = vld [vmem:[#allocation2 + $0x118] sm:$0x3]  ;;  %v3040_v11 = vsel %vm862_vm0, %v3038_v50, %v3039_v44  ;;  %v3282_v49 = vrot.slane %v3166_v23, 2  ;;  %v3283_v35 = vrot.slane %v3167_v5, 2  ;;  %v9953_v36 = vmax.f32 %v8426_v0, 0.0 }
 0x1df   : > { %v9954_v58 = vmax.f32 %v8429_v32, 0.0  ;;  %v8544_v15 = vld [vmem:[#allocation2 + $0x108] sm:$0xff]  ;;  %v8546_v19 = vld [vmem:[#allocation2 + $0x110] sm:$0xff]  ;;  %v4033_v55 = vmul.f32 %v8161_v22, %v8535_v13  ;;  %v4277_v42 = vmul.f32 %v8186_v59, %v8535_v13  ;;  %v3042_v37 = vsel %vm862_vm0, %v3039_v44, %v3041_v28 }
 0x1e0   : > { %v3120_v3 = vadd.f32 %v3040_v11, %v2844_v63  ;;  %v3954_v0 = vmul.f32 %v8166_v61, %v8544_v15  ;;  %v3955_v32 = vmul.f32 %v8166_v61, %v8546_v19  ;;  %v4031_v12 = vmul.f32 %v8161_v22, %v8544_v15 }
 0x1e1   : > { %v8542_v48 = vpack.c.bf16 %v9954_v58, %v9953_v36  ;;  %v4032_v10 = vmul.f32 %v8161_v22, %v8546_v19  ;;  %v4148_v27 = vrot.slane %v4033_v55, 1  ;;  %v4275_v16 = vmul.f32 %v8186_v59, %v8544_v15 }
 0x1e2   : > { %v4276_v57 = vmul.f32 %v8186_v59, %v8546_v19  ;;  %v4392_v63 = vrot.slane %v4277_v42, 2  ;;  %v3986_v39 = vadd.f32 %v3954_v0, %v3918_v33  ;;  %v3987_v9 = vadd.f32 %v3955_v32, %v3919_v18 }
 0x1e3   : > { %v4145_v4 = vrot.slane %v4031_v12, 1  ;;  %v4146_v52 = vrot.slane %v4032_v10, 1  ;;  %v4389_v43 = vrot.slane %v4275_v16, 2  ;;  %v3121_v23 = vadd.f32 %v3042_v37, %v2845_v29 }
 0x1e4   : > { %v4390_v30 = vrot.slane %v4276_v57, 2  ;;  %v3284_v5 = vsel %vm1107_vm1, %v3282_v49, %v3283_v35  ;;  %v3285_v50 = vrot.slane %v3168_v51, 2  ;;  %v3400_v49 = vmul.f32 %v8141_v62, %v8544_v15 }
 0x1e5   : > { %v4147_v46 = vsel %vm862_vm0, %v4145_v4, %v4146_v52  ;;  %v4149_v45 = vsel %vm862_vm0, %v4146_v52, %v4148_v27  ;;  %v3364_v44 = vadd.f32 %v3284_v5, %v3120_v3  ;;  %v5959_v28 = vpop.f32.mrb[22].mxu0  ;;  %v3401_v42 = vmul.f32 %v8141_v62, %v8546_v19 }
 0x1e6   : > { %v4230_v11 = vadd.f32 %v4147_v46, %v3986_v39  ;;  %v4231_v36 = vadd.f32 %v4149_v45, %v3987_v9  ;;  %v4391_v58 = vsel %vm1107_vm1, %v4389_v43, %v4390_v30  ;;  %v4393_v33 = vsel %vm1107_vm1, %v4390_v30, %v4392_v63  ;;  %v2616_v55 = vpop.f32.mrb[23].mxu0 }
 0x1e7   : > { %v2622_v18 = vadd.f32 %v8501_v34, %v5959_v28  ;;  %v3286_v29 = vsel %vm1107_vm1, %v3283_v35, %v3285_v50  ;;  %v2617_v51 = vadd.f32 %v8501_v34, %v2616_v55  ;;  %v3432_v12 = vadd.f32 %v3400_v49, %v3364_v44 }
 0x1e8   : > { %v4474_v37 = vadd.f32 %v4391_v58, %v4230_v11  ;;  %v4475_v3 = vadd.f32 %v4393_v33, %v4231_v36  ;;  %v3365_v0 = vadd.f32 %v3286_v29, %v3121_v23  ;;  %v3478_v10 = vmul.f32 %v8134_v53, %v8544_v15 }
 0x1e9   : > { %v2688_v32 = vmax.f32 %v2622_v18, 0.0  ;;  %v3479_v27 = vmul.f32 %v8134_v53, %v8546_v19  ;;  %v2687_v35 = vmax.f32 %v2617_v51, 0.0  ;;  %v3480_v39 = vmul.f32 %v8134_v53, %v8535_v13 }
 0x1ea   : > { %v4512_v16 = vadd.f32 %v8217_v47, %v4474_v37  ;;  %v4513_v57 = vadd.f32 %v8217_v47, %v4475_v3  ;;  %v3433_v63 = vadd.f32 %v3401_v42, %v3365_v0  ;;  %v3594_v9 = vrot.slane %v3478_v10, 1 }
 0x1eb   : > { %2721 = vst [vmem:[#allocation2 + $0x129] sm:$0xff] %v2688_v32  ;;  %v3595_v4 = vrot.slane %v3479_v27, 1  ;;  %v3722_v52 = vmul.f32 %v8137_v31, %v8544_v15  ;;  %2720 = vst [vmem:[#allocation2 + $0x121] sm:$0xff] %v2687_v35  ;;  %v3723_v23 = vmul.f32 %v8137_v31, %v8546_v19  ;;  %v3724_v5 = vmul.f32 %v8137_v31, %v8535_v13 }
 0x1ec   : > { %v4544_v43 = vmax.f32 %v4512_v16, 0.0  ;;  %v4545_v30 = vmax.f32 %v4513_v57, 0.0  ;;  %v3597_v45 = vrot.slane %v3480_v39, 1  ;;  %v2846_v44 = vmul.f32 %v8128_v38, %v8544_v15 }
 0x1ed   : > { %v3596_v46 = vsel %vm862_vm0, %v3594_v9, %v3595_v4  ;;  %v3838_v50 = vrot.slane %v3722_v52, 2  ;;  %v3839_v36 = vrot.slane %v3723_v23, 2  ;;  %v3841_v58 = vrot.slane %v3724_v5, 2 }
 0x1ee   : > { %v6141_v28 = vpack.c.bf16 %v4545_v30, %v4544_v43  ;;  %v3676_v11 = vadd.f32 %v3596_v46, %v3432_v12  ;;  %v3598_v33 = vsel %vm862_vm0, %v3595_v4, %v3597_v45  ;;  %v2847_v18 = vmul.f32 %v8128_v38, %v8546_v19 }
 0x1ef   : > { %v2925_v55 = vmul.f32 %v8119_v8, %v8544_v15  ;;  %v2926_v29 = vmul.f32 %v8119_v8, %v8546_v19  ;;  %v3677_v49 = vadd.f32 %v3598_v33, %v3433_v63  ;;  %v3840_v42 = vsel %vm1107_vm1, %v3838_v50, %v3839_v36 }
 0x1f0   : > { %6142 = vmatprep.subr.bf16.mxu1 %v6141_v28  ;;  %v3842_v51 = vsel %vm1107_vm1, %v3839_v36, %v3841_v58  ;;  %v2927_v37 = vmul.f32 %v8119_v8, %v8535_v13  ;;  %v3920_v3 = vadd.f32 %v3840_v42, %v3676_v11  ;;  %v3169_v12 = vmul.f32 %v8123_v14, %v8544_v15 }
 0x1f1   : > { %6144 = vmatpush3.bf16.msra.mxu1 %v8325_v54  ;;  %v3043_v0 = vrot.slane %v2925_v55, 1  ;;  %v3044_v32 = vrot.slane %v2926_v29, 1  ;;  %v3921_v27 = vadd.f32 %v3842_v51, %v3677_v49  ;;  %v3170_v16 = vmul.f32 %v8123_v14, %v8546_v19 }
 0x1f2   : > { %v8608_v10 = vld [vmem:[#allocation2 + $0x130] sm:$0x3]  ;;  %v3046_v35 = vrot.slane %v2927_v37, 1  ;;  %v3171_v57 = vmul.f32 %v8123_v14, %v8535_v13  ;;  %v8614_v63 = vld [vmem:[#allocation2 + $0x120] sm:$0xff]  ;;  %v8616_v39 = vld [vmem:[#allocation2 + $0x128] sm:$0xff]  ;;  %v3287_v4 = vrot.slane %v3169_v12, 2 }
 0x1f3   : > { %v4036_v54 = vmul.f32 %v8161_v22, %v8608_v10  ;;  %v4280_v15 = vmul.f32 %v8186_v59, %v8608_v10  ;;  %v3045_v9 = vsel %vm862_vm0, %v3043_v0, %v3044_v32  ;;  %v3956_v52 = vmul.f32 %v8166_v61, %v8614_v63 }
 0x1f4   : > { %v3957_v19 = vmul.f32 %v8166_v61, %v8616_v39  ;;  %v4034_v13 = vmul.f32 %v8161_v22, %v8614_v63  ;;  %v4035_v43 = vmul.f32 %v8161_v22, %v8616_v39  ;;  %v4278_v23 = vmul.f32 %v8186_v59, %v8614_v63 }
 0x1f5   : > { %v4153_v30 = vrot.slane %v4036_v54, 1  ;;  %v4279_v5 = vmul.f32 %v8186_v59, %v8616_v39  ;;  %v4397_v46 = vrot.slane %v4280_v15, 2  ;;  %v3988_v45 = vadd.f32 %v3956_v52, %v3920_v3 }
 0x1f6   : > { %v3989_v50 = vadd.f32 %v3957_v19, %v3921_v27  ;;  %v4150_v28 = vrot.slane %v4034_v13, 1  ;;  %v4151_v11 = vrot.slane %v4035_v43, 1  ;;  %v4394_v36 = vrot.slane %v4278_v23, 2 }
 0x1f7   : > { %v4395_v58 = vrot.slane %v4279_v5, 2  ;;  %v3047_v33 = vsel %vm862_vm0, %v3044_v32, %v3046_v35  ;;  %v3122_v55 = vadd.f32 %v3045_v9, %v2846_v44  ;;  %v5962_v29 = vpop.f32.mrb[24].mxu0  ;;  %v3288_v37 = vrot.slane %v3170_v16, 2 }
 0x1f8   : > { %v4152_v49 = vsel %vm862_vm0, %v4150_v28, %v4151_v11  ;;  %v4154_v42 = vsel %vm862_vm0, %v4151_v11, %v4153_v30  ;;  %v3123_v51 = vadd.f32 %v3047_v33, %v2847_v18  ;;  %v2632_v0 = vadd.f32 %v8501_v34, %v5962_v29  ;;  %v2626_v59 = vpop.f32.mrb[25].mxu0 }
 0x1f9   : > { %v4232_v12 = vadd.f32 %v4152_v49, %v3988_v45  ;;  %v4233_v3 = vadd.f32 %v4154_v42, %v3989_v50  ;;  %v4396_v27 = vsel %vm1107_vm1, %v4394_v36, %v4395_v58  ;;  %v2627_v54 = vadd.f32 %v8501_v34, %v2626_v59 }
 0x1fa   : > { %v4398_v15 = vsel %vm1107_vm1, %v4395_v58, %v4397_v46  ;;  %v3289_v44 = vsel %vm1107_vm1, %v3287_v4, %v3288_v37  ;;  %v3290_v32 = vrot.slane %v3171_v57, 2  ;;  %v2690_v35 = vmax.f32 %v2632_v0, 0.0 }
 0x1fb   : > { %v4476_v9 = vadd.f32 %v4396_v27, %v4232_v12  ;;  %v4477_v52 = vadd.f32 %v4398_v15, %v4233_v3  ;;  %v3366_v19 = vadd.f32 %v3289_v44, %v3122_v55  ;;  %v2689_v18 = vmax.f32 %v2627_v54, 0.0 }
 0x1fc   : > { %v3291_v16 = vsel %vm1107_vm1, %v3288_v37, %v3290_v32  ;;  %v3402_v13 = vmul.f32 %v8141_v62, %v8614_v63  ;;  %v3403_v43 = vmul.f32 %v8141_v62, %v8616_v39  ;;  %2723 = vst [vmem:[#allocation2 + $0x141] sm:$0xff] %v2690_v35  ;;  %v3481_v57 = vmul.f32 %v8134_v53, %v8614_v63 }
 0x1fd   : > { %v4514_v30 = vadd.f32 %v8217_v47, %v4476_v9  ;;  %v4515_v23 = vadd.f32 %v8217_v47, %v4477_v52  ;;  %v3367_v4 = vadd.f32 %v3291_v16, %v3123_v51  ;;  %2722 = vst [vmem:[#allocation2 + $0x139] sm:$0xff] %v2689_v18  ;;  %v3482_v46 = vmul.f32 %v8134_v53, %v8616_v39 }
 0x1fe   : > { %v3434_v5 = vadd.f32 %v3402_v13, %v3366_v19  ;;  %v3483_v45 = vmul.f32 %v8134_v53, %v8608_v10  ;;  %v3725_v50 = vmul.f32 %v8137_v31, %v8614_v63  ;;  %v3599_v58 = vrot.slane %v3481_v57, 1 }
 0x1ff   : > { %v4546_v28 = vmax.f32 %v4514_v30, 0.0  ;;  %v4547_v11 = vmax.f32 %v4515_v23, 0.0  ;;  %v3435_v36 = vadd.f32 %v3403_v43, %v3367_v4  ;;  %v3600_v47 = vrot.slane %v3482_v46, 1  ;;  %v8694_v43 = vld [vmem:[%s9913_s5 + $0x8] ss:$0 sm:$0xff] }
 0x200   : > { %v3602_v33 = vrot.slane %v3483_v45, 1  ;;  %v3726_v55 = vmul.f32 %v8137_v31, %v8616_v39  ;;  %v3727_v29 = vmul.f32 %v8137_v31, %v8608_v10  ;;  %v3843_v42 = vrot.slane %v3725_v50, 2 }
 0x201   : > { %v6145_v49 = vpack.c.bf16 %v4547_v11, %v4546_v28  ;;  %v9955_v51 = vrot.slane %v8438_v1, 2  ;;  %v9956_v37 = vrot.slane %v8433_v56, 2  ;;  %v9957_v59 = vrot.slane %v8442_v41, 2 }
 0x202   : > { %v3601_v27 = vsel %vm862_vm0, %v3599_v58, %v3600_v47  ;;  %v3603_v54 = vsel %vm862_vm0, %v3600_v47, %v3602_v33  ;;  %v3844_v15 = vrot.slane %v3726_v55, 2  ;;  %v3846_v44 = vrot.slane %v3727_v29, 2 }
 0x203   : > { %v3249_v0 = vsel %vm1107_vm1, %v9956_v37, %v9955_v51  ;;  %v9958_v12 = vmov %v9955_v51  ;;  %6146 = vmatprep.subr.bf16.mxu1 %v6145_v49  ;;  %v3678_v32 = vadd.f32 %v3601_v27, %v3434_v5  ;;  %v3679_v35 = vadd.f32 %v3603_v54, %v3435_v36  ;;  %v8677_v41 = vld [vmem:[#allocation2 + $0x148] sm:$0x3] }
 0x204   : > { %v3251_v3 = vsel %vm1107_vm1, %v9958_v12, %v9957_v59  ;;  %v3350_v9 = vadd.f32 %v3249_v0, %v8452_v60  ;;  %6148 = vmatpush3.bf16.msra.mxu1 %v8542_v48  ;;  %v3845_v1 = vsel %vm1107_vm1, %v3843_v42, %v3844_v15  ;;  %v3847_v52 = vsel %vm1107_vm1, %v3844_v15, %v3846_v44  ;;  %v8685_v16 = vld [vmem:[#allocation2 + $0x138] sm:$0xff]  ;;  %v8687_v13 = vld [vmem:[#allocation2 + $0x140] sm:$0xff] }
 0x205   : > { %v3351_v56 = vadd.f32 %v3251_v3, %v8457_v24  ;;  %v3387_v19 = vmul.f32 %v8141_v62, %v8338_v40  ;;  %v3457_v18 = vmul.f32 %v8134_v53, %v8336_v2  ;;  %v3922_v60 = vadd.f32 %v3845_v1, %v3678_v32 }
 0x206   : > { %v3923_v24 = vadd.f32 %v3847_v52, %v3679_v35  ;;  %v4039_v48 = vmul.f32 %v8161_v22, %v8677_v41  ;;  %v4283_v30 = vmul.f32 %v8694_v43, %v8677_v41  ;;  %v3958_v23 = vmul.f32 %v8166_v61, %v8685_v16 }
 0x207   : > { %v3959_v4 = vmul.f32 %v8166_v61, %v8687_v13  ;;  %v4037_v57 = vmul.f32 %v8161_v22, %v8685_v16  ;;  %v4038_v5 = vmul.f32 %v8161_v22, %v8687_v13  ;;  %v4281_v45 = vmul.f32 %v8694_v43, %v8685_v16 }
 0x208   : > { %v4158_v46 = vrot.slane %v4039_v48, 1  ;;  %v4282_v50 = vmul.f32 %v8694_v43, %v8687_v13  ;;  %v4402_v28 = vrot.slane %v4283_v30, 2  ;;  %v3990_v11 = vadd.f32 %v3958_v23, %v3922_v60  ;;  %v8723_v60 = vld [vmem:[#allocation2 + $0x78] sm:$0xff] }
 0x209   : > { %v3991_v36 = vadd.f32 %v3959_v4, %v3923_v24  ;;  %v4155_v58 = vrot.slane %v4037_v57, 1  ;;  %v4156_v47 = vrot.slane %v4038_v5, 1  ;;  %v4399_v33 = vrot.slane %v4281_v45, 2  ;;  %v8725_v24 = vld [vmem:[#allocation2 + $0x80] sm:$0xff] }
 0x20a   : > { %v4400_v55 = vrot.slane %v4282_v50, 2  ;;  %v3418_v29 = vadd.f32 %v8446_v17, %v3350_v9  ;;  %v3419_v49 = vadd.f32 %v3387_v19, %v3351_v56  ;;  %v3458_v37 = vmul.f32 %v8134_v53, %v8338_v40  ;;  %v5965_v59 = vpop.f32.mrb[26].mxu0  ;;  %v8734_v4 = vld [vmem:[%s9914_s6] ss:$0 sm:$0xff] }
 0x20b   : > { %v4157_v42 = vsel %vm862_vm0, %v4155_v58, %v4156_v47  ;;  %v4159_v51 = vsel %vm862_vm0, %v4156_v47, %v4158_v46  ;;  %v3459_v0 = vmul.f32 %v8134_v53, %v8340_v6  ;;  %v2642_v17 = vadd.f32 %v8501_v34, %v5965_v59  ;;  %v2636_v15 = vpop.f32.mrb[27].mxu0  ;;  %v8738_v46 = vld [vmem:[#allocation2 + $0x88] sm:$0x3] }
 0x20c   : > { %v4234_v12 = vadd.f32 %v4157_v42, %v3990_v11  ;;  %v4235_v3 = vadd.f32 %v4159_v51, %v3991_v36  ;;  %v4401_v27 = vsel %vm1107_vm1, %v4399_v33, %v4400_v55  ;;  %v4403_v54 = vsel %vm1107_vm1, %v4400_v55, %v4402_v28 }
 0x20d   : > { %v3559_v44 = vrot.slane %v3457_v18, 1  ;;  %v3560_v32 = vrot.slane %v3458_v37, 1  ;;  %v3562_v35 = vrot.slane %v3459_v0, 1  ;;  %v2637_v9 = vadd.f32 %v8501_v34, %v2636_v15 }
 0x20e   : > { %v4478_v56 = vadd.f32 %v4401_v27, %v4234_v12  ;;  %v4479_v1 = vadd.f32 %v4403_v54, %v4235_v3  ;;  %v3701_v52 = vmul.f32 %v8137_v31, %v8336_v2  ;;  %v2692_v19 = vmax.f32 %v2642_v17, 0.0 }
 0x20f   : > { %v3561_v48 = vsel %vm862_vm0, %v3559_v44, %v3560_v32  ;;  %v3563_v30 = vsel %vm862_vm0, %v3560_v32, %v3562_v35  ;;  %v3702_v18 = vmul.f32 %v8137_v31, %v8338_v40  ;;  %v2691_v23 = vmax.f32 %v2637_v9, 0.0 }
 0x210   : > { %v4516_v2 = vadd.f32 %v8734_v4, %v4478_v56  ;;  %v4517_v57 = vadd.f32 %v8734_v4, %v4479_v1  ;;  %v3662_v5 = vadd.f32 %v3561_v48, %v3418_v29  ;;  %2725 = vst [vmem:[#allocation2 + $0x159] sm:$0xff] %v2692_v19  ;;  %v3663_v45 = vadd.f32 %v3563_v30, %v3419_v49 }
 0x211   : > { %v3703_v50 = vmul.f32 %v8137_v31, %v8340_v6  ;;  %v3803_v28 = vrot.slane %v3701_v52, 2  ;;  %v3804_v40 = vrot.slane %v3702_v18, 2  ;;  %2724 = vst [vmem:[#allocation2 + $0x151] sm:$0xff] %v2691_v23  ;;  %v3942_v58 = vmul.f32 %v8166_v61, %v8723_v60 }
 0x212   : > { %v4548_v11 = vmax.f32 %v4516_v2, 0.0  ;;  %v4549_v36 = vmax.f32 %v4517_v57, 0.0  ;;  %v3943_v47 = vmul.f32 %v8166_v61, %v8725_v24  ;;  %v4013_v29 = vmul.f32 %v8161_v22, %v8723_v60 }
 0x213   : > { %v3805_v33 = vsel %vm1107_vm1, %v3803_v28, %v3804_v40  ;;  %v3806_v55 = vrot.slane %v3703_v50, 2  ;;  %v4014_v6 = vmul.f32 %v8161_v22, %v8725_v24  ;;  %v4015_v51 = vmul.f32 %v8161_v22, %v8738_v46 }
 0x214   : > { %v6149_v49 = vpack.c.bf16 %v4549_v36, %v4548_v11  ;;  %v3906_v42 = vadd.f32 %v3805_v33, %v3662_v5  ;;  %v4257_v37 = vmul.f32 %v8694_v43, %v8723_v60  ;;  %v4115_v59 = vrot.slane %v4013_v29, 1 }
 0x215   : > { %v3807_v0 = vsel %vm1107_vm1, %v3804_v40, %v3806_v55  ;;  %v4116_v12 = vrot.slane %v4014_v6, 1  ;;  %v4258_v3 = vmul.f32 %v8694_v43, %v8725_v24  ;;  %v4118_v17 = vrot.slane %v4015_v51, 1 }
 0x216   : > { %6150 = vmatprep.subr.bf16.mxu1 %v6149_v49  ;;  %v3907_v27 = vadd.f32 %v3807_v0, %v3663_v45  ;;  %v3974_v54 = vadd.f32 %v3942_v58, %v3906_v42  ;;  %v4259_v15 = vmul.f32 %v8694_v43, %v8738_v46  ;;  %v4359_v32 = vrot.slane %v4257_v37, 2 }
 0x217   : > { %v4117_v44 = vsel %vm862_vm0, %v4115_v59, %v4116_v12  ;;  %v4360_v35 = vrot.slane %v4258_v3, 2  ;;  %v2848_v9 = vmul.f32 %v8128_v38, %v8614_v63  ;;  %v4119_v1 = vsel %vm862_vm0, %v4116_v12, %v4118_v17 }
 0x218   : > { %v3975_v56 = vadd.f32 %v3943_v47, %v3907_v27  ;;  %v4218_v52 = vadd.f32 %v4117_v44, %v3974_v54  ;;  %v4362_v19 = vrot.slane %v4259_v15, 2  ;;  %v2849_v30 = vmul.f32 %v8128_v38, %v8616_v39 }
 0x219   : > { %v4361_v48 = vsel %vm1107_vm1, %v4359_v32, %v4360_v35  ;;  %v2928_v18 = vmul.f32 %v8119_v8, %v8614_v63  ;;  %v2929_v23 = vmul.f32 %v8119_v8, %v8616_v39  ;;  %v2930_v45 = vmul.f32 %v8119_v8, %v8608_v10  ;;  %v8791_v32 = vld [vmem:[#allocation2 + $0x150] sm:$0xff] }
 0x21a   : > { %v4219_v2 = vadd.f32 %v4119_v1, %v3975_v56  ;;  %v4363_v57 = vsel %vm1107_vm1, %v4360_v35, %v4362_v19  ;;  %v4462_v5 = vadd.f32 %v4361_v48, %v4218_v52  ;;  %v3172_v40 = vmul.f32 %v8123_v14, %v8614_v63  ;;  %v8798_v19 = vld [vmem:[#allocation2 + $0x158] sm:$0xff] }
 0x21b   : > { %v3048_v50 = vrot.slane %v2928_v18, 1  ;;  %v3049_v28 = vrot.slane %v2929_v23, 1  ;;  %v3173_v11 = vmul.f32 %v8123_v14, %v8616_v39  ;;  %v3051_v47 = vrot.slane %v2930_v45, 1 }
 0x21c   : > { %v4463_v36 = vadd.f32 %v4363_v57, %v4219_v2  ;;  %v4500_v58 = vadd.f32 %v8734_v4, %v4462_v5  ;;  %v3174_v33 = vmul.f32 %v8123_v14, %v8608_v10  ;;  %v3292_v29 = vrot.slane %v3172_v40, 2  ;;  %v5968_v42 = vpop.f32.mrb[28].mxu0  ;;  %v8804_v5 = vld [vmem:[#allocation2 + $0x160] sm:$0x3] }
 0x21d   : > { %v3050_v55 = vsel %vm862_vm0, %v3048_v50, %v3049_v28  ;;  %v3293_v6 = vrot.slane %v3173_v11, 2  ;;  %v3404_v49 = vmul.f32 %v8141_v62, %v8685_v16  ;;  %v3052_v39 = vsel %vm862_vm0, %v3049_v28, %v3051_v47  ;;  %v2646_v59 = vpop.f32.mrb[29].mxu0 }
 0x21e   : > { %v4501_v63 = vadd.f32 %v8734_v4, %v4463_v36  ;;  %v4532_v51 = vmax.f32 %v4500_v58, 0.0  ;;  %v3124_v37 = vadd.f32 %v3050_v55, %v2848_v9  ;;  %v2652_v0 = vadd.f32 %v8501_v34, %v5968_v42 }
 0x21f   : > { %v3125_v12 = vadd.f32 %v3052_v39, %v2849_v30  ;;  %v3294_v10 = vsel %vm1107_vm1, %v3292_v29, %v3293_v6  ;;  %v3295_v3 = vrot.slane %v3174_v33, 2  ;;  %v2647_v27 = vadd.f32 %v8501_v34, %v2646_v59 }
 0x220   : > { %v4533_v54 = vmax.f32 %v4501_v63, 0.0  ;;  %v3368_v17 = vadd.f32 %v3294_v10, %v3124_v37  ;;  %v3405_v15 = vmul.f32 %v8141_v62, %v8687_v13  ;;  %v2694_v44 = vmax.f32 %v2652_v0, 0.0 }
 0x221   : > { %v3296_v35 = vsel %vm1107_vm1, %v3293_v6, %v3295_v3  ;;  %v3484_v9 = vmul.f32 %v8134_v53, %v8685_v16  ;;  %v3485_v56 = vmul.f32 %v8134_v53, %v8687_v13  ;;  %v2693_v1 = vmax.f32 %v2647_v27, 0.0 }
 0x222   : > { %v6151_v52 = vpack.c.bf16 %v4533_v54, %v4532_v51  ;;  %v3369_v48 = vadd.f32 %v3296_v35, %v3125_v12  ;;  %v3436_v30 = vadd.f32 %v3404_v49, %v3368_v17  ;;  %2727 = vst [vmem:[#allocation2 + $0x171] sm:$0xff] %v2694_v44  ;;  %v3486_v18 = vmul.f32 %v8134_v53, %v8677_v41  ;;  %v6323_v44 = vld [vmem:[#allocation2 + $0x60] sm:$0xff] }
 0x223   : > { %v3604_v23 = vrot.slane %v3484_v9, 1  ;;  %v3605_v2 = vrot.slane %v3485_v56, 1  ;;  %v3728_v57 = vmul.f32 %v8137_v31, %v8685_v16  ;;  %2726 = vst [vmem:[#allocation2 + $0x169] sm:$0xff] %v2693_v1  ;;  %v3729_v50 = vmul.f32 %v8137_v31, %v8687_v13 }
 0x224   : > { %6152 = vmatpush3.bf16.msra.mxu1 %v6151_v52  ;;  %v3437_v45 = vadd.f32 %v3405_v15, %v3369_v48  ;;  %v3730_v28 = vmul.f32 %v8137_v31, %v8677_v41  ;;  %v3960_v40 = vmul.f32 %v8166_v61, %v8791_v32  ;;  %v3607_v36 = vrot.slane %v3486_v18, 1  ;;  %v6324_v18 = vld [vmem:[#allocation2 + $0x68] sm:$0xff] }
 0x225   : > { %v3606_v11 = vsel %vm862_vm0, %v3604_v23, %v3605_v2  ;;  %v3848_v58 = vrot.slane %v3728_v57, 2  ;;  %v3961_v47 = vmul.f32 %v8166_v61, %v8798_v19  ;;  %v3849_v55 = vrot.slane %v3729_v50, 2 }
 0x226   : > { %v3680_v33 = vadd.f32 %v3606_v11, %v3436_v30  ;;  %v3851_v29 = vrot.slane %v3730_v28, 2  ;;  %v4040_v6 = vmul.f32 %v8161_v22, %v8791_v32  ;;  %v3608_v49 = vsel %vm862_vm0, %v3605_v2, %v3607_v36  ;;  %v6325_v28 = vld [vmem:[#allocation2 + $0x70] sm:$0x3] }
 0x227   : > { %v4041_v42 = vmul.f32 %v8161_v22, %v8798_v19  ;;  %v4042_v63 = vmul.f32 %v8161_v22, %v8804_v5  ;;  %v4284_v51 = vmul.f32 %v8694_v43, %v8791_v32  ;;  %v3681_v39 = vadd.f32 %v3608_v49, %v3437_v45 }
 0x228   : > { %v3850_v37 = vsel %vm1107_vm1, %v3848_v58, %v3849_v55  ;;  %v3852_v0 = vsel %vm1107_vm1, %v3849_v55, %v3851_v29  ;;  %v4160_v59 = vrot.slane %v4040_v6, 1  ;;  %v4285_v27 = vmul.f32 %v8694_v43, %v8798_v19 }
 0x229   : > { %v3924_v12 = vadd.f32 %v3850_v37, %v3680_v33  ;;  %v4161_v10 = vrot.slane %v4041_v42, 1  ;;  %v4163_v3 = vrot.slane %v4042_v63, 1  ;;  %v3925_v54 = vadd.f32 %v3852_v0, %v3681_v39 }
 0x22a   : > { %v4286_v17 = vmul.f32 %v8694_v43, %v8804_v5  ;;  %v4404_v15 = vrot.slane %v4284_v51, 2  ;;  %v2832_v35 = vmul.f32 %v6323_v44, %v8128_v38  ;;  %v4405_v52 = vrot.slane %v4285_v27, 2 }
 0x22b   : > { %v3992_v9 = vadd.f32 %v3960_v40, %v3924_v12  ;;  %v4162_v56 = vsel %vm862_vm0, %v4160_v59, %v4161_v10  ;;  %v4164_v1 = vsel %vm862_vm0, %v4161_v10, %v4163_v3  ;;  %v3993_v48 = vadd.f32 %v3961_v47, %v3925_v54 }
 0x22c   : > { %v4407_v30 = vrot.slane %v4286_v17, 2  ;;  %v2833_v23 = vmul.f32 %v6324_v18, %v8128_v38  ;;  %v2904_v2 = vmul.f32 %v6323_v44, %v8119_v8  ;;  %v4406_v45 = vsel %vm1107_vm1, %v4404_v15, %v4405_v52 }
 0x22d   : > { %v4236_v57 = vadd.f32 %v4162_v56, %v3992_v9  ;;  %v2905_v50 = vmul.f32 %v6324_v18, %v8119_v8  ;;  %v2906_v40 = vmul.f32 %v6325_v28, %v8119_v8  ;;  %v4237_v11 = vadd.f32 %v4164_v1, %v3993_v48 }
 0x22e   : > { %v4408_v36 = vsel %vm1107_vm1, %v4405_v52, %v4407_v30  ;;  %v3008_v58 = vrot.slane %v2904_v2, 1  ;;  %v3148_v47 = vmul.f32 %v6323_v44, %v8123_v14  ;;  %v3149_v6 = vmul.f32 %v6324_v18, %v8123_v14  ;;  %v5971_v39 = vpop.f32.mrb[30].mxu0  ;;  %v8853_v2 = vld [vmem:[#allocation2 + $0x90] sm:$0xff] }
 0x22f   : > { %v4480_v33 = vadd.f32 %v4406_v45, %v4236_v57  ;;  %v3009_v55 = vrot.slane %v2905_v50, 1  ;;  %v3011_v29 = vrot.slane %v2906_v40, 1  ;;  %v4481_v49 = vadd.f32 %v4408_v36, %v4237_v11  ;;  %v2656_v3 = vpop.f32.mrb[31].mxu0  ;;  %v8860_v45 = vld [vmem:[#allocation2 + $0x98] sm:$0xff] }
 0x230   : > { %v3150_v42 = vmul.f32 %v6325_v28, %v8123_v14  ;;  %v3252_v63 = vrot.slane %v3148_v47, 2  ;;  %v3388_v51 = vmul.f32 %v8141_v62, %v8723_v60  ;;  %v3253_v12 = vrot.slane %v3149_v6, 2 }
 0x231   : > { %v4518_v37 = vadd.f32 %v8734_v4, %v4480_v33  ;;  %v3010_v0 = vsel %vm862_vm0, %v3008_v58, %v3009_v55  ;;  %v3012_v59 = vsel %vm862_vm0, %v3009_v55, %v3011_v29  ;;  %v2662_v10 = vadd.f32 %v8501_v34, %v5971_v39  ;;  %v8868_v33 = vld [vmem:[#allocation2 + $0xa0] sm:$0x3] }
 0x232   : > { %v4519_v27 = vadd.f32 %v8734_v4, %v4481_v49  ;;  %v3108_v54 = vadd.f32 %v3010_v0, %v2832_v35  ;;  %v3109_v17 = vadd.f32 %v3012_v59, %v2833_v23  ;;  %v2657_v15 = vadd.f32 %v8501_v34, %v2656_v3 }
 0x233   : > { %v4550_v44 = vmax.f32 %v4518_v37, 0.0  ;;  %v3254_v9 = vsel %vm1107_vm1, %v3252_v63, %v3253_v12  ;;  %v3255_v56 = vrot.slane %v3150_v42, 2  ;;  %v2696_v1 = vmax.f32 %v2662_v10, 0.0  ;;  %v2788_v10 = vld [vmem:[%s9915_s7 + $0x8] sm:$0xff] }
 0x234   : > { %v4551_v52 = vmax.f32 %v4519_v27, 0.0  ;;  %v3352_v48 = vadd.f32 %v3254_v9, %v3108_v54  ;;  %v3389_v30 = vmul.f32 %v8141_v62, %v8725_v24  ;;  %v2695_v18 = vmax.f32 %v2657_v15, 0.0  ;;  %4622 = vmatprep.mubr.f32.mxu1 %v2788_v10 }
 0x235   : > { %v3256_v57 = vsel %vm1107_vm1, %v3253_v12, %v3255_v56  ;;  %v3460_v35 = vmul.f32 %v8134_v53, %v8723_v60  ;;  %v3461_v34 = vmul.f32 %v8134_v53, %v8725_v24  ;;  %2729 = vst [vmem:[#allocation2 + $0x189] sm:$0xff] %v2696_v1  ;;  %v3462_v40 = vmul.f32 %v8134_v53, %v8738_v46 }
 0x236   : > { %v6153_v23 = vpack.c.bf16 %v4551_v52, %v4550_v44  ;;  %v3353_v50 = vadd.f32 %v3256_v57, %v3109_v17  ;;  %v3420_v28 = vadd.f32 %v3388_v51, %v3352_v48  ;;  %2728 = vst [vmem:[#allocation2 + $0x181] sm:$0xff] %v2695_v18  ;;  %v3704_v58 = vmul.f32 %v8137_v31, %v8723_v60 }
 0x237   : > { %v3564_v11 = vrot.slane %v3460_v35, 1  ;;  %v3565_v36 = vrot.slane %v3461_v34, 1  ;;  %v3705_v47 = vmul.f32 %v8137_v31, %v8725_v24  ;;  %v3567_v29 = vrot.slane %v3462_v40, 1 }
 0x238   : > { %6154 = vmatprep.subr.bf16.mxu1 %v6153_v23  ;;  %v3421_v55 = vadd.f32 %v3389_v30, %v3353_v50  ;;  %v3706_v6 = vmul.f32 %v8137_v31, %v8738_v46  ;;  %v3944_v49 = vmul.f32 %v8166_v61, %v8853_v2  ;;  %v3808_v63 = vrot.slane %v3704_v58, 2 }
 0x239   : > { %v3566_v42 = vsel %vm862_vm0, %v3564_v11, %v3565_v36  ;;  %v3809_v51 = vrot.slane %v3705_v47, 2  ;;  %v3945_v39 = vmul.f32 %v8166_v61, %v8860_v45  ;;  %v3568_v37 = vsel %vm862_vm0, %v3565_v36, %v3567_v29 }
 0x23a   : > { %v3664_v0 = vadd.f32 %v3566_v42, %v3420_v28  ;;  %v3811_v59 = vrot.slane %v3706_v6, 2  ;;  %v4016_v12 = vmul.f32 %v8161_v22, %v8853_v2  ;;  %v3665_v3 = vadd.f32 %v3568_v37, %v3421_v55 }
 0x23b   : > { %v3810_v27 = vsel %vm1107_vm1, %v3808_v63, %v3809_v51  ;;  %v4017_v54 = vmul.f32 %v8161_v22, %v8860_v45  ;;  %v4018_v17 = vmul.f32 %v8161_v22, %v8868_v33  ;;  %v4260_v56 = vmul.f32 %v8694_v43, %v8853_v2 }
 0x23c   : > { %v3812_v15 = vsel %vm1107_vm1, %v3809_v51, %v3811_v59  ;;  %v3908_v44 = vadd.f32 %v3810_v27, %v3664_v0  ;;  %v4120_v9 = vrot.slane %v4016_v12, 1  ;;  %v4261_v30 = vmul.f32 %v8694_v43, %v8860_v45 }
 0x23d   : > { %v3909_v1 = vadd.f32 %v3812_v15, %v3665_v3  ;;  %v4121_v52 = vrot.slane %v4017_v54, 1  ;;  %v4123_v48 = vrot.slane %v4018_v17, 1  ;;  %v4262_v57 = vmul.f32 %v8694_v43, %v8868_v33 }
 0x23e   : > { %v3976_v18 = vadd.f32 %v3944_v49, %v3908_v44  ;;  %v4364_v35 = vrot.slane %v4260_v56, 2  ;;  %v2850_v34 = vmul.f32 %v8128_v38, %v8685_v16  ;;  %v4365_v40 = vrot.slane %v4261_v30, 2 }
 0x23f   : > { %v3977_v23 = vadd.f32 %v3945_v39, %v3909_v1  ;;  %v4122_v50 = vsel %vm862_vm0, %v4120_v9, %v4121_v52  ;;  %v4124_v28 = vsel %vm862_vm0, %v4121_v52, %v4123_v48  ;;  %v4367_v36 = vrot.slane %v4262_v57, 2 }
 0x240   : > { %v4220_v11 = vadd.f32 %v4122_v50, %v3976_v18  ;;  %v2851_v58 = vmul.f32 %v8128_v38, %v8687_v13  ;;  %v2931_v47 = vmul.f32 %v8119_v8, %v8685_v16  ;;  %v4366_v29 = vsel %vm1107_vm1, %v4364_v35, %v4365_v40  ;;  %v8926_v18 = vld [vmem:[#allocation2 + $0x168] sm:$0xff] }
 0x241   : > { %v4221_v55 = vadd.f32 %v4124_v28, %v3977_v23  ;;  %v2932_v6 = vmul.f32 %v8119_v8, %v8687_v13  ;;  %v2933_v49 = vmul.f32 %v8119_v8, %v8677_v41  ;;  %v4368_v42 = vsel %vm1107_vm1, %v4365_v40, %v4367_v36  ;;  %v8933_v28 = vld [vmem:[#allocation2 + $0x170] sm:$0xff] }
 0x242   : > { %v4464_v63 = vadd.f32 %v4366_v29, %v4220_v11  ;;  %v3053_v51 = vrot.slane %v2931_v47, 1  ;;  %v3175_v39 = vmul.f32 %v8123_v14, %v8685_v16  ;;  %v3176_v12 = vmul.f32 %v8123_v14, %v8687_v13 }
 0x243   : > { %v4465_v37 = vadd.f32 %v4368_v42, %v4221_v55  ;;  %v3054_v0 = vrot.slane %v2932_v6, 1  ;;  %v3056_v59 = vrot.slane %v2933_v49, 1  ;;  %v3177_v3 = vmul.f32 %v8123_v14, %v8677_v41  ;;  %v8939_v6 = vld [vmem:[#allocation2 + $0x178] sm:$0x3] }
 0x244   : > { %v4502_v10 = vadd.f32 %v8734_v4, %v4464_v63  ;;  %v3297_v27 = vrot.slane %v3175_v39, 2  ;;  %v3406_v54 = vmul.f32 %v8141_v62, %v8791_v32  ;;  %v3298_v44 = vrot.slane %v3176_v12, 2 }
 0x245   : > { %v4503_v17 = vadd.f32 %v8734_v4, %v4465_v37  ;;  %v3055_v15 = vsel %vm862_vm0, %v3053_v51, %v3054_v0  ;;  %v3057_v16 = vsel %vm862_vm0, %v3054_v0, %v3056_v59  ;;  %v3300_v13 = vrot.slane %v3177_v3, 2 }
 0x246   : > { %v4534_v9 = vmax.f32 %v4502_v10, 0.0  ;;  %v3126_v56 = vadd.f32 %v3055_v15, %v2850_v34  ;;  %v3127_v1 = vadd.f32 %v3057_v16, %v2851_v58  ;;  %v3299_v48 = vsel %vm1107_vm1, %v3297_v27, %v3298_v44 }
 0x247   : > { %v4535_v52 = vmax.f32 %v4503_v17, 0.0  ;;  %v3407_v41 = vmul.f32 %v8141_v62, %v8798_v19  ;;  %v3487_v30 = vmul.f32 %v8134_v53, %v8791_v32  ;;  %v3301_v57 = vsel %vm1107_vm1, %v3298_v44, %v3300_v13 }
 0x248   : > { %v3370_v35 = vadd.f32 %v3299_v48, %v3126_v56  ;;  %v3488_v23 = vmul.f32 %v8134_v53, %v8798_v19  ;;  %v3489_v34 = vmul.f32 %v8134_v53, %v8804_v5  ;;  %v3371_v40 = vadd.f32 %v3301_v57, %v3127_v1 }
 0x249   : > { %v6155_v50 = vpack.c.bf16 %v4535_v52, %v4534_v9  ;;  %v3609_v11 = vrot.slane %v3487_v30, 1  ;;  %v3731_v36 = vmul.f32 %v8137_v31, %v8791_v32  ;;  %v3732_v29 = vmul.f32 %v8137_v31, %v8798_v19 }
 0x24a   : > { %v3438_v58 = vadd.f32 %v3406_v54, %v3370_v35  ;;  %v3610_v47 = vrot.slane %v3488_v23, 1  ;;  %v3612_v55 = vrot.slane %v3489_v34, 1  ;;  %v3439_v49 = vadd.f32 %v3407_v41, %v3371_v40 }
 0x24b   : > { %6156 = vmatpush3.bf16.msra.mxu1 %v6155_v50  ;;  %v3733_v42 = vmul.f32 %v8137_v31, %v8804_v5  ;;  %v3853_v63 = vrot.slane %v3731_v36, 2  ;;  %v3962_v51 = vmul.f32 %v8166_v61, %v8926_v18  ;;  %v3854_v0 = vrot.slane %v3732_v29, 2 }
 0x24c   : > { %v3611_v39 = vsel %vm862_vm0, %v3609_v11, %v3610_v47  ;;  %v3613_v37 = vsel %vm862_vm0, %v3610_v47, %v3612_v55  ;;  %v3963_v59 = vmul.f32 %v8166_v61, %v8933_v28  ;;  %v4043_v27 = vmul.f32 %v8161_v22, %v8926_v18 }
 0x24d   : > { %v3682_v12 = vadd.f32 %v3611_v39, %v3438_v58  ;;  %v3683_v10 = vadd.f32 %v3613_v37, %v3439_v49  ;;  %v3856_v3 = vrot.slane %v3733_v42, 2  ;;  %v3855_v54 = vsel %vm1107_vm1, %v3853_v63, %v3854_v0 }
 0x24e   : > { %v4044_v17 = vmul.f32 %v8161_v22, %v8933_v28  ;;  %v4045_v15 = vmul.f32 %v8161_v22, %v8939_v6  ;;  %v4287_v16 = vmul.f32 %v8694_v43, %v8926_v18  ;;  %v4165_v56 = vrot.slane %v4043_v27, 1 }
 0x24f   : > { %v3857_v44 = vsel %vm1107_vm1, %v3854_v0, %v3856_v3  ;;  %v3926_v9 = vadd.f32 %v3855_v54, %v3682_v12  ;;  %v4288_v1 = vmul.f32 %v8694_v43, %v8933_v28  ;;  %v4289_v41 = vmul.f32 %v8694_v43, %v8939_v6 }
 0x250   : > { %v3927_v13 = vadd.f32 %v3857_v44, %v3683_v10  ;;  %v4166_v52 = vrot.slane %v4044_v17, 1  ;;  %v4168_v48 = vrot.slane %v4045_v15, 1  ;;  %v4409_v57 = vrot.slane %v4287_v16, 2 }
 0x251   : > { %v3994_v30 = vadd.f32 %v3962_v51, %v3926_v9  ;;  %v4410_v35 = vrot.slane %v4288_v1, 2  ;;  %v2834_v23 = vmul.f32 %v8128_v38, %v8723_v60  ;;  %v4412_v11 = vrot.slane %v4289_v41, 2 }
 0x252   : > { %v3995_v34 = vadd.f32 %v3963_v59, %v3927_v13  ;;  %v4167_v50 = vsel %vm862_vm0, %v4165_v56, %v4166_v52  ;;  %v4169_v40 = vsel %vm862_vm0, %v4166_v52, %v4168_v48  ;;  %v2835_v47 = vmul.f32 %v8128_v38, %v8725_v24 }
 0x253   : > { %v4238_v36 = vadd.f32 %v4167_v50, %v3994_v30  ;;  %v4411_v58 = vsel %vm1107_vm1, %v4409_v57, %v4410_v35  ;;  %v2907_v55 = vmul.f32 %v8119_v8, %v8723_v60  ;;  %v4413_v49 = vsel %vm1107_vm1, %v4410_v35, %v4412_v11  ;;  %v8995_v30 = vld [vmem:[#allocation2 + $0xa8] sm:$0xff] }
 0x254   : > { %v4239_v29 = vadd.f32 %v4169_v40, %v3995_v34  ;;  %v2908_v42 = vmul.f32 %v8119_v8, %v8725_v24  ;;  %v2909_v63 = vmul.f32 %v8119_v8, %v8738_v46  ;;  %v3151_v37 = vmul.f32 %v8123_v14, %v8723_v60  ;;  %v9001_v40 = vld [vmem:[#allocation2 + $0xb0] sm:$0xff] }
 0x255   : > { %v4482_v51 = vadd.f32 %v4411_v58, %v4238_v36  ;;  %v3013_v39 = vrot.slane %v2907_v55, 1  ;;  %v3152_v0 = vmul.f32 %v8123_v14, %v8725_v24  ;;  %v3153_v3 = vmul.f32 %v8123_v14, %v8738_v46 }
 0x256   : > { %v4483_v59 = vadd.f32 %v4413_v49, %v4239_v29  ;;  %v3014_v12 = vrot.slane %v2908_v42, 1  ;;  %v3016_v10 = vrot.slane %v2909_v63, 1  ;;  %v3257_v54 = vrot.slane %v3151_v37, 2  ;;  %v9007_v42 = vld [vmem:[#allocation2 + $0xb8] sm:$0x3] }
 0x257   : > { %v4520_v27 = vadd.f32 %v8734_v4, %v4482_v51  ;;  %v3258_v17 = vrot.slane %v3152_v0, 2  ;;  %v3390_v15 = vmul.f32 %v8141_v62, %v8853_v2  ;;  %v3260_v24 = vrot.slane %v3153_v3, 2 }
 0x258   : > { %v4521_v16 = vadd.f32 %v8734_v4, %v4483_v59  ;;  %v3015_v60 = vsel %vm862_vm0, %v3013_v39, %v3014_v12  ;;  %v3017_v44 = vsel %vm862_vm0, %v3014_v12, %v3016_v10  ;;  %v3391_v48 = vmul.f32 %v8141_v62, %v8860_v45 }
 0x259   : > { %v4552_v9 = vmax.f32 %v4520_v27, 0.0  ;;  %v3110_v56 = vadd.f32 %v3015_v60, %v2834_v23  ;;  %v3111_v1 = vadd.f32 %v3017_v44, %v2835_v47  ;;  %v3259_v13 = vsel %vm1107_vm1, %v3257_v54, %v3258_v17 }
 0x25a   : > { %v4553_v46 = vmax.f32 %v4521_v16, 0.0  ;;  %v3261_v52 = vsel %vm1107_vm1, %v3258_v17, %v3260_v24  ;;  %v3463_v41 = vmul.f32 %v8134_v53, %v8853_v2  ;;  %v3464_v34 = vmul.f32 %v8134_v53, %v8860_v45 }
 0x25b   : > { %v3354_v57 = vadd.f32 %v3259_v13, %v3110_v56  ;;  %v3355_v35 = vadd.f32 %v3261_v52, %v3111_v1  ;;  %v3465_v23 = vmul.f32 %v8134_v53, %v8868_v33  ;;  %v3707_v36 = vmul.f32 %v8137_v31, %v8853_v2 }
 0x25c   : > { %v6157_v50 = vpack.c.bf16 %v4553_v46, %v4552_v9  ;;  %v3569_v11 = vrot.slane %v3463_v41, 1  ;;  %v3708_v58 = vmul.f32 %v8137_v31, %v8860_v45  ;;  %v3570_v29 = vrot.slane %v3464_v34, 1 }
 0x25d   : > { %v3422_v47 = vadd.f32 %v3390_v15, %v3354_v57  ;;  %v3423_v55 = vadd.f32 %v3391_v48, %v3355_v35  ;;  %v3572_v49 = vrot.slane %v3465_v23, 1  ;;  %v3709_v63 = vmul.f32 %v8137_v31, %v8868_v33 }
 0x25e   : > { %6158 = vmatprep.subr.bf16.mxu1 %v6157_v50  ;;  %v3813_v51 = vrot.slane %v3707_v36, 2  ;;  %v3814_v39 = vrot.slane %v3708_v58, 2  ;;  %v3946_v37 = vmul.f32 %v8166_v61, %v8995_v30  ;;  %v3571_v0 = vsel %vm862_vm0, %v3569_v11, %v3570_v29 }
 0x25f   : > { %v3573_v59 = vsel %vm862_vm0, %v3570_v29, %v3572_v49  ;;  %v3947_v12 = vmul.f32 %v8166_v61, %v9001_v40  ;;  %v4019_v10 = vmul.f32 %v8161_v22, %v8995_v30  ;;  %v3666_v3 = vadd.f32 %v3571_v0, %v3422_v47 }
 0x260   : > { %v3667_v27 = vadd.f32 %v3573_v59, %v3423_v55  ;;  %v3815_v54 = vsel %vm1107_vm1, %v3813_v51, %v3814_v39  ;;  %v3816_v17 = vrot.slane %v3709_v63, 2  ;;  %v4020_v15 = vmul.f32 %v8161_v22, %v9001_v40 }
 0x261   : > { %v4021_v16 = vmul.f32 %v8161_v22, %v9007_v42  ;;  %v4125_v60 = vrot.slane %v4019_v10, 1  ;;  %v4263_v44 = vmul.f32 %v8694_v43, %v8995_v30  ;;  %v3910_v9 = vadd.f32 %v3815_v54, %v3666_v3 }
 0x262   : > { %v3817_v24 = vsel %vm1107_vm1, %v3814_v39, %v3816_v17  ;;  %v4264_v56 = vmul.f32 %v8694_v43, %v9001_v40  ;;  %v4265_v1 = vmul.f32 %v8694_v43, %v9007_v42  ;;  %v4126_v46 = vrot.slane %v4020_v15, 1 }
 0x263   : > { %v3911_v13 = vadd.f32 %v3817_v24, %v3667_v27  ;;  %v4128_v52 = vrot.slane %v4021_v16, 1  ;;  %v4369_v48 = vrot.slane %v4263_v44, 2  ;;  %v3978_v41 = vadd.f32 %v3946_v37, %v3910_v9 }
 0x264   : > { %v4370_v57 = vrot.slane %v4264_v56, 2  ;;  %v4372_v35 = vrot.slane %v4265_v1, 2  ;;  %v2852_v34 = vmul.f32 %v8128_v38, %v8791_v32  ;;  %v4127_v50 = vsel %vm862_vm0, %v4125_v60, %v4126_v46 }
 0x265   : > { %v3979_v23 = vadd.f32 %v3947_v12, %v3911_v13  ;;  %v4129_v11 = vsel %vm862_vm0, %v4126_v46, %v4128_v52  ;;  %v2853_v36 = vmul.f32 %v8128_v38, %v8798_v19  ;;  %v4222_v58 = vadd.f32 %v4127_v50, %v3978_v41  ;;  %v9065_v41 = vld [vmem:[#allocation2 + $0x180] sm:$0xff] }
 0x266   : > { %v4371_v47 = vsel %vm1107_vm1, %v4369_v48, %v4370_v57  ;;  %v4373_v55 = vsel %vm1107_vm1, %v4370_v57, %v4372_v35  ;;  %v2934_v29 = vmul.f32 %v8119_v8, %v8791_v32  ;;  %v2935_v63 = vmul.f32 %v8119_v8, %v8798_v19 }
 0x267   : > { %v4223_v49 = vadd.f32 %v4129_v11, %v3979_v23  ;;  %v2936_v51 = vmul.f32 %v8119_v8, %v8804_v5  ;;  %v3178_v39 = vmul.f32 %v8123_v14, %v8791_v32  ;;  %v4466_v37 = vadd.f32 %v4371_v47, %v4222_v58  ;;  %v9071_v11 = vld [vmem:[#allocation2 + $0x188] sm:$0xff] }
 0x268   : > { %v3058_v0 = vrot.slane %v2934_v29, 1  ;;  %v3179_v59 = vmul.f32 %v8123_v14, %v8798_v19  ;;  %v3180_v12 = vmul.f32 %v8123_v14, %v8804_v5  ;;  %v3059_v3 = vrot.slane %v2935_v63, 1 }
 0x269   : > { %v4467_v10 = vadd.f32 %v4373_v55, %v4223_v49  ;;  %v3061_v27 = vrot.slane %v2936_v51, 1  ;;  %v3302_v54 = vrot.slane %v3178_v39, 2  ;;  %v4504_v17 = vadd.f32 %v8734_v4, %v4466_v37  ;;  %v9077_v51 = vld [vmem:[#allocation2 + $0x190] sm:$0x3] }
 0x26a   : > { %v3303_v15 = vrot.slane %v3179_v59, 2  ;;  %v3305_v16 = vrot.slane %v3180_v12, 2  ;;  %v3408_v60 = vmul.f32 %v8141_v62, %v8926_v18  ;;  %v3060_v44 = vsel %vm862_vm0, %v3058_v0, %v3059_v3 }
 0x26b   : > { %v4505_v32 = vadd.f32 %v8734_v4, %v4467_v10  ;;  %v3062_v19 = vsel %vm862_vm0, %v3059_v3, %v3061_v27  ;;  %v3409_v5 = vmul.f32 %v8141_v62, %v8933_v28  ;;  %v4536_v24 = vmax.f32 %v4504_v17, 0.0 }
 0x26c   : > { %v3128_v9 = vadd.f32 %v3060_v44, %v2852_v34  ;;  %v3129_v56 = vadd.f32 %v3062_v19, %v2853_v36  ;;  %v3304_v1 = vsel %vm1107_vm1, %v3302_v54, %v3303_v15  ;;  %v3306_v46 = vsel %vm1107_vm1, %v3303_v15, %v3305_v16 }
 0x26d   : > { %v4537_v13 = vmax.f32 %v4505_v32, 0.0  ;;  %v3490_v52 = vmul.f32 %v8134_v53, %v8926_v18  ;;  %v3491_v48 = vmul.f32 %v8134_v53, %v8933_v28  ;;  %v3492_v23 = vmul.f32 %v8134_v53, %v8939_v6 }
 0x26e   : > { %v3372_v57 = vadd.f32 %v3304_v1, %v3128_v9  ;;  %v3373_v35 = vadd.f32 %v3306_v46, %v3129_v56  ;;  %v3734_v34 = vmul.f32 %v8137_v31, %v8926_v18  ;;  %v3735_v47 = vmul.f32 %v8137_v31, %v8933_v28 }
 0x26f   : > { %v6159_v50 = vpack.c.bf16 %v4537_v13, %v4536_v24  ;;  %v3614_v36 = vrot.slane %v3490_v52, 1  ;;  %v3615_v58 = vrot.slane %v3491_v48, 1  ;;  %v3617_v49 = vrot.slane %v3492_v23, 1 }
 0x270   : > { %v3440_v55 = vadd.f32 %v3408_v60, %v3372_v57  ;;  %v3441_v29 = vadd.f32 %v3409_v5, %v3373_v35  ;;  %v3736_v63 = vmul.f32 %v8137_v31, %v8939_v6  ;;  %v3858_v37 = vrot.slane %v3734_v34, 2 }
 0x271   : > { %6160 = vmatpush3.bf16.msra.mxu1 %v6159_v50  ;;  %v3616_v39 = vsel %vm862_vm0, %v3614_v36, %v3615_v58  ;;  %v3859_v0 = vrot.slane %v3735_v47, 2  ;;  %v3964_v59 = vmul.f32 %v8166_v61, %v9065_v41  ;;  %v3618_v12 = vsel %vm862_vm0, %v3615_v58, %v3617_v49 }
 0x272   : > { %v3684_v10 = vadd.f32 %v3616_v39, %v3440_v55  ;;  %v3861_v3 = vrot.slane %v3736_v63, 2  ;;  %v3965_v27 = vmul.f32 %v8166_v61, %v9071_v11  ;;  %v3685_v54 = vadd.f32 %v3618_v12, %v3441_v29 }
 0x273   : > { %v3860_v17 = vsel %vm1107_vm1, %v3858_v37, %v3859_v0  ;;  %v4046_v15 = vmul.f32 %v8161_v22, %v9065_v41  ;;  %v4047_v16 = vmul.f32 %v8161_v22, %v9071_v11  ;;  %v4048_v44 = vmul.f32 %v8161_v22, %v9077_v51 }
 0x274   : > { %v3862_v60 = vsel %vm1107_vm1, %v3859_v0, %v3861_v3  ;;  %v3928_v32 = vadd.f32 %v3860_v17, %v3684_v10  ;;  %v4290_v19 = vmul.f32 %v8694_v43, %v9065_v41  ;;  %v4291_v56 = vmul.f32 %v8694_v43, %v9071_v11 }
 0x275   : > { %v3929_v5 = vadd.f32 %v3862_v60, %v3685_v54  ;;  %v4170_v24 = vrot.slane %v4046_v15, 1  ;;  %v4171_v9 = vrot.slane %v4047_v16, 1  ;;  %v4173_v13 = vrot.slane %v4048_v44, 1 }
 0x276   : > { %v3996_v1 = vadd.f32 %v3964_v59, %v3928_v32  ;;  %v4292_v46 = vmul.f32 %v8694_v43, %v9077_v51  ;;  %v4414_v52 = vrot.slane %v4290_v19, 2  ;;  %v4415_v35 = vrot.slane %v4291_v56, 2 }
 0x277   : > { %v3997_v48 = vadd.f32 %v3965_v27, %v3929_v5  ;;  %v4172_v57 = vsel %vm862_vm0, %v4170_v24, %v4171_v9  ;;  %v2836_v23 = vmul.f32 %v8128_v38, %v8853_v2  ;;  %v4174_v34 = vsel %vm862_vm0, %v4171_v9, %v4173_v13 }
 0x278   : > { %v4240_v50 = vadd.f32 %v4172_v57, %v3996_v1  ;;  %v4417_v36 = vrot.slane %v4292_v46, 2  ;;  %v2837_v58 = vmul.f32 %v8128_v38, %v8860_v45  ;;  %v4416_v55 = vsel %vm1107_vm1, %v4414_v52, %v4415_v35 }
 0x279   : > { %v4241_v47 = vadd.f32 %v4174_v34, %v3997_v48  ;;  %v2910_v43 = vmul.f32 %v8119_v8, %v8853_v2  ;;  %v2911_v29 = vmul.f32 %v8119_v8, %v8860_v45  ;;  %v2912_v39 = vmul.f32 %v8119_v8, %v8868_v33 }
 0x27a   : > { %v4418_v49 = vsel %vm1107_vm1, %v4415_v35, %v4417_v36  ;;  %v4484_v63 = vadd.f32 %v4416_v55, %v4240_v50  ;;  %v3154_v37 = vmul.f32 %v8123_v14, %v8853_v2  ;;  %v3155_v10 = vmul.f32 %v8123_v14, %v8860_v45 }
 0x27b   : > { %v4485_v0 = vadd.f32 %v4418_v49, %v4241_v47  ;;  %v3018_v59 = vrot.slane %v2910_v43, 1  ;;  %v3019_v12 = vrot.slane %v2911_v29, 1  ;;  %v3021_v27 = vrot.slane %v2912_v39, 1  ;;  %v9142_v49 = vld [vmem:[#allocation2 + $0xc0] sm:$0xff]  ;;  %v9146_v39 = vld [vmem:[#allocation2 + $0xc8] sm:$0xff] }
 0x27c   : > { %v4522_v3 = vadd.f32 %v8734_v4, %v4484_v63  ;;  %v3156_v54 = vmul.f32 %v8123_v14, %v8868_v33  ;;  %v3262_v17 = vrot.slane %v3154_v37, 2  ;;  %v3263_v60 = vrot.slane %v3155_v10, 2 }
 0x27d   : > { %v4523_v15 = vadd.f32 %v8734_v4, %v4485_v0  ;;  %v3020_v16 = vsel %vm862_vm0, %v3018_v59, %v3019_v12  ;;  %v3392_v2 = vmul.f32 %v8141_v62, %v8995_v30  ;;  %v3022_v44 = vsel %vm862_vm0, %v3019_v12, %v3021_v27 }
 0x27e   : > { %v4554_v32 = vmax.f32 %v4522_v3, 0.0  ;;  %v3112_v19 = vadd.f32 %v3020_v16, %v2836_v23  ;;  %v3265_v45 = vrot.slane %v3156_v54, 2  ;;  %v3113_v24 = vadd.f32 %v3022_v44, %v2837_v58 }
 0x27f   : > { %v4555_v5 = vmax.f32 %v4523_v15, 0.0  ;;  %v3264_v9 = vsel %vm1107_vm1, %v3262_v17, %v3263_v60  ;;  %v3393_v33 = vmul.f32 %v8141_v62, %v9001_v40  ;;  %v3466_v1 = vmul.f32 %v8134_v53, %v8995_v30  ;;  %v9156_v17 = vld [vmem:[#allocation2 + $0xd0] sm:$0x3] }
 0x280   : > { %v3266_v4 = vsel %vm1107_vm1, %v3263_v60, %v3265_v45  ;;  %v3356_v56 = vadd.f32 %v3264_v9, %v3112_v19  ;;  %v3467_v13 = vmul.f32 %v8134_v53, %v9001_v40  ;;  %v3468_v48 = vmul.f32 %v8134_v53, %v9007_v42 }
 0x281   : > { %v6161_v46 = vpack.c.bf16 %v4555_v5, %v4554_v32  ;;  %v3357_v52 = vadd.f32 %v3266_v4, %v3113_v24  ;;  %v3710_v57 = vmul.f32 %v8137_v31, %v8995_v30  ;;  %v3574_v23 = vrot.slane %v3466_v1, 1  ;;  %v9164_v32 = vld [vmem:[%s9913_s5 + $0x8] ss:$0 sm:$0xff] }
 0x282   : > { %v3424_v35 = vadd.f32 %v3392_v2, %v3356_v56  ;;  %v3575_v34 = vrot.slane %v3467_v13, 1  ;;  %v3711_v50 = vmul.f32 %v8137_v31, %v9001_v40  ;;  %v3577_v58 = vrot.slane %v3468_v48, 1 }
 0x283   : > { %6162 = vmatprep.subr.bf16.mxu1 %v6161_v46  ;;  %v3425_v36 = vadd.f32 %v3393_v33, %v3357_v52  ;;  %v3712_v47 = vmul.f32 %v8137_v31, %v9007_v42  ;;  %v3818_v55 = vrot.slane %v3710_v57, 2  ;;  %v3948_v63 = vmul.f32 %v9142_v49, %v8166_v61 }
 0x284   : > { %v3576_v43 = vsel %vm862_vm0, %v3574_v23, %v3575_v34  ;;  %v3819_v29 = vrot.slane %v3711_v50, 2  ;;  %v3949_v37 = vmul.f32 %v9146_v39, %v8166_v61  ;;  %v3578_v0 = vsel %vm862_vm0, %v3575_v34, %v3577_v58 }
 0x285   : > { %v3668_v59 = vadd.f32 %v3576_v43, %v3424_v35  ;;  %v3821_v12 = vrot.slane %v3712_v47, 2  ;;  %v4022_v10 = vmul.f32 %v9142_v49, %v8161_v22  ;;  %v3669_v3 = vadd.f32 %v3578_v0, %v3425_v36 }
 0x286   : > { %v3820_v27 = vsel %vm1107_vm1, %v3818_v55, %v3819_v29  ;;  %v4023_v54 = vmul.f32 %v9146_v39, %v8161_v22  ;;  %v4024_v15 = vmul.f32 %v9156_v17, %v8161_v22  ;;  %v4266_v44 = vmul.f32 %v9164_v32, %v9142_v49 }
 0x287   : > { %v3822_v16 = vsel %vm1107_vm1, %v3819_v29, %v3821_v12  ;;  %v3912_v60 = vadd.f32 %v3820_v27, %v3668_v59  ;;  %v4130_v2 = vrot.slane %v4022_v10, 1  ;;  %v4267_v24 = vmul.f32 %v9164_v32, %v9146_v39  ;;  %v9193_v12 = vld [vmem:[%s9914_s6] ss:$0 sm:$0xff] }
 0x288   : > { %v3913_v19 = vadd.f32 %v3822_v16, %v3669_v3  ;;  %v4131_v45 = vrot.slane %v4023_v54, 1  ;;  %v4133_v5 = vrot.slane %v4024_v15, 1  ;;  %v4268_v33 = vmul.f32 %v9164_v32, %v9156_v17 }
 0x289   : > { %v3980_v9 = vadd.f32 %v3948_v63, %v3912_v60  ;;  %v4374_v4 = vrot.slane %v4266_v44, 2  ;;  %v2854_v56 = vmul.f32 %v8128_v38, %v8926_v18  ;;  %v4375_v52 = vrot.slane %v4267_v24, 2 }
 0x28a   : > { %v3981_v1 = vadd.f32 %v3949_v37, %v3913_v19  ;;  %v4132_v13 = vsel %vm862_vm0, %v4130_v2, %v4131_v45  ;;  %v4134_v46 = vsel %vm862_vm0, %v4131_v45, %v4133_v5  ;;  %v4377_v57 = vrot.slane %v4268_v33, 2 }
 0x28b   : > { %v4224_v48 = vadd.f32 %v4132_v13, %v3980_v9  ;;  %v2855_v35 = vmul.f32 %v8128_v38, %v8933_v28  ;;  %v2937_v23 = vmul.f32 %v8119_v8, %v8926_v18  ;;  %v4376_v50 = vsel %vm1107_vm1, %v4374_v4, %v4375_v52 }
 0x28c   : > { %v4225_v34 = vadd.f32 %v4134_v46, %v3981_v1  ;;  %v2938_v36 = vmul.f32 %v8119_v8, %v8933_v28  ;;  %v2939_v58 = vmul.f32 %v8119_v8, %v8939_v6  ;;  %v4378_v47 = vsel %vm1107_vm1, %v4375_v52, %v4377_v57 }
 0x28d   : > { %v4468_v55 = vadd.f32 %v4376_v50, %v4224_v48  ;;  %v3063_v43 = vrot.slane %v2937_v23, 1  ;;  %v3181_v29 = vmul.f32 %v8123_v14, %v8926_v18  ;;  %v3182_v59 = vmul.f32 %v8123_v14, %v8933_v28  ;;  %v2783_v48 = vld [vmem:[#allocation2 + $0x1a8] sm:$0x3] }
 0x28e   : > { %v4469_v63 = vadd.f32 %v4378_v47, %v4225_v34  ;;  %v3064_v37 = vrot.slane %v2938_v36, 1  ;;  %v3066_v0 = vrot.slane %v2939_v58, 1  ;;  %v3183_v3 = vmul.f32 %v8123_v14, %v8939_v6  ;;  %v9219_v47 = vld [vmem:[#allocation2] sm:$0xff] }
 0x28f   : > { %v4506_v10 = vadd.f32 %v9193_v12, %v4468_v55  ;;  %v3307_v27 = vrot.slane %v3181_v29, 2  ;;  %v3410_v18 = vmul.f32 %v8141_v62, %v9065_v41  ;;  %v3308_v16 = vrot.slane %v3182_v59, 2 }
 0x290   : > { %v4507_v54 = vadd.f32 %v9193_v12, %v4469_v63  ;;  %v3065_v15 = vsel %vm862_vm0, %v3063_v43, %v3064_v37  ;;  %v3067_v28 = vsel %vm862_vm0, %v3064_v37, %v3066_v0  ;;  %v3310_v19 = vrot.slane %v3183_v3, 2 }
 0x291   : > { %v4538_v60 = vmax.f32 %v4506_v10, 0.0  ;;  %v3130_v2 = vadd.f32 %v3065_v15, %v2854_v56  ;;  %v3131_v44 = vadd.f32 %v3067_v28, %v2855_v35  ;;  %v3309_v5 = vsel %vm1107_vm1, %v3307_v27, %v3308_v16 }
 0x292   : > { %v4539_v45 = vmax.f32 %v4507_v54, 0.0  ;;  %v3411_v6 = vmul.f32 %v8141_v62, %v9071_v11  ;;  %v3493_v24 = vmul.f32 %v8134_v53, %v9065_v41  ;;  %v3311_v9 = vsel %vm1107_vm1, %v3308_v16, %v3310_v19 }
 0x293   : > { %v3374_v33 = vadd.f32 %v3309_v5, %v3130_v2  ;;  %v3494_v4 = vmul.f32 %v8134_v53, %v9071_v11  ;;  %v3495_v56 = vmul.f32 %v8134_v53, %v9077_v51  ;;  %v3375_v13 = vadd.f32 %v3311_v9, %v3131_v44 }
 0x294   : > { %v6163_v1 = vpack.c.bf16 %v4539_v45, %v4538_v60  ;;  %v3619_v46 = vrot.slane %v3493_v24, 1  ;;  %v3737_v52 = vmul.f32 %v8137_v31, %v9065_v41  ;;  %v3738_v34 = vmul.f32 %v8137_v31, %v9071_v11 }
 0x295   : > { %v3442_v57 = vadd.f32 %v3410_v18, %v3374_v33  ;;  %v3620_v35 = vrot.slane %v3494_v4, 1  ;;  %v3622_v23 = vrot.slane %v3495_v56, 1  ;;  %v3443_v50 = vadd.f32 %v3411_v6, %v3375_v13 }
 0x296   : > { %6164 = vmatpush3.bf16.msra.mxu1 %v6163_v1  ;;  %v3739_v36 = vmul.f32 %v8137_v31, %v9077_v51  ;;  %v3863_v58 = vrot.slane %v3737_v52, 2  ;;  %v3966_v55 = vmul.f32 %v9219_v47, %v8166_v61  ;;  %v3864_v29 = vrot.slane %v3738_v34, 2 }
 0x297   : > { %v3621_v41 = vsel %vm862_vm0, %v3619_v46, %v3620_v35  ;;  %v3623_v43 = vsel %vm862_vm0, %v3620_v35, %v3622_v23  ;;  %v4049_v63 = vmul.f32 %v9219_v47, %v8161_v22  ;;  %v4051_v59 = vmul.f32 %v8161_v22, %v2783_v48 }
 0x298   : > { %v3686_v11 = vadd.f32 %v3621_v41, %v3442_v57  ;;  %v3687_v37 = vadd.f32 %v3623_v43, %v3443_v50  ;;  %v3866_v0 = vrot.slane %v3739_v36, 2  ;;  %v3865_v51 = vsel %vm1107_vm1, %v3863_v58, %v3864_v29 }
 0x299   : > { %v4175_v10 = vrot.slane %v4049_v63, 1  ;;  %v4293_v3 = vmul.f32 %v9219_v47, %v9164_v32  ;;  %v4295_v27 = vmul.f32 %v9164_v32, %v2783_v48  ;;  %v4178_v15 = vrot.slane %v4051_v59, 1 }
 0x29a   : > { %v3867_v18 = vsel %vm1107_vm1, %v3864_v29, %v3866_v0  ;;  %v3930_v54 = vadd.f32 %v3865_v51, %v3686_v11  ;;  %v2838_v28 = vmul.f32 %v8128_v38, %v8995_v30  ;;  %v2839_v45 = vmul.f32 %v8128_v38, %v9001_v40 }
 0x29b   : > { %v3931_v16 = vadd.f32 %v3867_v18, %v3687_v37  ;;  %v4419_v60 = vrot.slane %v4293_v3, 2  ;;  %v4422_v2 = vrot.slane %v4295_v27, 2  ;;  %v4179_v19 = vsel %vm862_vm0, %v4175_v10, %v4178_v15 }
 0x29c   : > { %v3998_v44 = vadd.f32 %v3966_v55, %v3930_v54  ;;  %v2913_v5 = vmul.f32 %v8119_v8, %v8995_v30  ;;  %v2914_v9 = vmul.f32 %v8119_v8, %v9001_v40  ;;  %v2915_v4 = vmul.f32 %v8119_v8, %v9007_v42 }
 0x29d   : > { %v3999_v6 = vadd.f32 %v3966_v55, %v3931_v16  ;;  %v4423_v24 = vsel %vm1107_vm1, %v4419_v60, %v4422_v2  ;;  %v3157_v1 = vmul.f32 %v8123_v14, %v8995_v30  ;;  %v3158_v38 = vmul.f32 %v8123_v14, %v9001_v40 }
 0x29e   : > { %v4242_v33 = vadd.f32 %v4175_v10, %v3998_v44  ;;  %v3023_v56 = vrot.slane %v2913_v5, 1  ;;  %v3024_v46 = vrot.slane %v2914_v9, 1  ;;  %v3159_v52 = vmul.f32 %v8123_v14, %v9007_v42 }
 0x29f   : > { %v4243_v13 = vadd.f32 %v4179_v19, %v3999_v6  ;;  %v3026_v57 = vrot.slane %v2915_v4, 1  ;;  %v3267_v35 = vrot.slane %v3157_v1, 2  ;;  %v3394_v23 = vmul.f32 %v9142_v49, %v8141_v62  ;;  %v6333_v6 = vld [vmem:[#allocation2 + $0xe0] sm:$0xff] }
 0x2a0   : > { %v4486_v48 = vadd.f32 %v4419_v60, %v4242_v33  ;;  %v3025_v8 = vsel %vm862_vm0, %v3023_v56, %v3024_v46  ;;  %v3268_v50 = vrot.slane %v3158_v38, 2  ;;  %v3270_v36 = vrot.slane %v3159_v52, 2  ;;  %v6334_v56 = vld [vmem:[#allocation2 + $0xe8] sm:$0x3] }
 0x2a1   : > { %v4487_v34 = vadd.f32 %v4423_v24, %v4243_v13  ;;  %v3027_v58 = vsel %vm862_vm0, %v3024_v46, %v3026_v57  ;;  %v3114_v55 = vadd.f32 %v3025_v8, %v2838_v28  ;;  %v3395_v40 = vmul.f32 %v9146_v39, %v8141_v62 }
 0x2a2   : > { %v4524_v30 = vadd.f32 %v9193_v12, %v4486_v48  ;;  %v3115_v42 = vadd.f32 %v3027_v58, %v2839_v45  ;;  %v3269_v41 = vsel %vm1107_vm1, %v3267_v35, %v3268_v50  ;;  %v3271_v43 = vsel %vm1107_vm1, %v3268_v50, %v3270_v36 }
 0x2a3   : > { %v4525_v14 = vadd.f32 %v9193_v12, %v4487_v34  ;;  %v3358_v63 = vadd.f32 %v3269_v41, %v3114_v55  ;;  %v3469_v11 = vmul.f32 %v9142_v49, %v8134_v53  ;;  %v3470_v37 = vmul.f32 %v9146_v39, %v8134_v53 }
 0x2a4   : > { %v4556_v29 = vmax.f32 %v4524_v30, 0.0  ;;  %v3359_v59 = vadd.f32 %v3271_v43, %v3115_v42  ;;  %v3471_v62 = vmul.f32 %v9156_v17, %v8134_v53  ;;  %v3713_v51 = vmul.f32 %v9142_v49, %v8137_v31  ;;  %v6332_v53 = vld [vmem:[#allocation2 + $0xd8] sm:$0xff]  ;;  %v2803_v43 = vld [vmem:[%s9916_s8] sm:$0xff] }
 0x2a5   : > { %v4557_v0 = vmax.f32 %v4525_v14, 0.0  ;;  %v3426_v10 = vadd.f32 %v3394_v23, %v3358_v63  ;;  %v3579_v3 = vrot.slane %v3469_v11, 1  ;;  %v3580_v27 = vrot.slane %v3470_v37, 1 }
 0x2a6   : > { %v3714_v18 = vmul.f32 %v9146_v39, %v8137_v31  ;;  %v3427_v15 = vadd.f32 %v3395_v40, %v3359_v59  ;;  %v3582_v28 = vrot.slane %v3471_v62, 1  ;;  %v3715_v16 = vmul.f32 %v9156_v17, %v8137_v31  ;;  %v2805_v59 = vld [vmem:[%s9916_s8 + $0x10] sm:$0xff]  ;;  %v2787_v62 = vld [vmem:[%s9915_s7] sm:$0xff] }
 0x2a7   : > { %v6165_v54 = vpack.c.bf16 %v4557_v0, %v4556_v29  ;;  %v3581_v60 = vsel %vm862_vm0, %v3579_v3, %v3580_v27  ;;  %v3823_v2 = vrot.slane %v3713_v51, 2  ;;  %v3950_v19 = vmul.f32 %v6332_v53, %v8166_v61  ;;  %v2804_v29 = vld [vmem:[%s9916_s8 + $0x8] sm:$0xff]  ;;  %v2790_v51 = vld [vmem:[%s9915_s7 + $0x18] sm:$0xff]  ;;  %v2807_v3 = vld [vmem:[%s9916_s8 + $0x20] sm:$0xff] }
 0x2a8   : > { %v3824_v44 = vrot.slane %v3714_v18, 2  ;;  %v3583_v49 = vsel %vm862_vm0, %v3580_v27, %v3582_v28  ;;  %v3670_v45 = vadd.f32 %v3581_v60, %v3426_v10  ;;  %v3826_v5 = vrot.slane %v3715_v16, 2  ;;  %v2808_v27 = vld [vmem:[%s9916_s8 + $0x28] sm:$0xff]  ;;  %v2789_v18 = vld [vmem:[%s9915_s7 + $0x10] sm:$0xff]  ;;  %v2810_v16 = vld [vmem:[%s9916_s8 + $0x38] sm:$0xff] }
 0x2a9   : > { %6166 = vmatprep.subr.bf16.mxu1 %v6165_v54  ;;  %v3951_v39 = vmul.f32 %v6333_v6, %v8166_v61  ;;  %v3671_v24 = vadd.f32 %v3583_v49, %v3427_v15  ;;  %v4025_v31 = vmul.f32 %v6332_v53, %v8161_v22  ;;  %v4026_v17 = vmul.f32 %v6333_v6, %v8161_v22  ;;  %v2792_v54 = vld [vmem:[%s9915_s7 + $0x28] sm:$0xff]  ;;  %v2809_v28 = vld [vmem:[%s9916_s8 + $0x30] sm:$0xff]  ;;  %v2791_v60 = vld [vmem:[%s9915_s7 + $0x20] sm:$0xff] }
 0x2aa   : > { %v3825_v9 = vsel %vm1107_vm1, %v3823_v2, %v3824_v44  ;;  %v3827_v33 = vsel %vm1107_vm1, %v3824_v44, %v3826_v5  ;;  %v4027_v1 = vmul.f32 %v6334_v56, %v8161_v22  ;;  %v4269_v13 = vmul.f32 %v6332_v53, %v9164_v32  ;;  %v2794_v2 = vld [vmem:[%s9915_s7 + $0x38] sm:$0xff]  ;;  %v2811_v53 = vld [vmem:[%s9916_s8 + $0x40] sm:$0xff]  ;;  %v2793_v49 = vld [vmem:[%s9915_s7 + $0x30] sm:$0xff] }
 0x2ab   : > { %v3914_v4 = vadd.f32 %v3825_v9, %v3670_v45  ;;  %v3915_v46 = vadd.f32 %v3827_v33, %v3671_v24  ;;  %v4135_v38 = vrot.slane %v4025_v31, 1  ;;  %v4136_v52 = vrot.slane %v4026_v17, 1  ;;  %v2796_v45 = vld [vmem:[%s9915_s7 + $0x48] sm:$0xff]  ;;  %v2795_v24 = vld [vmem:[%s9915_s7 + $0x40] sm:$0xff]  ;;  %v2798_v9 = vld [vmem:[%s9915_s7 + $0x58] sm:$0xff] }
 0x2ac   : > { %v4270_v61 = vmul.f32 %v6333_v6, %v9164_v32  ;;  %v4138_v57 = vrot.slane %v4027_v1, 1  ;;  %v4271_v35 = vmul.f32 %v6334_v56, %v9164_v32  ;;  %v4379_v23 = vrot.slane %v4269_v13, 2  ;;  %v2813_v6 = vld [vmem:[%s9916_s8 + $0x50] sm:$0xff]  ;;  %v2800_v33 = vld [vmem:[%s9915_s7 + $0x68] sm:$0xff]  ;;  %v2802_v56 = vld [vmem:[%s9915_s7 + $0x78] sm:$0xff] }
 0x2ad   : > { %v3982_v48 = vadd.f32 %v3950_v19, %v3914_v4  ;;  %v3983_v34 = vadd.f32 %v3951_v39, %v3915_v46  ;;  %v4137_v8 = vsel %vm862_vm0, %v4135_v38, %v4136_v52  ;;  %v6169_v37 = vpack.c.bf16 %v2804_v29, %v2803_v43  ;;  %v2812_v19 = vld [vmem:[%s9916_s8 + $0x48] sm:$0xff]  ;;  %v2814_v39 = vld [vmem:[%s9916_s8 + $0x58] sm:$0xff]  ;;  %v2797_v17 = vld [vmem:[%s9915_s7 + $0x50] sm:$0xff] }
 0x2ae   : > { %v4380_v50 = vrot.slane %v4270_v61, 2  ;;  %v4139_v36 = vsel %vm862_vm0, %v4136_v52, %v4138_v57  ;;  %v4382_v22 = vrot.slane %v4271_v35, 2  ;;  %v6177_v15 = vpack.c.bf16 %v2808_v27, %v2807_v3  ;;  %v2799_v4 = vld [vmem:[%s9915_s7 + $0x60] sm:$0xff]  ;;  %v2801_v1 = vld [vmem:[%s9915_s7 + $0x70] sm:$0xff]  ;;  %v2816_v46 = vld [vmem:[%s9916_s8 + $0x68] sm:$0xff] }
 0x2af   : > { %v4226_v30 = vadd.f32 %v4137_v8, %v3982_v48  ;;  %v4227_v58 = vadd.f32 %v4139_v36, %v3983_v34  ;;  %v6181_v44 = vpack.c.bf16 %v2810_v16, %v2809_v28  ;;  %v6185_v5 = vpack.c.bf16 %v2812_v19, %v2811_v53  ;;  %v2815_v13 = vld [vmem:[%s9916_s8 + $0x60] sm:$0xff]  ;;  %v2817_v52 = vld [vmem:[%s9916_s8 + $0x70] sm:$0xff]  ;;  %v2818_v61 = vld [vmem:[%s9916_s8 + $0x78] sm:$0xff] }
 0x2b0   : > { %v4381_v55 = vsel %vm1107_vm1, %v4379_v23, %v4380_v50  ;;  %v4383_v40 = vsel %vm1107_vm1, %v4380_v50, %v4382_v22  ;;  %v6189_v31 = vpack.c.bf16 %v2814_v39, %v2813_v6  ;;  %v6193_v38 = vpack.c.bf16 %v2816_v46, %v2815_v13  ;;  %v4818_v3 = vld [vmem:[%s9921_s13 + $0x10] sm:$0xff]  ;;  %v4821_v28 = vld [vmem:[%s9921_s13 + $0x28] sm:$0xff] }
 0x2b1   : > { %v4470_v14 = vadd.f32 %v4381_v55, %v4226_v30  ;;  %v4471_v42 = vadd.f32 %v4383_v40, %v4227_v58  ;;  %v6197_v48 = vpack.c.bf16 %v2818_v61, %v2817_v52  ;;  %v4829_v52 = vld [vmem:[%s9921_s13 + $0x68] sm:$0xff] }
 0x2b3   : > { %v4508_v41 = vadd.f32 %v9193_v12, %v4470_v14  ;;  %v4509_v32 = vadd.f32 %v9193_v12, %v4471_v42  ;;  %v2806_v12 = vld [vmem:[%s9916_s8 + $0x18] sm:$0xff] }
 0x2b4   : > { %v6173_v10 = vpack.c.bf16 %v2806_v12, %v2805_v59 }
 0x2b5   : > { %v4540_v63 = vmax.f32 %v4508_v41, 0.0  ;;  %v4541_v11 = vmax.f32 %v4509_v32, 0.0 }
 0x2b7   : > { %v6167_v0 = vpack.c.bf16 %v4541_v11, %v4540_v63 }
 0x2b9   : > { %6168 = vmatpush3.bf16.msra.mxu1 %v6167_v0 }
 0x2ba   : > { %6170 = vmatprep.subr.bf16.mxu1 %v6169_v37 }
 0x2bc   : > { %4623 = vmatmul.mubr.f32.vlgmr.msra.gmra.mrb[0].mxu1 %v2787_v62  ;;  %v4814_v62 = vld [vmem:[%s9920_s12] sm:$0xff] }
 0x2bd   : > { %4627 = vmatprep.mubr.f32.mxu1 %v2790_v51  ;;  %6172 = vmatpush3.bf16.msra.mxu1 %v6169_v37  ;;  %v4816_v51 = vld [vmem:[%s9921_s13] sm:$0xff] }
 0x2be   : > { %6174 = vmatprep.subr.bf16.mxu1 %v6173_v10 }
 0x2c0   : > { %4628 = vmatmul.mubr.f32.gmra.mrb[2].mxu1 %v2789_v18  ;;  %v4819_v18 = vld [vmem:[%s9921_s13 + $0x18] sm:$0xff] }
 0x2c1   : > { %4632 = vmatprep.mubr.f32.mxu1 %v2792_v54  ;;  %6176 = vmatpush3.bf16.msra.mxu1 %v6173_v10  ;;  %v4817_v10 = vld [vmem:[%s9921_s13 + $0x8] sm:$0xff]  ;;  %v6221_v54 = vpack.c.bf16 %v4819_v18, %v4818_v3 }
 0x2c2   : > { %6178 = vmatprep.subr.bf16.mxu1 %v6177_v15  ;;  %v6217_v27 = vpack.c.bf16 %v4817_v10, %v4816_v51  ;;  %v9961_v51 = vld [vmem:[#allocation14_spill] sm:$0xff] }
 0x2c4   : > { %4633 = vmatmul.mubr.f32.gmra.mrb[4].mxu1 %v2791_v60  ;;  %6218 = vmatprep.subr.bf16.mxu0 %v6217_v27  ;;  %v4822_v60 = vld [vmem:[%s9921_s13 + $0x30] sm:$0xff] }
 0x2c5   : > { %4637 = vmatprep.mubr.f32.mxu1 %v2794_v2  ;;  %6180 = vmatpush3.bf16.msra.mxu1 %v6177_v15  ;;  %v4820_v15 = vld [vmem:[%s9921_s13 + $0x20] sm:$0xff]  ;;  %v4823_v2 = vld [vmem:[%s9921_s13 + $0x38] sm:$0xff] }
 0x2c6   : > { %6182 = vmatprep.subr.bf16.mxu1 %v6181_v44  ;;  %6220 = vmatpush3.bf16.msra.mxu0 %v6217_v27  ;;  %v6225_v16 = vpack.c.bf16 %v4821_v28, %v4820_v15  ;;  %v6229_v53 = vpack.c.bf16 %v4823_v2, %v4822_v60 }
 0x2c7   : > { %6222 = vmatprep.subr.bf16.mxu0 %v6221_v54 }
 0x2c8   : > { %4638 = vmatmul.mubr.f32.gmra.mrb[6].mxu1 %v2793_v49  ;;  %v4824_v49 = vld [vmem:[%s9921_s13 + $0x40] sm:$0xff] }
 0x2c9   : > { %4642 = vmatprep.mubr.f32.mxu1 %v2796_v45  ;;  %6184 = vmatpush3.bf16.msra.mxu1 %v6181_v44  ;;  %v4811_v44 = vld [vmem:[%s9918_s10] sm:$0xff]  ;;  %v4825_v45 = vld [vmem:[%s9921_s13 + $0x48] sm:$0xff] }
 0x2ca   : > { %6186 = vmatprep.subr.bf16.mxu1 %v6185_v5  ;;  %6224 = vmatpush3.bf16.msra.mxu0 %v6221_v54  ;;  %v9416_v19 = vrot.slane %v4811_v44, %v6594_v21  ;;  %v6233_v6 = vpack.c.bf16 %v4825_v45, %v4824_v49  ;;  %v9428_v21 = vrot.slane %v4811_v44, %v6604_v25 }
 0x2cb   : > { %6226 = vmatprep.subr.bf16.mxu0 %v6225_v16  ;;  %v9495_v10 = vrot.slane %v4811_v44, %v9961_v51 }
 0x2cc   : > { %4643 = vmatmul.mubr.f32.gmra.mrb[8].mxu1 %v2795_v24  ;;  %v4857_v39 = vmul.f32 %v9219_v47, %v9416_v19  ;;  %v4933_v13 = vmul.f32 %v9219_v47, %v9428_v21 }
 0x2cd   : > { %4647 = vmatprep.mubr.f32.mxu1 %v2798_v9  ;;  %6188 = vmatpush3.bf16.msra.mxu1 %v6185_v5  ;;  %v4792_v5 = vld [vmem:[#allocation3 + $0x8] sm:$0x3]  ;;  %v4826_v9 = vld [vmem:[%s9921_s13 + $0x50] sm:$0xff]  ;;  %v9500_v18 = vmul.f32 %v9219_v47, %v9495_v10 }
 0x2ce   : > { %6190 = vmatprep.subr.bf16.mxu1 %v6189_v31  ;;  %6228 = vmatpush3.bf16.msra.mxu0 %v6225_v16  ;;  %v4858_v24 = vmul.f32 %v9416_v19, %v4792_v5  ;;  %v4934_v46 = vmul.f32 %v9428_v21, %v4792_v5 }
 0x2cf   : > { %6230 = vmatprep.subr.bf16.mxu0 %v6229_v53 }
 0x2d0   : > { %4648 = vmatmul.mubr.f32.gmra.mrb[10].mxu1 %v2797_v17  ;;  %v9439_v17 = vld [vmem:[%s9917_s9] ss:$0 sm:$0xff] }
 0x2d1   : > { %4652 = vmatprep.mubr.f32.mxu1 %v2800_v33  ;;  %6192 = vmatpush3.bf16.msra.mxu1 %v6189_v31  ;;  %v4827_v31 = vld [vmem:[%s9921_s13 + $0x58] sm:$0xff]  ;;  %v9442_v33 = vrot.slane %v4811_v44, %v6591_v20 }
 0x2d2   : > { %6194 = vmatprep.subr.bf16.mxu1 %v6193_v38  ;;  %6232 = vmatpush3.bf16.msra.mxu0 %v6229_v53  ;;  %v6237_v25 = vpack.c.bf16 %v4827_v31, %v4826_v9 }
 0x2d3   : > { %6234 = vmatprep.subr.bf16.mxu0 %v6233_v6 }
 0x2d4   : > { %4653 = vmatmul.mubr.f32.gmra.mrb[12].mxu1 %v2799_v4 }
 0x2d5   : > { %4657 = vmatprep.mubr.f32.mxu1 %v2802_v56  ;;  %6196 = vmatpush3.bf16.msra.mxu1 %v6193_v38  ;;  %v4889_v56 = vrot.slane %v4857_v39, 1  ;;  %v4828_v38 = vld [vmem:[%s9921_s13 + $0x60] sm:$0xff] }
 0x2d6   : > { %6198 = vmatprep.subr.bf16.mxu1 %v6197_v48  ;;  %6236 = vmatpush3.bf16.msra.mxu0 %v6233_v6 }
 0x2d7   : > { %6238 = vmatprep.subr.bf16.mxu0 %v6237_v25 }
 0x2d8   : > { %4658 = vmatmul.mubr.f32.gmra.mrb[14].mxu1 %v2801_v1  ;;  %v4890_v1 = vrot.slane %v4858_v24, 1 }
 0x2d9   : > { %6200 = vmatpush3.bf16.msra.mxu1 %v6197_v48 }
 0x2da   : > { %6240 = vmatpush3.bf16.msra.mxu0 %v6237_v25 }
 0x38f   : > { %v5799_v57 = vpop.f32.mrb[0].mxu1 }
 0x390   : > { %v5800_v35 = vpop.f32.mrb[1].mxu1 }
 0x391   : > { %v5801_v23 = vadd.f32 %v5800_v35, %v5799_v57  ;;  %v4837_v35 = vmul.f32 %v9219_v47, %v9442_v33 }
 0x393   : > { %v5802_v34 = vpop.f32.mrb[2].mxu1  ;;  %6004 = vmatprep.mubr.f32.mxu1 %v5801_v23  ;;  %v6241_v23 = vpack.c.bf16 %v4829_v52, %v4828_v38 }
 0x394   : > { %v5803_v8 = vpop.f32.mrb[3].mxu1 }
 0x395   : > { %v5804_v50 = vadd.f32 %v5803_v8, %v5802_v34  ;;  %v4891_v8 = vsel %vm862_vm0, %v4889_v56, %v4890_v1  ;;  %6242 = vmatprep.subr.bf16.mxu0 %v6241_v23 }
 0x396   : > { %6244 = vmatpush3.bf16.msra.mxu0 %v6241_v23 }
 0x397   : > { %v5805_v36 = vpop.f32.mrb[4].mxu1  ;;  %6005 = vmatmul.mubr.f32.vlgmr.msra.gmra.mrb[16].mxu1 %v5804_v50  ;;  %v4965_v50 = vrot.slane %v4933_v13, 2 }
 0x398   : > { %v5806_v30 = vpop.f32.mrb[5].mxu1 }
 0x399   : > { %v5807_v22 = vadd.f32 %v5806_v30, %v5805_v36  ;;  %v4966_v36 = vrot.slane %v4934_v46, 2  ;;  %v4830_v30 = vld [vmem:[%s9921_s13 + $0x70] sm:$0xff] }
 0x39b   : > { %v5808_v58 = vpop.f32.mrb[6].mxu1  ;;  %6007 = vmatprep.mubr.f32.mxu1 %v5807_v22  ;;  %v4831_v22 = vld [vmem:[%s9921_s13 + $0x78] sm:$0xff] }
 0x39c   : > { %v5809_v55 = vpop.f32.mrb[7].mxu1 }
 0x39d   : > { %v5810_v40 = vadd.f32 %v5809_v55, %v5808_v58  ;;  %v9465_v58 = vrot.slane %v4811_v44, %v6697_v7  ;;  %v4810_v55 = vld [vmem:[#allocation3 + $0x98] sm:$0x3]  ;;  %v9478_v7 = vrot.slane %v4811_v44, %v6607_v26 }
 0x39f   : > { %v5811_v14 = vpop.f32.mrb[8].mxu1  ;;  %6008 = vmatmul.mubr.f32.gmra.mrb[18].mxu1 %v5810_v40  ;;  %v9470_v40 = vld [vmem:[%s9918_s10 + $0x8] ss:$0 sm:$0xff] }
 0x3a0   : > { %v5812_v42 = vpop.f32.mrb[9].mxu1  ;;  %v9509_v2 = vmul.f32 %v9470_v40, %v4810_v55 }
 0x3a1   : > { %v5813_v41 = vadd.f32 %v5812_v42, %v5811_v14  ;;  %v4921_v14 = vadd.f32 %v4891_v8, %v4837_v35  ;;  %v9474_v42 = vmul.f32 %v9219_v47, %v9465_v58 }
 0x3a3   : > { %v5814_v32 = vpop.f32.mrb[10].mxu1  ;;  %6010 = vmatprep.mubr.f32.mxu1 %v5813_v41  ;;  %v6245_v41 = vpack.c.bf16 %v4831_v22, %v4830_v30  ;;  %v5254_v54 = vrot.slane %v9474_v42, 1 }
 0x3a4   : > { %v5815_v43 = vpop.f32.mrb[11].mxu1 }
 0x3a5   : > { %v5816_v29 = vadd.f32 %v5815_v43, %v5814_v32  ;;  %v4967_v43 = vsel %vm1107_vm1, %v4965_v50, %v4966_v36  ;;  %6246 = vmatprep.subr.bf16.mxu0 %v6245_v41 }
 0x3a6   : > { %v4997_v27 = vadd.f32 %v4967_v43, %v4921_v14  ;;  %6248 = vmatpush3.bf16.msra.mxu0 %v6245_v41 }
 0x3a7   : > { %v5817_v63 = vpop.f32.mrb[12].mxu1  ;;  %6011 = vmatmul.mubr.f32.gmra.mrb[20].mxu1 %v5816_v29  ;;  %v9481_v29 = vmul.f32 %v9465_v58, %v4810_v55 }
 0x3a8   : > { %v5818_v11 = vpop.f32.mrb[13].mxu1 }
 0x3a9   : > { %v5819_v37 = vadd.f32 %v5818_v11, %v5817_v63  ;;  %v9485_v63 = vmul.f32 %v9219_v47, %v9470_v40  ;;  %v5255_v60 = vrot.slane %v9481_v29, 1 }
 0x3ab   : > { %v5820_v0 = vpop.f32.mrb[14].mxu1  ;;  %6013 = vmatprep.mubr.f32.mxu1 %v5819_v37 }
 0x3ac   : > { %v5821_v59 = vpop.f32.mrb[15].mxu1 }
 0x3ad   : > { %v5822_v12 = vadd.f32 %v5821_v59, %v5820_v0  ;;  %v9959_v0 = vld [vmem:[#allocation12_spill] sm:$0xff] }
 0x3ae   : > { %v9489_v59 = vrot.slane %v4811_v44, %v9959_v0 }
 0x3af   : > { %6014 = vmatmul.mubr.f32.gmra.mrb[22].mxu1 %v5822_v12  ;;  %v9960_v12 = vld [vmem:[#allocation13_spill] sm:$0xff] }
 0x3b0   : > { %6032 = vmatprep.mubr.msk.f32.mxu1 %vm5371_vm2, %v4814_v62  ;;  %v9492_v62 = vrot.slane %v4811_v44, %v9960_v12  ;;  %v5330_v44 = vrot.slane %v9485_v63, 2  ;;  %v4815_v63 = vld [vmem:[%s9920_s12 + $0x8] sm:$0xff] }
 0x46a   : > { %v6006_v4 = vpop.f32.mrb[16].mxu1 }
 0x46b   : > { %v4741_v20 = vadd.f32 %v6006_v4, %v9439_v17  ;;  %v4735_v61 = vpop.f32.mrb[17].mxu1 }
 0x46c   : > { %v4736_v48 = vadd.f32 %v9439_v17, %v4735_v61 }
 0x46d   : > { %v4775_v57 = vmax.f32 %v4741_v20, 0.0 }
 0x46e   : > { %v4774_v34 = vmax.f32 %v4736_v48, 0.0 }
 0x46f   : > { %4784 = vst [vmem:[#allocation3 + $0x21] sm:$0xff] %v4775_v57 }
 0x470   : > { %4783 = vst [vmem:[#allocation3 + $0x11] sm:$0xff] %v4774_v34 }
 0x472   : > { %v6009_v32 = vpop.f32.mrb[18].mxu1 }
 0x473   : > { %v4751_v11 = vadd.f32 %v6009_v32, %v9439_v17  ;;  %v4745_v37 = vpop.f32.mrb[19].mxu1 }
 0x474   : > { %v4746_v26 = vadd.f32 %v9439_v17, %v4745_v37 }
 0x475   : > { %v4777_v3 = vmax.f32 %v4751_v11, 0.0 }
 0x476   : > { %v4776_v15 = vmax.f32 %v4746_v26, 0.0  ;;  %v9503_v28 = vld [vmem:[#allocation3 + $0x20] sm:$0xff]  ;;  %v9505_v16 = vld [vmem:[#allocation3 + $0x28] sm:$0x3] }
 0x477   : > { %4786 = vst [vmem:[#allocation3 + $0x41] sm:$0xff] %v4777_v3  ;;  %v4793_v53 = vld [vmem:[#allocation3 + $0x10] sm:$0xff]  ;;  %v4794_v49 = vld [vmem:[#allocation3 + $0x18] sm:$0x3]  ;;  %v5010_v47 = vmul.f32 %v9478_v7, %v9503_v28  ;;  %v5031_v45 = vmul.f32 %v9489_v59, %v9503_v28  ;;  %v5032_v5 = vmul.f32 %v9489_v59, %v9505_v16  ;;  %v5107_v6 = vmul.f32 %v9492_v62, %v9503_v28 }
 0x478   : > { %4785 = vst [vmem:[#allocation3 + $0x31] sm:$0xff] %v4776_v15  ;;  %v4838_v39 = vmul.f32 %v9442_v33, %v4793_v53  ;;  %v4859_v24 = vmul.f32 %v9416_v19, %v4793_v53  ;;  %v4860_v9 = vmul.f32 %v9416_v19, %v4794_v49  ;;  %v4935_v31 = vmul.f32 %v9428_v21, %v4793_v53 }
 0x479   : > { %v4936_v25 = vmul.f32 %v9428_v21, %v4794_v49  ;;  %v5009_v4 = vmul.f32 %v9478_v7, %v4793_v53  ;;  %v5029_v56 = vmul.f32 %v9489_v59, %v4793_v53  ;;  %v5030_v1 = vmul.f32 %v9489_v59, %v4794_v49 }
 0x47a   : > { %v6012_v13 = vpop.f32.mrb[20].mxu1  ;;  %v4892_v46 = vrot.slane %v4859_v24, 1  ;;  %v4893_v38 = vrot.slane %v4860_v9, 1  ;;  %v4968_v52 = vrot.slane %v4935_v31, 2  ;;  %v5064_v20 = vrot.slane %v5031_v45, 1 }
 0x47b   : > { %v4761_v61 = vadd.f32 %v6012_v13, %v9439_v17  ;;  %v4755_v48 = vpop.f32.mrb[21].mxu1  ;;  %v4969_v57 = vrot.slane %v4936_v25, 2  ;;  %v5017_v35 = vadd.f32 %v5009_v4, %v4997_v27  ;;  %v5061_v23 = vrot.slane %v5029_v56, 1 }
 0x47c   : > { %v4756_v34 = vadd.f32 %v9439_v17, %v4755_v48  ;;  %v4894_v8 = vsel %vm862_vm0, %v4892_v46, %v4893_v38  ;;  %v5062_v50 = vrot.slane %v5030_v1, 1  ;;  %v5065_v36 = vrot.slane %v5032_v5, 1 }
 0x47d   : > { %v4779_v30 = vmax.f32 %v4761_v61, 0.0  ;;  %v4922_v22 = vadd.f32 %v4894_v8, %v4838_v39  ;;  %v4970_v55 = vsel %vm1107_vm1, %v4968_v52, %v4969_v57  ;;  %v5105_v14 = vmul.f32 %v9492_v62, %v4793_v53 }
 0x47e   : > { %v4778_v41 = vmax.f32 %v4756_v34, 0.0  ;;  %v5063_v32 = vsel %vm862_vm0, %v5061_v23, %v5062_v50  ;;  %v5066_v43 = vsel %vm862_vm0, %v5064_v20, %v5065_v36  ;;  %v5106_v11 = vmul.f32 %v9492_v62, %v4794_v49 }
 0x47f   : > { %4788 = vst [vmem:[#allocation3 + $0x61] sm:$0xff] %v4779_v30  ;;  %v9536_v37 = vld [vmem:[#allocation3 + $0x30] sm:$0xff]  ;;  %v9538_v0 = vld [vmem:[#allocation3 + $0x38] sm:$0x3]  ;;  %v4998_v12 = vadd.f32 %v4970_v55, %v4922_v22  ;;  %v5093_v51 = vadd.f32 %v5063_v32, %v5017_v35  ;;  %v5108_v26 = vmul.f32 %v9492_v62, %v9505_v16  ;;  %v5137_v3 = vrot.slane %v5105_v14, 2 }
 0x480   : > { %4787 = vst [vmem:[#allocation3 + $0x51] sm:$0xff] %v4778_v41  ;;  %v5138_v27 = vrot.slane %v5106_v11, 2  ;;  %v5140_v15 = vrot.slane %v5107_v6, 2  ;;  %v5181_v53 = vmul.f32 %v9495_v10, %v9503_v28  ;;  %v5182_v49 = vmul.f32 %v9495_v10, %v9536_v37 }
 0x481   : > { %v5018_v45 = vadd.f32 %v5010_v47, %v4998_v12  ;;  %v5141_v5 = vrot.slane %v5108_v26, 2  ;;  %v5201_v39 = vmul.f32 %v9465_v58, %v9503_v28  ;;  %v5202_v24 = vmul.f32 %v9465_v58, %v9505_v16 }
 0x482   : > { %v6015_v9 = vpop.f32.mrb[22].mxu1  ;;  %v5139_v31 = vsel %vm1107_vm1, %v5137_v3, %v5138_v27  ;;  %v5203_v6 = vmul.f32 %v9465_v58, %v9536_v37  ;;  %v5204_v25 = vmul.f32 %v9465_v58, %v9538_v0  ;;  %v5277_v4 = vmul.f32 %v9470_v40, %v9503_v28  ;;  %v9577_v3 = vld [vmem:[%s9919_s11] ss:$0 sm:$0xff] }
 0x483   : > { %v4771_v47 = vadd.f32 %v6015_v9, %v9439_v17  ;;  %v4765_v56 = vpop.f32.mrb[23].mxu1  ;;  %v5094_v1 = vadd.f32 %v5066_v43, %v5018_v45  ;;  %v5142_v13 = vsel %vm1107_vm1, %v5140_v15, %v5141_v5  ;;  %v5169_v46 = vadd.f32 %v5139_v31, %v5093_v51 }
 0x484   : > { %v4766_v38 = vadd.f32 %v9439_v17, %v4765_v56  ;;  %v5233_v52 = vrot.slane %v5201_v39, 1  ;;  %v5234_v20 = vrot.slane %v5202_v24, 1  ;;  %v5236_v61 = vrot.slane %v5203_v6, 1 }
 0x485   : > { %v4781_v48 = vmax.f32 %v4771_v47, 0.0  ;;  %v5170_v57 = vadd.f32 %v5142_v13, %v5094_v1  ;;  %v5189_v35 = vadd.f32 %v5181_v53, %v5169_v46  ;;  %v5237_v23 = vrot.slane %v5204_v25, 1  ;;  %v9597_v46 = vld [vmem:[#allocation3 + $0x40] sm:$0xff] }
 0x486   : > { %v4780_v34 = vmax.f32 %v4766_v38, 0.0  ;;  %v5235_v8 = vsel %vm862_vm0, %v5233_v52, %v5234_v20  ;;  %v5278_v50 = vmul.f32 %v9470_v40, %v9505_v16  ;;  %v5279_v36 = vmul.f32 %v9470_v40, %v9536_v37 }
 0x487   : > { %4790 = vst [vmem:[#allocation3 + $0x81] sm:$0xff] %v4781_v48  ;;  %v5190_v30 = vadd.f32 %v5182_v49, %v5170_v57  ;;  %v5238_v17 = vsel %vm862_vm0, %v5236_v61, %v5237_v23  ;;  %v5265_v22 = vadd.f32 %v5235_v8, %v5189_v35  ;;  %v5280_v55 = vmul.f32 %v9470_v40, %v9538_v0  ;;  %v9601_v35 = vld [vmem:[#allocation3 + $0x48] sm:$0x3] }
 0x488   : > { %4789 = vst [vmem:[#allocation3 + $0x71] sm:$0xff] %v4780_v34  ;;  %v5309_v14 = vrot.slane %v5277_v4, 2  ;;  %v5310_v41 = vrot.slane %v5278_v50, 2  ;;  %v5312_v32 = vrot.slane %v5279_v36, 2  ;;  %v4839_v43 = vmul.f32 %v9442_v33, %v9503_v28 }
 0x489   : > { %v5266_v11 = vadd.f32 %v5238_v17, %v5190_v30  ;;  %v5313_v12 = vrot.slane %v5280_v55, 2  ;;  %v4840_v51 = vmul.f32 %v9442_v33, %v9536_v37  ;;  %v4861_v26 = vmul.f32 %v9416_v19, %v9503_v28 }
 0x48a   : > { %v5311_v27 = vsel %vm1107_vm1, %v5309_v14, %v5310_v41  ;;  %v4862_v15 = vmul.f32 %v9416_v19, %v9505_v16  ;;  %v4863_v53 = vmul.f32 %v9416_v19, %v9536_v37  ;;  %v4864_v49 = vmul.f32 %v9416_v19, %v9538_v0 }
 0x48b   : > { %v5314_v45 = vsel %vm1107_vm1, %v5312_v32, %v5313_v12  ;;  %v5341_v5 = vadd.f32 %v5311_v27, %v5265_v22  ;;  %v4895_v39 = vrot.slane %v4861_v26, 1  ;;  %v4937_v24 = vmul.f32 %v9428_v21, %v9503_v28 }
 0x48c   : > { %v5342_v9 = vadd.f32 %v5314_v45, %v5266_v11  ;;  %v4896_v31 = vrot.slane %v4862_v15, 1  ;;  %v4898_v6 = vrot.slane %v4863_v53, 1  ;;  %v4899_v25 = vrot.slane %v4864_v49, 1 }
 0x48d   : > { %v5355_v4 = vadd.f32 %v9577_v3, %v5341_v5  ;;  %v4938_v47 = vmul.f32 %v9428_v21, %v9505_v16  ;;  %v4939_v56 = vmul.f32 %v9428_v21, %v9536_v37  ;;  %v4940_v1 = vmul.f32 %v9428_v21, %v9538_v0 }
 0x48e   : > { %v5356_v13 = vadd.f32 %v9577_v3, %v5342_v9  ;;  %v4897_v28 = vsel %vm862_vm0, %v4895_v39, %v4896_v31  ;;  %v4900_v38 = vsel %vm862_vm0, %v4898_v6, %v4899_v25  ;;  %v4971_v52 = vrot.slane %v4937_v24, 2  ;;  %v9626_v24 = vld [vmem:[#allocation3 + $0x58] sm:$0x3] }
 0x48f   : > { %v5363_v20 = vmax.f32 %v5355_v4, 0.0  ;;  %v4923_v61 = vadd.f32 %v4897_v28, %v4839_v43  ;;  %v4924_v48 = vadd.f32 %v4900_v38, %v4840_v51  ;;  %v4972_v57 = vrot.slane %v4938_v47, 2  ;;  %v9617_v51 = vld [vmem:[#allocation3 + $0x50] sm:$0xff] }
 0x490   : > { %v5364_v16 = vmax.f32 %v5356_v13, 0.0  ;;  %v4974_v23 = vrot.slane %v4939_v56, 2  ;;  %v4975_v34 = vrot.slane %v4940_v1, 2  ;;  %v5011_v8 = vmul.f32 %v9478_v7, %v9536_v37 }
 0x491   : > { %v4973_v50 = vsel %vm1107_vm1, %v4971_v52, %v4972_v57  ;;  %v5012_v36 = vmul.f32 %v9478_v7, %v9597_v46  ;;  %v5033_v30 = vmul.f32 %v9489_v59, %v9536_v37  ;;  %v5034_v17 = vmul.f32 %v9489_v59, %v9538_v0 }
 0x492   : > { %v6201_v22 = vpack.c.bf16 %v5364_v16, %v5363_v20  ;;  %v4976_v55 = vsel %vm1107_vm1, %v4974_v23, %v4975_v34  ;;  %v4999_v14 = vadd.f32 %v4973_v50, %v4923_v61  ;;  %v5035_v41 = vmul.f32 %v9489_v59, %v9597_v46 }
 0x493   : > { %v5000_v32 = vadd.f32 %v4976_v55, %v4924_v48  ;;  %v5036_v43 = vmul.f32 %v9489_v59, %v9601_v35  ;;  %v5067_v11 = vrot.slane %v5033_v30, 1  ;;  %v5068_v12 = vrot.slane %v5034_v17, 1 }
 0x494   : > { %6202 = vmatprep.subr.bf16.mxu1 %v6201_v22  ;;  %v5019_v26 = vadd.f32 %v5011_v8, %v4999_v14  ;;  %v5070_v27 = vrot.slane %v5035_v41, 1  ;;  %v5109_v15 = vmul.f32 %v9492_v62, %v9536_v37  ;;  %v5110_v53 = vmul.f32 %v9492_v62, %v9538_v0 }
 0x495   : > { %6204 = vmatpush3.bf16.msra.mxu1 %v6201_v22  ;;  %v5020_v49 = vadd.f32 %v5012_v36, %v5000_v32  ;;  %v5069_v45 = vsel %vm862_vm0, %v5067_v11, %v5068_v12  ;;  %v5071_v5 = vrot.slane %v5036_v43, 1  ;;  %v5111_v39 = vmul.f32 %v9492_v62, %v9597_v46 }
 0x496   : > { %v5095_v9 = vadd.f32 %v5069_v45, %v5019_v26  ;;  %v5112_v31 = vmul.f32 %v9492_v62, %v9601_v35  ;;  %v5143_v6 = vrot.slane %v5109_v15, 2  ;;  %v5144_v25 = vrot.slane %v5110_v53, 2 }
 0x497   : > { %v5072_v37 = vsel %vm862_vm0, %v5070_v27, %v5071_v5  ;;  %v5146_v4 = vrot.slane %v5111_v39, 2  ;;  %v5183_v0 = vmul.f32 %v9495_v10, %v9597_v46  ;;  %v5184_v47 = vmul.f32 %v9495_v10, %v9617_v51 }
 0x498   : > { %v5096_v56 = vadd.f32 %v5072_v37, %v5020_v49  ;;  %v5145_v1 = vsel %vm1107_vm1, %v5143_v6, %v5144_v25  ;;  %v5147_v13 = vrot.slane %v5112_v31, 2  ;;  %v5205_v28 = vmul.f32 %v9465_v58, %v9597_v46 }
 0x499   : > { %v5171_v38 = vadd.f32 %v5145_v1, %v5095_v9  ;;  %v5206_v52 = vmul.f32 %v9465_v58, %v9601_v35  ;;  %v5207_v20 = vmul.f32 %v9465_v58, %v9617_v51  ;;  %v5208_v61 = vmul.f32 %v9465_v58, %v9626_v24 }
 0x49a   : > { %v5148_v48 = vsel %vm1107_vm1, %v5146_v4, %v5147_v13  ;;  %v5239_v57 = vrot.slane %v5205_v28, 1  ;;  %v5281_v16 = vmul.f32 %v9470_v40, %v9597_v46  ;;  %v5282_v23 = vmul.f32 %v9470_v40, %v9601_v35 }
 0x49b   : > { %v5172_v34 = vadd.f32 %v5148_v48, %v5096_v56  ;;  %v5191_v8 = vadd.f32 %v5183_v0, %v5171_v38  ;;  %v5240_v50 = vrot.slane %v5206_v52, 1  ;;  %v5242_v36 = vrot.slane %v5207_v20, 1 }
 0x49c   : > { %v5243_v30 = vrot.slane %v5208_v61, 1  ;;  %v5283_v17 = vmul.f32 %v9470_v40, %v9617_v51  ;;  %v5284_v22 = vmul.f32 %v9470_v40, %v9626_v24  ;;  %v5315_v55 = vrot.slane %v5281_v16, 2  ;;  %v9679_v61 = vld [vmem:[#allocation3 + $0x60] sm:$0xff] }
 0x49d   : > { %v5192_v14 = vadd.f32 %v5184_v47, %v5172_v34  ;;  %v5241_v41 = vsel %vm862_vm0, %v5239_v57, %v5240_v50  ;;  %v5316_v32 = vrot.slane %v5282_v23, 2  ;;  %v4841_v43 = vmul.f32 %v9442_v33, %v9597_v46  ;;  %v9682_v23 = vld [vmem:[#allocation3 + $0x68] sm:$0x3] }
 0x49e   : > { %v5244_v11 = vsel %vm862_vm0, %v5242_v36, %v5243_v30  ;;  %v5267_v12 = vadd.f32 %v5241_v41, %v5191_v8  ;;  %v5318_v26 = vrot.slane %v5283_v17, 2  ;;  %v5319_v27 = vrot.slane %v5284_v22, 2 }
 0x49f   : > { %v5268_v15 = vadd.f32 %v5244_v11, %v5192_v14  ;;  %v5317_v53 = vsel %vm1107_vm1, %v5315_v55, %v5316_v32  ;;  %v4842_v49 = vmul.f32 %v9442_v33, %v9617_v51  ;;  %v4865_v45 = vmul.f32 %v9416_v19, %v9597_v46 }
 0x4a0   : > { %v5320_v5 = vsel %vm1107_vm1, %v5318_v26, %v5319_v27  ;;  %v5343_v39 = vadd.f32 %v5317_v53, %v5267_v12  ;;  %v4866_v9 = vmul.f32 %v9416_v19, %v9601_v35  ;;  %v4867_v31 = vmul.f32 %v9416_v19, %v9617_v51 }
 0x4a1   : > { %v5344_v6 = vadd.f32 %v5320_v5, %v5268_v15  ;;  %v4868_v25 = vmul.f32 %v9416_v19, %v9626_v24  ;;  %v4901_v37 = vrot.slane %v4865_v45, 1  ;;  %v4941_v4 = vmul.f32 %v9428_v21, %v9597_v46 }
 0x4a2   : > { %v5357_v0 = vadd.f32 %v9577_v3, %v5343_v39  ;;  %v4902_v47 = vrot.slane %v4866_v9, 1  ;;  %v4904_v56 = vrot.slane %v4867_v31, 1  ;;  %v4942_v1 = vmul.f32 %v9428_v21, %v9601_v35  ;;  %v9703_v9 = vld [vmem:[#allocation3 + $0x70] sm:$0xff] }
 0x4a3   : > { %v5358_v13 = vadd.f32 %v9577_v3, %v5344_v6  ;;  %v4905_v28 = vrot.slane %v4868_v25, 1  ;;  %v4943_v38 = vmul.f32 %v9428_v21, %v9617_v51  ;;  %v4944_v52 = vmul.f32 %v9428_v21, %v9626_v24 }
 0x4a4   : > { %v5365_v20 = vmax.f32 %v5357_v0, 0.0  ;;  %v4903_v46 = vsel %vm862_vm0, %v4901_v37, %v4902_v47  ;;  %v4977_v48 = vrot.slane %v4941_v4, 2  ;;  %v4978_v57 = vrot.slane %v4942_v1, 2  ;;  %v9709_v4 = vld [vmem:[#allocation3 + $0x78] sm:$0x3] }
 0x4a5   : > { %v5366_v16 = vmax.f32 %v5358_v13, 0.0  ;;  %v4906_v35 = vsel %vm862_vm0, %v4904_v56, %v4905_v28  ;;  %v4925_v34 = vadd.f32 %v4903_v46, %v4841_v43  ;;  %v4980_v8 = vrot.slane %v4943_v38, 2 }
 0x4a6   : > { %v4926_v50 = vadd.f32 %v4906_v35, %v4842_v49  ;;  %v4979_v36 = vsel %vm1107_vm1, %v4977_v48, %v4978_v57  ;;  %v4981_v30 = vrot.slane %v4944_v52, 2  ;;  %v5013_v17 = vmul.f32 %v9478_v7, %v9617_v51 }
 0x4a7   : > { %v6205_v22 = vpack.c.bf16 %v5366_v16, %v5365_v20  ;;  %v5001_v55 = vadd.f32 %v4979_v36, %v4925_v34  ;;  %v5014_v14 = vmul.f32 %v9478_v7, %v9679_v61  ;;  %v5037_v41 = vmul.f32 %v9489_v59, %v9617_v51 }
 0x4a8   : > { %v4982_v32 = vsel %vm1107_vm1, %v4980_v8, %v4981_v30  ;;  %v5038_v43 = vmul.f32 %v9489_v59, %v9626_v24  ;;  %v5039_v11 = vmul.f32 %v9489_v59, %v9679_v61  ;;  %v5040_v12 = vmul.f32 %v9489_v59, %v9682_v23 }
 0x4a9   : > { %6206 = vmatprep.subr.bf16.mxu1 %v6205_v22  ;;  %v5002_v26 = vadd.f32 %v4982_v32, %v4926_v50  ;;  %v5021_v27 = vadd.f32 %v5013_v17, %v5001_v55  ;;  %v5073_v15 = vrot.slane %v5037_v41, 1  ;;  %v5113_v53 = vmul.f32 %v9492_v62, %v9617_v51 }
 0x4aa   : > { %6208 = vmatpush3.bf16.msra.mxu1 %v6205_v22  ;;  %v5074_v49 = vrot.slane %v5038_v43, 1  ;;  %v5076_v45 = vrot.slane %v5039_v11, 1  ;;  %v5077_v5 = vrot.slane %v5040_v12, 1  ;;  %v5114_v39 = vmul.f32 %v9492_v62, %v9626_v24 }
 0x4ab   : > { %v5022_v31 = vadd.f32 %v5014_v14, %v5002_v26  ;;  %v5115_v6 = vmul.f32 %v9492_v62, %v9679_v61  ;;  %v5116_v25 = vmul.f32 %v9492_v62, %v9682_v23  ;;  %v5149_v37 = vrot.slane %v5113_v53, 2 }
 0x4ac   : > { %v5075_v51 = vsel %vm862_vm0, %v5073_v15, %v5074_v49  ;;  %v5078_v0 = vsel %vm862_vm0, %v5076_v45, %v5077_v5  ;;  %v5150_v47 = vrot.slane %v5114_v39, 2  ;;  %v5185_v24 = vmul.f32 %v9495_v10, %v9679_v61 }
 0x4ad   : > { %v5097_v56 = vadd.f32 %v5075_v51, %v5021_v27  ;;  %v5098_v1 = vadd.f32 %v5078_v0, %v5022_v31  ;;  %v5152_v13 = vrot.slane %v5115_v6, 2  ;;  %v5153_v28 = vrot.slane %v5116_v25, 2 }
 0x4ae   : > { %v5151_v38 = vsel %vm1107_vm1, %v5149_v37, %v5150_v47  ;;  %v5186_v52 = vmul.f32 %v9495_v10, %v9703_v9  ;;  %v5209_v20 = vmul.f32 %v9465_v58, %v9679_v61  ;;  %v5210_v46 = vmul.f32 %v9465_v58, %v9682_v23 }
 0x4af   : > { %v5154_v48 = vsel %vm1107_vm1, %v5152_v13, %v5153_v28  ;;  %v5173_v57 = vadd.f32 %v5151_v38, %v5097_v56  ;;  %v5211_v16 = vmul.f32 %v9465_v58, %v9703_v9  ;;  %v5212_v35 = vmul.f32 %v9465_v58, %v9709_v4 }
 0x4b0   : > { %v5174_v34 = vadd.f32 %v5154_v48, %v5098_v1  ;;  %v5245_v8 = vrot.slane %v5209_v20, 1  ;;  %v5246_v50 = vrot.slane %v5210_v46, 1  ;;  %v5285_v36 = vmul.f32 %v9470_v40, %v9679_v61  ;;  %v4807_v20 = vld [vmem:[#allocation3 + $0x80] sm:$0xff] }
 0x4b1   : > { %v5193_v30 = vadd.f32 %v5185_v24, %v5173_v57  ;;  %v5248_v17 = vrot.slane %v5211_v16, 1  ;;  %v5249_v22 = vrot.slane %v5212_v35, 1  ;;  %v5286_v55 = vmul.f32 %v9470_v40, %v9682_v23 }
 0x4b2   : > { %v5194_v14 = vadd.f32 %v5186_v52, %v5174_v34  ;;  %v5247_v41 = vsel %vm862_vm0, %v5245_v8, %v5246_v50  ;;  %v5287_v32 = vmul.f32 %v9470_v40, %v9703_v9  ;;  %v5288_v43 = vmul.f32 %v9470_v40, %v9709_v4  ;;  %v4808_v8 = vld [vmem:[#allocation3 + $0x88] sm:$0x3] }
 0x4b3   : > { %v5250_v11 = vsel %vm862_vm0, %v5248_v17, %v5249_v22  ;;  %v5269_v12 = vadd.f32 %v5247_v41, %v5193_v30  ;;  %v5321_v26 = vrot.slane %v5285_v36, 2  ;;  %v5322_v27 = vrot.slane %v5286_v55, 2 }
 0x4b4   : > { %v5270_v15 = vadd.f32 %v5250_v11, %v5194_v14  ;;  %v5324_v53 = vrot.slane %v5287_v32, 2  ;;  %v5325_v49 = vrot.slane %v5288_v43, 2  ;;  %v4843_v45 = vmul.f32 %v9442_v33, %v9679_v61 }
 0x4b5   : > { %v5323_v5 = vsel %vm1107_vm1, %v5321_v26, %v5322_v27  ;;  %v4844_v39 = vmul.f32 %v9442_v33, %v9703_v9  ;;  %v4869_v31 = vmul.f32 %v9416_v19, %v9679_v61  ;;  %v4870_v6 = vmul.f32 %v9416_v19, %v9682_v23 }
 0x4b6   : > { %v5326_v25 = vsel %vm1107_vm1, %v5324_v53, %v5325_v49  ;;  %v5345_v37 = vadd.f32 %v5323_v5, %v5269_v12  ;;  %v4871_v51 = vmul.f32 %v9416_v19, %v9703_v9  ;;  %v4872_v0 = vmul.f32 %v9416_v19, %v9709_v4 }
 0x4b7   : > { %v5346_v47 = vadd.f32 %v5326_v25, %v5270_v15  ;;  %v4907_v24 = vrot.slane %v4869_v31, 1  ;;  %v4908_v56 = vrot.slane %v4870_v6, 1  ;;  %v4945_v33 = vmul.f32 %v9428_v21, %v9679_v61 }
 0x4b8   : > { %v5359_v1 = vadd.f32 %v9577_v3, %v5345_v37  ;;  %v4910_v13 = vrot.slane %v4871_v51, 1  ;;  %v4911_v28 = vrot.slane %v4872_v0, 1  ;;  %v4946_v38 = vmul.f32 %v9428_v21, %v9682_v23 }
 0x4b9   : > { %v5360_v52 = vadd.f32 %v9577_v3, %v5346_v47  ;;  %v4909_v46 = vsel %vm862_vm0, %v4907_v24, %v4908_v56  ;;  %v4947_v19 = vmul.f32 %v9428_v21, %v9703_v9  ;;  %v4948_v48 = vmul.f32 %v9428_v21, %v9709_v4 }
 0x4ba   : > { %v5367_v57 = vmax.f32 %v5359_v1, 0.0  ;;  %v4912_v61 = vsel %vm862_vm0, %v4910_v13, %v4911_v28  ;;  %v4927_v16 = vadd.f32 %v4909_v46, %v4843_v45  ;;  %v4983_v35 = vrot.slane %v4945_v33, 2 }
 0x4bb   : > { %v5368_v34 = vmax.f32 %v5360_v52, 0.0  ;;  %v4928_v50 = vadd.f32 %v4912_v61, %v4844_v39  ;;  %v4984_v23 = vrot.slane %v4946_v38, 2  ;;  %v4986_v36 = vrot.slane %v4947_v19, 2 }
 0x4bc   : > { %v4987_v30 = vrot.slane %v4948_v48, 2  ;;  %v5015_v17 = vmul.f32 %v9478_v7, %v9703_v9  ;;  %v5016_v22 = vmul.f32 %v9478_v7, %v4807_v20  ;;  %v5041_v55 = vmul.f32 %v9489_v59, %v9703_v9 }
 0x4bd   : > { %v6209_v21 = vpack.c.bf16 %v5368_v34, %v5367_v57  ;;  %v4985_v14 = vsel %vm1107_vm1, %v4983_v35, %v4984_v23  ;;  %v5042_v41 = vmul.f32 %v9489_v59, %v9709_v4  ;;  %v5043_v32 = vmul.f32 %v9489_v59, %v4807_v20 }
 0x4be   : > { %v4988_v43 = vsel %vm1107_vm1, %v4986_v36, %v4987_v30  ;;  %v5003_v11 = vadd.f32 %v4985_v14, %v4927_v16  ;;  %v5044_v12 = vmul.f32 %v9489_v59, %v4808_v8  ;;  %v5079_v26 = vrot.slane %v5041_v55, 1  ;;  %v5540_v55 = vld [vmem:[%s9923_s15 + $0x20] sm:$0xff] }
 0x4bf   : > { %6210 = vmatprep.subr.bf16.mxu1 %v6209_v21  ;;  %v5004_v27 = vadd.f32 %v4988_v43, %v4928_v50  ;;  %v5080_v7 = vrot.slane %v5042_v41, 1  ;;  %v5082_v15 = vrot.slane %v5043_v32, 1  ;;  %v5117_v53 = vmul.f32 %v9492_v62, %v9703_v9  ;;  %v5542_v43 = vld [vmem:[%s9923_s15 + $0x30] sm:$0xff] }
 0x4c0   : > { %6212 = vmatpush3.bf16.msra.mxu1 %v6209_v21  ;;  %v5023_v49 = vadd.f32 %v5015_v17, %v5003_v11  ;;  %v5083_v45 = vrot.slane %v5044_v12, 1  ;;  %v5118_v5 = vmul.f32 %v9492_v62, %v9709_v4  ;;  %v5119_v39 = vmul.f32 %v9492_v62, %v4807_v20  ;;  %v5539_v17 = vld [vmem:[%s9923_s15 + $0x18] sm:$0xff]  ;;  %v5541_v21 = vld [vmem:[%s9923_s15 + $0x28] sm:$0xff] }
 0x4c1   : > { %v5024_v31 = vadd.f32 %v5016_v22, %v5004_v27  ;;  %v5081_v6 = vsel %vm862_vm0, %v5079_v26, %v5080_v7  ;;  %v5120_v59 = vmul.f32 %v9492_v62, %v4808_v8  ;;  %v5155_v25 = vrot.slane %v5117_v53, 2  ;;  %v5543_v11 = vld [vmem:[%s9923_s15 + $0x38] sm:$0xff]  ;;  %v5544_v26 = vld [vmem:[%s9923_s15 + $0x40] sm:$0xff]  ;;  %v5545_v27 = vld [vmem:[%s9923_s15 + $0x48] sm:$0xff] }
 0x4c2   : > { %v5084_v37 = vsel %vm862_vm0, %v5082_v15, %v5083_v45  ;;  %v5099_v51 = vadd.f32 %v5081_v6, %v5023_v49  ;;  %v5156_v0 = vrot.slane %v5118_v5, 2  ;;  %v5158_v47 = vrot.slane %v5119_v39, 2  ;;  %v5546_v7 = vld [vmem:[%s9923_s15 + $0x50] sm:$0xff]  ;;  %v5547_v53 = vld [vmem:[%s9923_s15 + $0x58] sm:$0xff]  ;;  %v6335_v49 = vld [vmem:[#allocation2] sm:$0xff] }
 0x4c3   : > { %v5100_v9 = vadd.f32 %v5084_v37, %v5024_v31  ;;  %v5159_v24 = vrot.slane %v5120_v59, 2  ;;  %v5213_v56 = vmul.f32 %v9465_v58, %v4807_v20  ;;  %v5331_v33 = vrot.slane %v9509_v2, 2  ;;  %v5548_v5 = vld [vmem:[%s9923_s15 + $0x60] sm:$0xff]  ;;  %v5549_v39 = vld [vmem:[%s9923_s15 + $0x68] sm:$0xff]  ;;  %v5550_v6 = vld [vmem:[%s9923_s15 + $0x70] sm:$0xff] }
 0x4c4   : > { %v5157_v4 = vsel %vm1107_vm1, %v5155_v25, %v5156_v0  ;;  %v5214_v1 = vmul.f32 %v9465_v58, %v4808_v8  ;;  %v5289_v13 = vmul.f32 %v9470_v40, %v4807_v20  ;;  %v5290_v62 = vmul.f32 %v9470_v40, %v4808_v8  ;;  %v5551_v59 = vld [vmem:[%s9923_s15 + $0x78] sm:$0xff]  ;;  %v5715_v37 = vld [vmem:[%s9922_s14] ss:$0 sm:$0xff] }
 0x4c5   : > { %v5160_v28 = vsel %vm1107_vm1, %v5158_v47, %v5159_v24  ;;  %v5175_v38 = vadd.f32 %v5157_v4, %v5099_v51  ;;  %v5187_v52 = vmul.f32 %v9495_v10, %v4807_v20  ;;  %v5251_v46 = vrot.slane %v5213_v56, 1 }
 0x4c6   : > { %v5176_v19 = vadd.f32 %v5160_v28, %v5100_v9  ;;  %v5252_v48 = vrot.slane %v5214_v1, 1  ;;  %v5327_v57 = vrot.slane %v5289_v13, 2  ;;  %v5328_v61 = vrot.slane %v5290_v62, 2 }
 0x4c7   : > { %v5195_v16 = vadd.f32 %v5187_v52, %v5175_v38  ;;  %v5256_v58 = vsel %vm862_vm0, %v5254_v54, %v5255_v60  ;;  %v5332_v10 = vsel %vm1107_vm1, %v5330_v44, %v5331_v33  ;;  %v5537_v44 = vld [vmem:[%s9923_s15 + $0x8] sm:$0xff]  ;;  %v6401_v36 = vmov 0.0|0.0  }
 0x4c8   : > { %v5196_v2 = vadd.f32 %v9500_v18, %v5176_v19  ;;  %v5253_v40 = vsel %vm862_vm0, %v5251_v46, %v5252_v48  ;;  %v5329_v34 = vsel %vm1107_vm1, %v5327_v57, %v5328_v61  ;;  %v5536_v18 = vld [vmem:[%s9923_s15] sm:$0xff]  ;;  %v6256_v14 = vpack.c.bf16 %v5541_v21, %v5540_v55 }
 0x4c9   : > { %v5271_v35 = vadd.f32 %v5253_v40, %v5195_v16  ;;  %v6250_v30 = vpack.c.bf16 %v5537_v44, %v5536_v18  ;;  %v6259_v12 = vpack.c.bf16 %v5543_v11, %v5542_v43  ;;  %v6262_v15 = vpack.c.bf16 %v5545_v27, %v5544_v26  ;;  %v5552_v46 = vld [vmem:[%s9924_s16] sm:$0x1] }
 0x4ca   : > { %v5272_v20 = vadd.f32 %v5256_v58, %v5196_v2  ;;  %v6265_v45 = vpack.c.bf16 %v5547_v53, %v5546_v7  ;;  %v6268_v31 = vpack.c.bf16 %v5549_v39, %v5548_v5  ;;  %v6271_v25 = vpack.c.bf16 %v5551_v59, %v5550_v6 }
 0x4cb   : > { %v5347_v8 = vadd.f32 %v5329_v34, %v5271_v35 }
 0x4cc   : > { %v5348_v50 = vadd.f32 %v5332_v10, %v5272_v20 }
 0x4cd   : > { %v5361_v29 = vadd.f32 %v9577_v3, %v5347_v8 }
 0x4ce   : > { %v5362_v42 = vadd.f32 %v9577_v3, %v5348_v50  ;;  %v5538_v3 = vld [vmem:[%s9923_s15 + $0x10] sm:$0xff] }
 0x4cf   : > { %v5369_v23 = vmax.f32 %v5361_v29, 0.0  ;;  %v6253_v22 = vpack.c.bf16 %v5539_v17, %v5538_v3 }
 0x4d0   : > { %v5370_v54 = vmax.f32 %v5362_v42, 0.0 }
 0x4d2   : > { %v6213_v60 = vpack.c.bf16 %v5370_v54, %v5369_v23 }
 0x4d4   : > { %6214 = vmatprep.subr.bf16.mxu1 %v6213_v60 }
 0x4d5   : > { %6216 = vmatpush3.bf16.msra.mxu1 %v6213_v60 }
 0x4d6   : > { %6249 = vmatprep.subr.bf16.mxu1 %v6401_v36 }
 0x4d8   : > { %6033 = vmatmul.mubr.msk.f32.vlgmr.msra.gmra.mrb[24].mxu1 %vm5371_vm2, %v4815_v63 }
 0x4d9   : > { %6251 = vmatpush3.bf16.msra.mxu1 %v6250_v30  ;;  %6102 = vmatprep.mubr.msk.f32.mxu1 %vm6402_vm3, %v6335_v49 }
 0x4da   : > { %6252 = vmatprep.subr.bf16.mxu1 %v6401_v36 }
 0x4dd   : > { %6254 = vmatpush3.bf16.msra.mxu1 %v6253_v22 }
 0x4de   : > { %6255 = vmatprep.subr.bf16.mxu1 %v6401_v36 }
 0x4e1   : > { %6257 = vmatpush3.bf16.msra.mxu1 %v6256_v14 }
 0x4e2   : > { %6258 = vmatprep.subr.bf16.mxu1 %v6401_v36 }
 0x4e5   : > { %6260 = vmatpush3.bf16.msra.mxu1 %v6259_v12 }
 0x4e6   : > { %6261 = vmatprep.subr.bf16.mxu1 %v6401_v36 }
 0x4e9   : > { %6263 = vmatpush3.bf16.msra.mxu1 %v6262_v15 }
 0x4ea   : > { %6264 = vmatprep.subr.bf16.mxu1 %v6401_v36 }
 0x4ed   : > { %6266 = vmatpush3.bf16.msra.mxu1 %v6265_v45 }
 0x4ee   : > { %6267 = vmatprep.subr.bf16.mxu1 %v6401_v36 }
 0x4f1   : > { %6269 = vmatpush3.bf16.msra.mxu1 %v6268_v31 }
 0x4f2   : > { %6270 = vmatprep.subr.bf16.mxu1 %v6401_v36 }
 0x4f5   : > { %6272 = vmatpush3.bf16.msra.mxu1 %v6271_v25 }
 0x5ab   : > { %v6034_v41 = vpop.f32.mrb[24].mxu1 }
 0x5ac   : > { %v5444_v32 = vpop.f32.mrb[25].mxu1 }
 0x5ad   : > { %6067 = vmatprep.mubr.f32.mxu0 %v5444_v32 }
 0x5ae   : > { %6068 = vmatmul.mubr.f32.vlgmr.msra.gmra.mrb[32].mxu0 %v6034_v41 }
 0x681   : > { %v6069_v51 = vpop.f32.mrb[32].mxu0 }
 0x682   : > { %v5531_v0 = vadd.f32 %v6069_v51, %v5715_v37  ;;  %v5525_v47 = vpop.f32.mrb[33].mxu0 }
 0x683   : > { %v5526_v9 = vadd.f32 %v5715_v37, %v5525_v47 }
 0x684   : > { %v5535_v24 = vmax.f32 %v5531_v0, 0.0 }
 0x685   : > { %v5534_v56 = vmax.f32 %v5526_v9, 0.0 }
 0x687   : > { %v5553_v33 = vadd.f32 %v5535_v24, %v5534_v56 }
 0x689   : > { %v5554_v4 = vrot.slane %v5553_v33, 4 }
 0x68b   : > { %v5555_v1 = vadd.f32 %v5554_v4, %v5553_v33 }
 0x68d   : > { %v5556_v13 = vrot.slane %v5555_v1, 2 }
 0x68f   : > { %v5557_v62 = vadd.f32 %v5556_v13, %v5555_v1 }
 0x691   : > { %v5558_v28 = vrot.slane %v5557_v62, 1 }
 0x693   : > { %v5559_v38 = vadd.f32 %v5558_v28, %v5557_v62 }
 0x695   : > { %v5560_v52 = vmul.f32 0.0625, %v5559_v38 }
 0x697   : > { %6103 = vmatmul.mubr.f32.vlgmr.msra.gmra.mrb[26].mxu1 %v5560_v52 }
 0x76a   : > { %v5627_v19 = vpop.f32.mrb[26].mxu1 }
 0x76b   : > { %v5628_v48 = vadd.f32 %v5627_v19, %v5552_v46  ;;  %v6104_v57 = vpop.f32.mrb[27].mxu1 }
 0x76d   : > { %5631 = vst [vmem:[%s540_s18] sm:$0x1] %v5628_v48 }
 0x76e   : > { %6349 = shalt.err (!%p6346_p3)
}
 0x76f   : > { %s6350_s24 = scalar_lea.hbm %s9866_s21, 16  ;;  %s6354_s0 = scalar_lea.hbm %s9925_s17, 32 }
 0x770   : > { %p6351_p4 = scmp.ne.s32.totalorder %s9866_s21, %s6350_s24  ;;  %p6355_p9 = scmp.lt.u32.totalorder %s9866_s21, %s9925_s17 }
 0x771   : > { %p6356_p10 = scmp.lt.u32.totalorder %s6354_s0, %s6350_s24  ;;  %p6358_p12 = scmp.lt.u32.totalorder %s6350_s24, %s9866_s21 }
 0x772   : > { %p6352_p7 = pnand %p6351_p4, %p6532_p5 }
 0x773   : > { %p6357_p11 = por %p6356_p10, %p6355_p9 }
 0x774   : > { %p6353_p8 = pneg %p6352_p7 }
 0x775   : > { %p6359_p13 = por %p6358_p12, %p6357_p11 }
 0x777   : > { %p6360_p0 = pnand %p6359_p13, %p6353_p8 }
 0x779   : > { %6363 = shalt.err (!%p6360_p0)
}
 0x77a   : > { %6274 = dma.vmem_to_hbm [thread:$0]  (%p6532_p5), %s9868_s26, 16, %s9866_s21, %s5633_s19  }
 0x77b PF: > { %s9962_s2 = sld [smem:[#allocation7_spill]]  ;;  %p6280_p1 = scmp.ge.s32.totalorder %s6398_s27, 2 }
 0x77d   : > { %p6277_p2 = pnand %p6280_p1, %p6536_p6 }
 0x781   : > { %s5657_s29 = sand.u32 1, %s9962_s2  }
 0x782   : > { %s5658_s30 = scalar_lea.sflag [#allocation5], %s5657_s29 }
 0x783   : > { %6381 = dma.done.wait (!%p6277_p2), %s5658_s30, 16  }
 0x784   : > { %6383 = vsyncadd (!%p6277_p2), %s5658_s30, 4294967280  ;;  %s9964_s27 = sld [smem:[#allocation9_spill]]  ;;  %s9965_s18 = sld [smem:[#allocation8_spill]] }
 0x785   : > { %s9966_s26 = sld [smem:[#allocation10_spill]]  ;;  %s9967_s24 = smov %s6390_s25 }
 0x78a   : > { %p27_p3 = scmp.ge.s32.totalorder %s9964_s27, 4   ;;  %s9968_s25 = smov %s9965_s18 }
 0x78c   :  { %29 = sbr.rel (!%p27_p3) target bundleno = 7 (0x7), region = 125 }
 0x793   :  { %5662 = vsyncpa [#allocation5], 1 }
 0x794   :  { %5664 = vsyncpa [#allocation5 + $0x1], 1 }

</bundles_post_ra>
